<compile_context>
chip_gen: v5e
topology: v5e:2x2
jax: 0.10.0
libtpu: 0.0.40
codegen_flags: <defaults>
</compile_context>

<pallas_src>
from functools import partial

import jax
import jax.numpy as jnp
from jax.experimental import pallas as pl
from jax.experimental.pallas import tpu as pltpu

# ------------------------- toy StableLM-Epoch config -------------------------
VOCAB = 128
HIDDEN = 128                          # lane-dense (multiple of 128)
N_HEADS = 4
N_KV_HEADS = 2                        # GQA
HEAD_DIM = HIDDEN // N_HEADS          # 32
REP = N_HEADS // N_KV_HEADS           # query heads per kv head
Q_SIZE = N_HEADS * HEAD_DIM           # 128
KV_SIZE = N_KV_HEADS * HEAD_DIM       # 64
QKV_SIZE = Q_SIZE + 2 * KV_SIZE       # 256
INTERMEDIATE = 256
N_LAYERS = 2
ROPE_THETA = 10000.0
ROPE_PCT = 0.25                       # partial_rotary_factor
ROTARY_DIM = int(HEAD_DIM * ROPE_PCT) # 8
HALF = ROTARY_DIM // 2                # 4
NORM_EPS = 1e-5
SEQ = 8
SCALE = HEAD_DIM ** -0.5


# ------------------------------- kernel helpers ------------------------------
def _layer_norm(x, w, b, eps):
    """LayerNorm over the last dim; x:(T,H) f32, w/b broadcastable (1,H)."""
    mu = jnp.mean(x, axis=-1, keepdims=True)
    xc = x - mu
    var = jnp.mean(xc * xc, axis=-1, keepdims=True)
    return xc * jax.lax.rsqrt(var + eps) * w + b


def _rope(x, cos, sin_lo, sin_hi):
    """Partial NeoX rotary via two static lane rotations (XLU).

    out = x*cos + roll(x, -HALF)*sin_lo + roll(x, +HALF)*sin_hi.
    The sin tables are zero outside each head's rotary span, so lanes that a
    roll drags across head / q-k-v boundaries never contribute.
    """
    n = x.shape[-1]
    return (x * cos
            + pltpu.roll(x, shift=n - HALF, axis=1) * sin_lo   # reads x[d + HALF]
            + pltpu.roll(x, shift=HALF, axis=1) * sin_hi)      # reads x[d - HALF]


# ---------------------------------- kernel -----------------------------------
def _stablelm_kernel(h0_ref, mask_ref, rope_q_ref, rope_kv_ref,
                     ln_ref, qkv_b_ref, qkv_w_ref, o_w_ref, gu_w_ref, d_w_ref,
                     fn_ref, out_ref, *, n_layers, eps):
    f32 = jnp.float32
    bf16 = jnp.bfloat16

    h = h0_ref[...].astype(f32)                       # (T, HIDDEN) residual stream
    T = h.shape[0]

    # Layer-invariant tables, loaded once and reused by every layer.
    mask = mask_ref[...]                              # (T, T) additive causal mask
    cq, saq, sbq = rope_q_ref[0], rope_q_ref[1], rope_q_ref[2]     # (T, Q_SIZE)
    ck, sak, sbk = rope_kv_ref[0], rope_kv_ref[1], rope_kv_ref[2]  # (T, 2*KV_SIZE)

    for l in range(n_layers):                         # unrolled: everything in VMEM
        lv = ln_ref[l]                                # (4, HIDDEN) packed LN vectors

        # --------------------------- self-attention --------------------------
        x = _layer_norm(h, lv[0:1], lv[1:2], eps)
        qkv = jnp.dot(x.astype(bf16), qkv_w_ref[l],
                      preferred_element_type=f32) + qkv_b_ref[l]    # (T, QKV_SIZE)

        # Partial rotary.  Softmax scale is folded into the q tables; the v
        # columns of the kv table are pass-through (cos=1, sin=0).
        q = _rope(qkv[:, :Q_SIZE], cq, saq, sbq)                    # (T, Q_SIZE)
        kv = _rope(qkv[:, Q_SIZE:], ck, sak, sbk)                   # (T, 2*KV_SIZE)
        k = kv[:, :KV_SIZE]
        v = kv[:, KV_SIZE:]

        # Batched heads: (heads, T, head_dim).  GQA kv heads broadcast to all
        # query heads with a leading-dim broadcast (head h uses kv head h//REP).
        q3 = q.reshape(T, N_HEADS, HEAD_DIM).swapaxes(0, 1).astype(bf16)
        k3 = k.reshape(T, N_KV_HEADS, HEAD_DIM).swapaxes(0, 1).astype(bf16)
        v3 = v.reshape(T, N_KV_HEADS, HEAD_DIM).swapaxes(0, 1).astype(bf16)
        k3 = jnp.broadcast_to(k3[:, None], (N_KV_HEADS, REP, T, HEAD_DIM)
                              ).reshape(N_HEADS, T, HEAD_DIM)
        v3 = jnp.broadcast_to(v3[:, None], (N_KV_HEADS, REP, T, HEAD_DIM)
                              ).reshape(N_HEADS, T, HEAD_DIM)

        # One batched QK^T, one batched PV, one o-projection.
        s = jnp.einsum('htd,hsd->hts', q3, k3,
                       preferred_element_type=f32) + mask[None]     # (H, T, T)
        s = s - jnp.max(s, axis=-1, keepdims=True)
        p = jnp.exp(s)
        p = p * pl.reciprocal(jnp.sum(p, axis=-1, keepdims=True), approx=True)
        o3 = jnp.einsum('hts,hsd->htd', p.astype(bf16), v3,
                        preferred_element_type=f32)                 # (H, T, D)

        attn = o3.swapaxes(0, 1).reshape(T, Q_SIZE).astype(bf16)    # (T, Q_SIZE)
        h = h + jnp.dot(attn, o_w_ref[l], preferred_element_type=f32)

        # -------------------------------- MLP --------------------------------
        x = _layer_norm(h, lv[2:3], lv[3:4], eps)
        gu = jnp.dot(x.astype(bf16), gu_w_ref[l],
                     preferred_element_type=f32)                    # (T, 2*I)
        gate = gu[:, :INTERMEDIATE]
        up = gu[:, INTERMEDIATE:]
        act = gate * jax.nn.sigmoid(gate) * up                      # SiluAndMul
        h = h + jnp.dot(act.astype(bf16), d_w_ref[l],
                        preferred_element_type=f32)

    out_ref[...] = _layer_norm(h, fn_ref[0:1], fn_ref[1:2],
                               eps).astype(out_ref.dtype)


# ------------------------------- JAX wrapper ---------------------------------
def _rope_tables(positions):
    """Precompute cos / ±sin tables for roll-based partial NeoX RoPE.

    Within a head (index dd): cos = cos(theta) duplicated over [0, ROTARY_DIM)
    and 1 elsewhere; sin_lo = -sin on [0, HALF) (multiplies x[dd+HALF]);
    sin_hi = +sin on [HALF, ROTARY_DIM) (multiplies x[dd-HALF]); 0 elsewhere.
    """
    T = positions.shape[0]
    inv_freq = 1.0 / (ROPE_THETA ** (jnp.arange(0, ROTARY_DIM, 2, dtype=jnp.float32)
                                     / ROTARY_DIM))                  # (HALF,)
    ang = positions.astype(jnp.float32)[:, None] * inv_freq[None, :] # (T, HALF)
    cos, sin = jnp.cos(ang), jnp.sin(ang)
    zhalf = jnp.zeros_like(sin)
    opass = jnp.ones((T, HEAD_DIM - ROTARY_DIM), jnp.float32)
    zpass = jnp.zeros((T, HEAD_DIM - ROTARY_DIM), jnp.float32)
    cos_h = jnp.concatenate([cos, cos, opass], axis=-1)      # (T, HEAD_DIM)
    slo_h = jnp.concatenate([-sin, zhalf, zpass], axis=-1)
    shi_h = jnp.concatenate([zhalf, sin, zpass], axis=-1)

    def across(tab, n):
        return jnp.tile(tab, (1, n))

    # q tables: fold the attention scale (output is linear in the tables).
    rope_q = jnp.stack([across(cos_h, N_HEADS),
                        across(slo_h, N_HEADS),
                        across(shi_h, N_HEADS)]) * SCALE            # (3, T, Q_SIZE)
    # kv tables: k heads rotated, v columns pass through untouched.
    ones_v = jnp.ones((T, KV_SIZE), jnp.float32)
    zeros_v = jnp.zeros((T, KV_SIZE), jnp.float32)
    rope_kv = jnp.stack([
        jnp.concatenate([across(cos_h, N_KV_HEADS), ones_v], axis=-1),
        jnp.concatenate([across(slo_h, N_KV_HEADS), zeros_v], axis=-1),
        jnp.concatenate([across(shi_h, N_KV_HEADS), zeros_v], axis=-1),
    ])                                                              # (3, T, 2*KV)
    return rope_q, rope_kv


def stablelm_forward(params, input_ids, positions):
    T = input_ids.shape[0]
    h0 = jnp.take(params["embed"], input_ids, axis=0)               # (T, HIDDEN)
    rope_q, rope_kv = _rope_tables(positions)
    mask = jnp.triu(jnp.full((T, T), -1e30, jnp.float32), k=1)      # additive causal

    bf = jnp.bfloat16
    vmem = pl.BlockSpec(memory_space=pltpu.MemorySpace.VMEM)        # whole array in VMEM

    # Single grid-less invocation: every operand fits VMEM, so there is no
    # per-grid-step overhead and every input is DMA'd exactly once.
    # TODO(synk): at production StableLM dims, reintroduce a
    # ("parallel" seq-tile, "arbitrary" layer) grid and tile the QKV / MLP
    # weight matmuls so double-buffered tiles fit v7x's 64 MiB VMEM.
    return pl.pallas_call(
        partial(_stablelm_kernel, n_layers=N_LAYERS, eps=NORM_EPS),
        out_shape=jax.ShapeDtypeStruct((T, HIDDEN), jnp.float32),
        in_specs=[vmem] * 11,
        out_specs=vmem,
    )(h0, mask, rope_q, rope_kv,
      params["ln_vecs"], params["qkv_b"],
      params["qkv_w"].astype(bf), params["o_w"].astype(bf),
      params["gate_up_w"].astype(bf), params["down_w"].astype(bf),
      params["final_norm"])


# ------------------------------ parameter init -------------------------------
def init_params(key):
    std = 0.02
    keys = jax.random.split(key, 1 + 5 * N_LAYERS)

    def nrm(k, shape):
        return std * jax.random.normal(k, shape, jnp.float32)

    embed = nrm(keys[0], (VOCAB, HIDDEN))
    qkv_w = jnp.stack([nrm(keys[1 + 5 * i + 0], (HIDDEN, QKV_SIZE))
                       for i in range(N_LAYERS)])
    qkv_b = jnp.stack([nrm(keys[1 + 5 * i + 1], (1, QKV_SIZE))
                       for i in range(N_LAYERS)])
    o_w = jnp.stack([nrm(keys[1 + 5 * i + 2], (Q_SIZE, HIDDEN))
                     for i in range(N_LAYERS)])
    gate_up_w = jnp.stack([nrm(keys[1 + 5 * i + 3], (HIDDEN, 2 * INTERMEDIATE))
                           for i in range(N_LAYERS)])
    down_w = jnp.stack([nrm(keys[1 + 5 * i + 4], (INTERMEDIATE, HIDDEN))
                        for i in range(N_LAYERS)])

    # Packed LN vectors per layer: [ln1_w, ln1_b, ln2_w, ln2_b].
    one = jnp.ones((HIDDEN,), jnp.float32)
    zero = jnp.zeros((HIDDEN,), jnp.float32)
    ln_vecs = jnp.stack([jnp.stack([one, zero, one, zero])
                         for _ in range(N_LAYERS)])                 # (L, 4, HIDDEN)
    final_norm = jnp.stack([one, zero])                             # (2, HIDDEN)

    return {
        "embed": embed,
        "ln_vecs": ln_vecs,
        "qkv_w": qkv_w,
        "qkv_b": qkv_b,
        "o_w": o_w,
        "gate_up_w": gate_up_w,
        "down_w": down_w,
        "final_norm": final_norm,
    }


# ------------------------------------ main ------------------------------------
if __name__ == "__main__":
    key = jax.random.PRNGKey(0)
    pkey, ikey = jax.random.split(key)
    params = init_params(pkey)

    input_ids = jax.random.randint(ikey, (SEQ,), 0, VOCAB, dtype=jnp.int32)
    positions = jnp.arange(SEQ, dtype=jnp.int32)

    out = jax.jit(stablelm_forward)(params, input_ids, positions)
    out = jax.block_until_ready(out)
    assert out.shape == (SEQ, HIDDEN)
    assert bool(jnp.all(jnp.isfinite(out)))
    # TODO(synk): vLLM paged KV cache / IntermediateTensors (pipeline parallel)
    # are serving-runtime plumbing and are not reproduced; this is the
    # single-sequence causal prefill forward path.
    print("KERNEL_OK")
</pallas_src>

<mosaic_0001>
module attributes {stable_mosaic.version = 11 : i64} {
  func.func @_stablelm_kernel(%arg0: memref<8x128xf32, #tpu.memory_space<vmem>>, %arg1: memref<8x8xf32, #tpu.memory_space<vmem>>, %arg2: memref<3x8x128xf32, #tpu.memory_space<vmem>>, %arg3: memref<3x8x128xf32, #tpu.memory_space<vmem>>, %arg4: memref<2x4x128xf32, #tpu.memory_space<vmem>>, %arg5: memref<2x1x256xf32, #tpu.memory_space<vmem>>, %arg6: memref<2x128x256xbf16, #tpu.memory_space<vmem>>, %arg7: memref<2x128x128xbf16, #tpu.memory_space<vmem>>, %arg8: memref<2x128x512xbf16, #tpu.memory_space<vmem>>, %arg9: memref<2x256x128xbf16, #tpu.memory_space<vmem>>, %arg10: memref<2x128xf32, #tpu.memory_space<vmem>>, %arg11: memref<8x128xf32, #tpu.memory_space<vmem>>) attributes {dimension_semantics = [], scalar_prefetch = 0 : i64, scratch_operands = 0 : i64, tpu.core_type = #tpu.core_type<tc>} {
    %c0 = arith.constant 0 : index
    %c0_0 = arith.constant 0 : index
    %0 = vector.load %arg0[%c0, %c0_0] : memref<8x128xf32, #tpu.memory_space<vmem>>, vector<8x128xf32>
    %c0_1 = arith.constant 0 : index
    %c0_2 = arith.constant 0 : index
    %1 = vector.load %arg1[%c0_1, %c0_2] : memref<8x8xf32, #tpu.memory_space<vmem>>, vector<8x8xf32>
    %c0_3 = arith.constant 0 : index
    %c0_4 = arith.constant 0 : index
    %c0_5 = arith.constant 0 : index
    %2 = vector.load %arg2[%c0_3, %c0_4, %c0_5] : memref<3x8x128xf32, #tpu.memory_space<vmem>>, vector<1x8x128xf32>
    %3 = vector.shape_cast %2 : vector<1x8x128xf32> to vector<8x128xf32>
    %c1 = arith.constant 1 : index
    %c0_6 = arith.constant 0 : index
    %c0_7 = arith.constant 0 : index
    %4 = vector.load %arg2[%c1, %c0_6, %c0_7] : memref<3x8x128xf32, #tpu.memory_space<vmem>>, vector<1x8x128xf32>
    %5 = vector.shape_cast %4 : vector<1x8x128xf32> to vector<8x128xf32>
    %c2 = arith.constant 2 : index
    %c0_8 = arith.constant 0 : index
    %c0_9 = arith.constant 0 : index
    %6 = vector.load %arg2[%c2, %c0_8, %c0_9] : memref<3x8x128xf32, #tpu.memory_space<vmem>>, vector<1x8x128xf32>
    %7 = vector.shape_cast %6 : vector<1x8x128xf32> to vector<8x128xf32>
    %c0_10 = arith.constant 0 : index
    %c0_11 = arith.constant 0 : index
    %c0_12 = arith.constant 0 : index
    %8 = vector.load %arg3[%c0_10, %c0_11, %c0_12] : memref<3x8x128xf32, #tpu.memory_space<vmem>>, vector<1x8x128xf32>
    %9 = vector.shape_cast %8 : vector<1x8x128xf32> to vector<8x128xf32>
    %c1_13 = arith.constant 1 : index
    %c0_14 = arith.constant 0 : index
    %c0_15 = arith.constant 0 : index
    %10 = vector.load %arg3[%c1_13, %c0_14, %c0_15] : memref<3x8x128xf32, #tpu.memory_space<vmem>>, vector<1x8x128xf32>
    %11 = vector.shape_cast %10 : vector<1x8x128xf32> to vector<8x128xf32>
    %c2_16 = arith.constant 2 : index
    %c0_17 = arith.constant 0 : index
    %c0_18 = arith.constant 0 : index
    %12 = vector.load %arg3[%c2_16, %c0_17, %c0_18] : memref<3x8x128xf32, #tpu.memory_space<vmem>>, vector<1x8x128xf32>
    %13 = vector.shape_cast %12 : vector<1x8x128xf32> to vector<8x128xf32>
    %c0_19 = arith.constant 0 : index
    %c0_20 = arith.constant 0 : index
    %c0_21 = arith.constant 0 : index
    %14 = vector.load %arg4[%c0_19, %c0_20, %c0_21] : memref<2x4x128xf32, #tpu.memory_space<vmem>>, vector<1x4x128xf32>
    %15 = vector.shape_cast %14 : vector<1x4x128xf32> to vector<4x128xf32>
    %16 = vector.extract_strided_slice %15 {offsets = [0, 0], sizes = [1, 128], strides = [1, 1]} : vector<4x128xf32> to vector<1x128xf32>
    %17 = vector.extract_strided_slice %15 {offsets = [1, 0], sizes = [1, 128], strides = [1, 1]} : vector<4x128xf32> to vector<1x128xf32>
    %cst = arith.constant dense<0.000000e+00> : vector<8xf32>
    %18 = vector.multi_reduction <add>, %0, %cst [1] : vector<8x128xf32> to vector<8xf32>
    %19 = vector.shape_cast %18 : vector<8xf32> to vector<8x1xf32>
    %cst_22 = arith.constant 1.280000e+02 : f32
    %20 = vector.broadcast %cst_22 : f32 to vector<8x1xf32>
    %21 = arith.divf %19, %20 : vector<8x1xf32>
    %22 = vector.broadcast %21 : vector<8x1xf32> to vector<8x128xf32>
    %23 = arith.subf %0, %22 : vector<8x128xf32>
    %24 = arith.mulf %23, %23 : vector<8x128xf32>
    %cst_23 = arith.constant dense<0.000000e+00> : vector<8xf32>
    %25 = vector.multi_reduction <add>, %24, %cst_23 [1] : vector<8x128xf32> to vector<8xf32>
    %26 = vector.shape_cast %25 : vector<8xf32> to vector<8x1xf32>
    %cst_24 = arith.constant 1.280000e+02 : f32
    %27 = vector.broadcast %cst_24 : f32 to vector<8x1xf32>
    %28 = arith.divf %26, %27 : vector<8x1xf32>
    %cst_25 = arith.constant 9.99999974E-6 : f32
    %29 = vector.broadcast %cst_25 : f32 to vector<8x1xf32>
    %30 = arith.addf %28, %29 : vector<8x1xf32>
    %31 = math.rsqrt %30 : vector<8x1xf32>
    %32 = vector.broadcast %31 : vector<8x1xf32> to vector<8x128xf32>
    %33 = arith.mulf %23, %32 : vector<8x128xf32>
    %34 = vector.broadcast %16 : vector<1x128xf32> to vector<8x128xf32>
    %35 = arith.mulf %33, %34 : vector<8x128xf32>
    %36 = vector.broadcast %17 : vector<1x128xf32> to vector<8x128xf32>
    %37 = arith.addf %35, %36 : vector<8x128xf32>
    %38 = arith.truncf %37 : vector<8x128xf32> to vector<8x128xbf16>
    %c0_26 = arith.constant 0 : index
    %c0_27 = arith.constant 0 : index
    %c0_28 = arith.constant 0 : index
    %39 = vector.load %arg6[%c0_26, %c0_27, %c0_28] : memref<2x128x256xbf16, #tpu.memory_space<vmem>>, vector<1x128x256xbf16>
    %40 = vector.shape_cast %39 : vector<1x128x256xbf16> to vector<128x256xbf16>
    %cst_29 = arith.constant dense<0.000000e+00> : vector<8x256xf32>
    %41 = tpu.matmul %38, %40, %cst_29 {dimension_numbers = #tpu.dot_dimension_numbers<[1], [0], [0], [1], [0, 0, 1, 1], [], []>} : vector<8x128xbf16>, vector<128x256xbf16>, vector<8x256xf32> -> vector<8x256xf32>
    %c0_30 = arith.constant 0 : index
    %c0_31 = arith.constant 0 : index
    %c0_32 = arith.constant 0 : index
    %42 = vector.load %arg5[%c0_30, %c0_31, %c0_32] : memref<2x1x256xf32, #tpu.memory_space<vmem>>, vector<1x1x256xf32>
    %43 = vector.shape_cast %42 : vector<1x1x256xf32> to vector<1x256xf32>
    %44 = vector.broadcast %43 : vector<1x256xf32> to vector<8x256xf32>
    %45 = arith.addf %41, %44 : vector<8x256xf32>
    %46 = vector.extract_strided_slice %45 {offsets = [0, 0], sizes = [8, 128], strides = [1, 1]} : vector<8x256xf32> to vector<8x128xf32>
    %47 = arith.mulf %46, %3 : vector<8x128xf32>
    %c124_i32 = arith.constant 124 : i32
    %48 = tpu.dynamic_rotate %46 by %c124_i32 dim 1 : vector<8x128xf32>, i32 -> vector<8x128xf32>
    %49 = arith.mulf %48, %5 : vector<8x128xf32>
    %50 = arith.addf %47, %49 : vector<8x128xf32>
    %c4_i32 = arith.constant 4 : i32
    %51 = tpu.dynamic_rotate %46 by %c4_i32 dim 1 : vector<8x128xf32>, i32 -> vector<8x128xf32>
    %52 = arith.mulf %51, %7 : vector<8x128xf32>
    %53 = arith.addf %50, %52 : vector<8x128xf32>
    %54 = vector.extract_strided_slice %45 {offsets = [0, 128], sizes = [8, 128], strides = [1, 1]} : vector<8x256xf32> to vector<8x128xf32>
    %55 = arith.mulf %54, %9 : vector<8x128xf32>
    %c124_i32_33 = arith.constant 124 : i32
    %56 = tpu.dynamic_rotate %54 by %c124_i32_33 dim 1 : vector<8x128xf32>, i32 -> vector<8x128xf32>
    %57 = arith.mulf %56, %11 : vector<8x128xf32>
    %58 = arith.addf %55, %57 : vector<8x128xf32>
    %c4_i32_34 = arith.constant 4 : i32
    %59 = tpu.dynamic_rotate %54 by %c4_i32_34 dim 1 : vector<8x128xf32>, i32 -> vector<8x128xf32>
    %60 = arith.mulf %59, %13 : vector<8x128xf32>
    %61 = arith.addf %58, %60 : vector<8x128xf32>
    %62 = vector.extract_strided_slice %61 {offsets = [0, 0], sizes = [8, 64], strides = [1, 1]} : vector<8x128xf32> to vector<8x64xf32>
    %63 = vector.extract_strided_slice %61 {offsets = [0, 64], sizes = [8, 64], strides = [1, 1]} : vector<8x128xf32> to vector<8x64xf32>
    %64 = vector.shape_cast %53 : vector<8x128xf32> to vector<8x4x32xf32>
    %65 = tpu.transpose %64, [1, 0, 2] : vector<8x4x32xf32> -> vector<4x8x32xf32>
    %66 = arith.truncf %65 : vector<4x8x32xf32> to vector<4x8x32xbf16>
    %67 = vector.shape_cast %62 : vector<8x64xf32> to vector<8x2x32xf32>
    %68 = tpu.transpose %67, [1, 0, 2] : vector<8x2x32xf32> -> vector<2x8x32xf32>
    %69 = arith.truncf %68 : vector<2x8x32xf32> to vector<2x8x32xbf16>
    %70 = vector.shape_cast %63 : vector<8x64xf32> to vector<8x2x32xf32>
    %71 = tpu.transpose %70, [1, 0, 2] : vector<8x2x32xf32> -> vector<2x8x32xf32>
    %72 = arith.truncf %71 : vector<2x8x32xf32> to vector<2x8x32xbf16>
    %73 = vector.shape_cast %69 : vector<2x8x32xbf16> to vector<2x1x8x32xbf16>
    %74 = vector.shape_cast %73 : vector<2x1x8x32xbf16> to vector<2x1x8x32xbf16>
    %75 = vector.broadcast %74 : vector<2x1x8x32xbf16> to vector<2x2x8x32xbf16>
    %76 = vector.shape_cast %75 : vector<2x2x8x32xbf16> to vector<4x8x32xbf16>
    %77 = vector.shape_cast %72 : vector<2x8x32xbf16> to vector<2x1x8x32xbf16>
    %78 = vector.shape_cast %77 : vector<2x1x8x32xbf16> to vector<2x1x8x32xbf16>
    %79 = vector.broadcast %78 : vector<2x1x8x32xbf16> to vector<2x2x8x32xbf16>
    %80 = vector.shape_cast %79 : vector<2x2x8x32xbf16> to vector<4x8x32xbf16>
    "tpu.trace_start"() <{level = 10 : i32, message = "htd,hsd->hts"}> : () -> ()
    %cst_35 = arith.constant dense<0.000000e+00> : vector<4x8x8xf32>
    %81 = tpu.matmul %66, %76, %cst_35 {dimension_numbers = #tpu.dot_dimension_numbers<[2], [2], [1], [1], [0, 0, 0, 1, 1, 1], [0], [0]>} : vector<4x8x32xbf16>, vector<4x8x32xbf16>, vector<4x8x8xf32> -> vector<4x8x8xf32>
    "tpu.trace_stop"() : () -> ()
    %82 = vector.shape_cast %1 : vector<8x8xf32> to vector<1x8x8xf32>
    %83 = vector.broadcast %82 : vector<1x8x8xf32> to vector<4x8x8xf32>
    %84 = arith.addf %81, %83 : vector<4x8x8xf32>
    %cst_36 = arith.constant dense<0xFF800000> : vector<4x8xf32>
    %85 = vector.multi_reduction <maximumf>, %84, %cst_36 [2] : vector<4x8x8xf32> to vector<4x8xf32>
    %86 = vector.shape_cast %85 : vector<4x8xf32> to vector<4x8x1xf32>
    %87 = vector.broadcast %86 : vector<4x8x1xf32> to vector<4x8x8xf32>
    %88 = arith.subf %84, %87 : vector<4x8x8xf32>
    %89 = math.exp %88 : vector<4x8x8xf32>
    %cst_37 = arith.constant dense<0.000000e+00> : vector<4x8xf32>
    %90 = vector.multi_reduction <add>, %89, %cst_37 [2] : vector<4x8x8xf32> to vector<4x8xf32>
    %91 = vector.shape_cast %90 : vector<4x8xf32> to vector<4x8x1xf32>
    %92 = tpu.reciprocal %91 {approx = true} : vector<4x8x1xf32> -> vector<4x8x1xf32>
    %93 = vector.broadcast %92 : vector<4x8x1xf32> to vector<4x8x8xf32>
    %94 = arith.mulf %89, %93 : vector<4x8x8xf32>
    %95 = arith.truncf %94 : vector<4x8x8xf32> to vector<4x8x8xbf16>
    "tpu.trace_start"() <{level = 10 : i32, message = "hts,hsd->htd"}> : () -> ()
    %cst_38 = arith.constant dense<0.000000e+00> : vector<4x8x32xf32>
    %96 = tpu.matmul %95, %80, %cst_38 {dimension_numbers = #tpu.dot_dimension_numbers<[2], [1], [1], [2], [0, 0, 0, 1, 1, 2], [0], [0]>} : vector<4x8x8xbf16>, vector<4x8x32xbf16>, vector<4x8x32xf32> -> vector<4x8x32xf32>
    "tpu.trace_stop"() : () -> ()
    %97 = tpu.transpose %96, [1, 0, 2] : vector<4x8x32xf32> -> vector<8x4x32xf32>
    %98 = vector.shape_cast %97 : vector<8x4x32xf32> to vector<8x128xf32>
    %99 = arith.truncf %98 : vector<8x128xf32> to vector<8x128xbf16>
    %c0_39 = arith.constant 0 : index
    %c0_40 = arith.constant 0 : index
    %c0_41 = arith.constant 0 : index
    %100 = vector.load %arg7[%c0_39, %c0_40, %c0_41] : memref<2x128x128xbf16, #tpu.memory_space<vmem>>, vector<1x128x128xbf16>
    %101 = vector.shape_cast %100 : vector<1x128x128xbf16> to vector<128x128xbf16>
    %cst_42 = arith.constant dense<0.000000e+00> : vector<8x128xf32>
    %102 = tpu.matmul %99, %101, %cst_42 {dimension_numbers = #tpu.dot_dimension_numbers<[1], [0], [0], [1], [0, 0, 1, 1], [], []>} : vector<8x128xbf16>, vector<128x128xbf16>, vector<8x128xf32> -> vector<8x128xf32>
    %103 = arith.addf %0, %102 : vector<8x128xf32>
    %104 = vector.extract_strided_slice %15 {offsets = [2, 0], sizes = [1, 128], strides = [1, 1]} : vector<4x128xf32> to vector<1x128xf32>
    %105 = vector.extract_strided_slice %15 {offsets = [3, 0], sizes = [1, 128], strides = [1, 1]} : vector<4x128xf32> to vector<1x128xf32>
    %cst_43 = arith.constant dense<0.000000e+00> : vector<8xf32>
    %106 = vector.multi_reduction <add>, %103, %cst_43 [1] : vector<8x128xf32> to vector<8xf32>
    %107 = vector.shape_cast %106 : vector<8xf32> to vector<8x1xf32>
    %cst_44 = arith.constant 1.280000e+02 : f32
    %108 = vector.broadcast %cst_44 : f32 to vector<8x1xf32>
    %109 = arith.divf %107, %108 : vector<8x1xf32>
    %110 = vector.broadcast %109 : vector<8x1xf32> to vector<8x128xf32>
    %111 = arith.subf %103, %110 : vector<8x128xf32>
    %112 = arith.mulf %111, %111 : vector<8x128xf32>
    %cst_45 = arith.constant dense<0.000000e+00> : vector<8xf32>
    %113 = vector.multi_reduction <add>, %112, %cst_45 [1] : vector<8x128xf32> to vector<8xf32>
    %114 = vector.shape_cast %113 : vector<8xf32> to vector<8x1xf32>
    %cst_46 = arith.constant 1.280000e+02 : f32
    %115 = vector.broadcast %cst_46 : f32 to vector<8x1xf32>
    %116 = arith.divf %114, %115 : vector<8x1xf32>
    %cst_47 = arith.constant 9.99999974E-6 : f32
    %117 = vector.broadcast %cst_47 : f32 to vector<8x1xf32>
    %118 = arith.addf %116, %117 : vector<8x1xf32>
    %119 = math.rsqrt %118 : vector<8x1xf32>
    %120 = vector.broadcast %119 : vector<8x1xf32> to vector<8x128xf32>
    %121 = arith.mulf %111, %120 : vector<8x128xf32>
    %122 = vector.broadcast %104 : vector<1x128xf32> to vector<8x128xf32>
    %123 = arith.mulf %121, %122 : vector<8x128xf32>
    %124 = vector.broadcast %105 : vector<1x128xf32> to vector<8x128xf32>
    %125 = arith.addf %123, %124 : vector<8x128xf32>
    %126 = arith.truncf %125 : vector<8x128xf32> to vector<8x128xbf16>
    %c0_48 = arith.constant 0 : index
    %c0_49 = arith.constant 0 : index
    %c0_50 = arith.constant 0 : index
    %127 = vector.load %arg8[%c0_48, %c0_49, %c0_50] : memref<2x128x512xbf16, #tpu.memory_space<vmem>>, vector<1x128x512xbf16>
    %128 = vector.shape_cast %127 : vector<1x128x512xbf16> to vector<128x512xbf16>
    %cst_51 = arith.constant dense<0.000000e+00> : vector<8x512xf32>
    %129 = tpu.matmul %126, %128, %cst_51 {dimension_numbers = #tpu.dot_dimension_numbers<[1], [0], [0], [1], [0, 0, 1, 1], [], []>} : vector<8x128xbf16>, vector<128x512xbf16>, vector<8x512xf32> -> vector<8x512xf32>
    %130 = vector.extract_strided_slice %129 {offsets = [0, 0], sizes = [8, 256], strides = [1, 1]} : vector<8x512xf32> to vector<8x256xf32>
    %131 = vector.extract_strided_slice %129 {offsets = [0, 256], sizes = [8, 256], strides = [1, 1]} : vector<8x512xf32> to vector<8x256xf32>
    %132 = arith.negf %130 : vector<8x256xf32>
    %133 = math.exp %132 : vector<8x256xf32>
    %cst_52 = arith.constant 1.000000e+00 : f32
    %134 = vector.broadcast %cst_52 : f32 to vector<8x256xf32>
    %135 = arith.addf %134, %133 : vector<8x256xf32>
    %136 = arith.divf %134, %135 : vector<8x256xf32>
    %137 = arith.mulf %130, %136 : vector<8x256xf32>
    %138 = arith.mulf %137, %131 : vector<8x256xf32>
    %139 = arith.truncf %138 : vector<8x256xf32> to vector<8x256xbf16>
    %c0_53 = arith.constant 0 : index
    %c0_54 = arith.constant 0 : index
    %c0_55 = arith.constant 0 : index
    %140 = vector.load %arg9[%c0_53, %c0_54, %c0_55] : memref<2x256x128xbf16, #tpu.memory_space<vmem>>, vector<1x256x128xbf16>
    %141 = vector.shape_cast %140 : vector<1x256x128xbf16> to vector<256x128xbf16>
    %cst_56 = arith.constant dense<0.000000e+00> : vector<8x128xf32>
    %142 = tpu.matmul %139, %141, %cst_56 {dimension_numbers = #tpu.dot_dimension_numbers<[1], [0], [0], [1], [0, 0, 1, 1], [], []>} : vector<8x256xbf16>, vector<256x128xbf16>, vector<8x128xf32> -> vector<8x128xf32>
    %143 = arith.addf %103, %142 : vector<8x128xf32>
    %c1_57 = arith.constant 1 : index
    %c0_58 = arith.constant 0 : index
    %c0_59 = arith.constant 0 : index
    %144 = vector.load %arg4[%c1_57, %c0_58, %c0_59] : memref<2x4x128xf32, #tpu.memory_space<vmem>>, vector<1x4x128xf32>
    %145 = vector.shape_cast %144 : vector<1x4x128xf32> to vector<4x128xf32>
    %146 = vector.extract_strided_slice %145 {offsets = [0, 0], sizes = [1, 128], strides = [1, 1]} : vector<4x128xf32> to vector<1x128xf32>
    %147 = vector.extract_strided_slice %145 {offsets = [1, 0], sizes = [1, 128], strides = [1, 1]} : vector<4x128xf32> to vector<1x128xf32>
    %cst_60 = arith.constant dense<0.000000e+00> : vector<8xf32>
    %148 = vector.multi_reduction <add>, %143, %cst_60 [1] : vector<8x128xf32> to vector<8xf32>
    %149 = vector.shape_cast %148 : vector<8xf32> to vector<8x1xf32>
    %cst_61 = arith.constant 1.280000e+02 : f32
    %150 = vector.broadcast %cst_61 : f32 to vector<8x1xf32>
    %151 = arith.divf %149, %150 : vector<8x1xf32>
    %152 = vector.broadcast %151 : vector<8x1xf32> to vector<8x128xf32>
    %153 = arith.subf %143, %152 : vector<8x128xf32>
    %154 = arith.mulf %153, %153 : vector<8x128xf32>
    %cst_62 = arith.constant dense<0.000000e+00> : vector<8xf32>
    %155 = vector.multi_reduction <add>, %154, %cst_62 [1] : vector<8x128xf32> to vector<8xf32>
    %156 = vector.shape_cast %155 : vector<8xf32> to vector<8x1xf32>
    %cst_63 = arith.constant 1.280000e+02 : f32
    %157 = vector.broadcast %cst_63 : f32 to vector<8x1xf32>
    %158 = arith.divf %156, %157 : vector<8x1xf32>
    %cst_64 = arith.constant 9.99999974E-6 : f32
    %159 = vector.broadcast %cst_64 : f32 to vector<8x1xf32>
    %160 = arith.addf %158, %159 : vector<8x1xf32>
    %161 = math.rsqrt %160 : vector<8x1xf32>
    %162 = vector.broadcast %161 : vector<8x1xf32> to vector<8x128xf32>
    %163 = arith.mulf %153, %162 : vector<8x128xf32>
    %164 = vector.broadcast %146 : vector<1x128xf32> to vector<8x128xf32>
    %165 = arith.mulf %163, %164 : vector<8x128xf32>
    %166 = vector.broadcast %147 : vector<1x128xf32> to vector<8x128xf32>
    %167 = arith.addf %165, %166 : vector<8x128xf32>
    %168 = arith.truncf %167 : vector<8x128xf32> to vector<8x128xbf16>
    %c1_65 = arith.constant 1 : index
    %c0_66 = arith.constant 0 : index
    %c0_67 = arith.constant 0 : index
    %169 = vector.load %arg6[%c1_65, %c0_66, %c0_67] : memref<2x128x256xbf16, #tpu.memory_space<vmem>>, vector<1x128x256xbf16>
    %170 = vector.shape_cast %169 : vector<1x128x256xbf16> to vector<128x256xbf16>
    %cst_68 = arith.constant dense<0.000000e+00> : vector<8x256xf32>
    %171 = tpu.matmul %168, %170, %cst_68 {dimension_numbers = #tpu.dot_dimension_numbers<[1], [0], [0], [1], [0, 0, 1, 1], [], []>} : vector<8x128xbf16>, vector<128x256xbf16>, vector<8x256xf32> -> vector<8x256xf32>
    %c1_69 = arith.constant 1 : index
    %c0_70 = arith.constant 0 : index
    %c0_71 = arith.constant 0 : index
    %172 = vector.load %arg5[%c1_69, %c0_70, %c0_71] : memref<2x1x256xf32, #tpu.memory_space<vmem>>, vector<1x1x256xf32>
    %173 = vector.shape_cast %172 : vector<1x1x256xf32> to vector<1x256xf32>
    %174 = vector.broadcast %173 : vector<1x256xf32> to vector<8x256xf32>
    %175 = arith.addf %171, %174 : vector<8x256xf32>
    %176 = vector.extract_strided_slice %175 {offsets = [0, 0], sizes = [8, 128], strides = [1, 1]} : vector<8x256xf32> to vector<8x128xf32>
    %177 = arith.mulf %176, %3 : vector<8x128xf32>
    %c124_i32_72 = arith.constant 124 : i32
    %178 = tpu.dynamic_rotate %176 by %c124_i32_72 dim 1 : vector<8x128xf32>, i32 -> vector<8x128xf32>
    %179 = arith.mulf %178, %5 : vector<8x128xf32>
    %180 = arith.addf %177, %179 : vector<8x128xf32>
    %c4_i32_73 = arith.constant 4 : i32
    %181 = tpu.dynamic_rotate %176 by %c4_i32_73 dim 1 : vector<8x128xf32>, i32 -> vector<8x128xf32>
    %182 = arith.mulf %181, %7 : vector<8x128xf32>
    %183 = arith.addf %180, %182 : vector<8x128xf32>
    %184 = vector.extract_strided_slice %175 {offsets = [0, 128], sizes = [8, 128], strides = [1, 1]} : vector<8x256xf32> to vector<8x128xf32>
    %185 = arith.mulf %184, %9 : vector<8x128xf32>
    %c124_i32_74 = arith.constant 124 : i32
    %186 = tpu.dynamic_rotate %184 by %c124_i32_74 dim 1 : vector<8x128xf32>, i32 -> vector<8x128xf32>
    %187 = arith.mulf %186, %11 : vector<8x128xf32>
    %188 = arith.addf %185, %187 : vector<8x128xf32>
    %c4_i32_75 = arith.constant 4 : i32
    %189 = tpu.dynamic_rotate %184 by %c4_i32_75 dim 1 : vector<8x128xf32>, i32 -> vector<8x128xf32>
    %190 = arith.mulf %189, %13 : vector<8x128xf32>
    %191 = arith.addf %188, %190 : vector<8x128xf32>
    %192 = vector.extract_strided_slice %191 {offsets = [0, 0], sizes = [8, 64], strides = [1, 1]} : vector<8x128xf32> to vector<8x64xf32>
    %193 = vector.extract_strided_slice %191 {offsets = [0, 64], sizes = [8, 64], strides = [1, 1]} : vector<8x128xf32> to vector<8x64xf32>
    %194 = vector.shape_cast %183 : vector<8x128xf32> to vector<8x4x32xf32>
    %195 = tpu.transpose %194, [1, 0, 2] : vector<8x4x32xf32> -> vector<4x8x32xf32>
    %196 = arith.truncf %195 : vector<4x8x32xf32> to vector<4x8x32xbf16>
    %197 = vector.shape_cast %192 : vector<8x64xf32> to vector<8x2x32xf32>
    %198 = tpu.transpose %197, [1, 0, 2] : vector<8x2x32xf32> -> vector<2x8x32xf32>
    %199 = arith.truncf %198 : vector<2x8x32xf32> to vector<2x8x32xbf16>
    %200 = vector.shape_cast %193 : vector<8x64xf32> to vector<8x2x32xf32>
    %201 = tpu.transpose %200, [1, 0, 2] : vector<8x2x32xf32> -> vector<2x8x32xf32>
    %202 = arith.truncf %201 : vector<2x8x32xf32> to vector<2x8x32xbf16>
    %203 = vector.shape_cast %199 : vector<2x8x32xbf16> to vector<2x1x8x32xbf16>
    %204 = vector.shape_cast %203 : vector<2x1x8x32xbf16> to vector<2x1x8x32xbf16>
    %205 = vector.broadcast %204 : vector<2x1x8x32xbf16> to vector<2x2x8x32xbf16>
    %206 = vector.shape_cast %205 : vector<2x2x8x32xbf16> to vector<4x8x32xbf16>
    %207 = vector.shape_cast %202 : vector<2x8x32xbf16> to vector<2x1x8x32xbf16>
    %208 = vector.shape_cast %207 : vector<2x1x8x32xbf16> to vector<2x1x8x32xbf16>
    %209 = vector.broadcast %208 : vector<2x1x8x32xbf16> to vector<2x2x8x32xbf16>
    %210 = vector.shape_cast %209 : vector<2x2x8x32xbf16> to vector<4x8x32xbf16>
    "tpu.trace_start"() <{level = 10 : i32, message = "htd,hsd->hts"}> : () -> ()
    %cst_76 = arith.constant dense<0.000000e+00> : vector<4x8x8xf32>
    %211 = tpu.matmul %196, %206, %cst_76 {dimension_numbers = #tpu.dot_dimension_numbers<[2], [2], [1], [1], [0, 0, 0, 1, 1, 1], [0], [0]>} : vector<4x8x32xbf16>, vector<4x8x32xbf16>, vector<4x8x8xf32> -> vector<4x8x8xf32>
    "tpu.trace_stop"() : () -> ()
    %212 = vector.shape_cast %1 : vector<8x8xf32> to vector<1x8x8xf32>
    %213 = vector.broadcast %212 : vector<1x8x8xf32> to vector<4x8x8xf32>
    %214 = arith.addf %211, %213 : vector<4x8x8xf32>
    %cst_77 = arith.constant dense<0xFF800000> : vector<4x8xf32>
    %215 = vector.multi_reduction <maximumf>, %214, %cst_77 [2] : vector<4x8x8xf32> to vector<4x8xf32>
    %216 = vector.shape_cast %215 : vector<4x8xf32> to vector<4x8x1xf32>
    %217 = vector.broadcast %216 : vector<4x8x1xf32> to vector<4x8x8xf32>
    %218 = arith.subf %214, %217 : vector<4x8x8xf32>
    %219 = math.exp %218 : vector<4x8x8xf32>
    %cst_78 = arith.constant dense<0.000000e+00> : vector<4x8xf32>
    %220 = vector.multi_reduction <add>, %219, %cst_78 [2] : vector<4x8x8xf32> to vector<4x8xf32>
    %221 = vector.shape_cast %220 : vector<4x8xf32> to vector<4x8x1xf32>
    %222 = tpu.reciprocal %221 {approx = true} : vector<4x8x1xf32> -> vector<4x8x1xf32>
    %223 = vector.broadcast %222 : vector<4x8x1xf32> to vector<4x8x8xf32>
    %224 = arith.mulf %219, %223 : vector<4x8x8xf32>
    %225 = arith.truncf %224 : vector<4x8x8xf32> to vector<4x8x8xbf16>
    "tpu.trace_start"() <{level = 10 : i32, message = "hts,hsd->htd"}> : () -> ()
    %cst_79 = arith.constant dense<0.000000e+00> : vector<4x8x32xf32>
    %226 = tpu.matmul %225, %210, %cst_79 {dimension_numbers = #tpu.dot_dimension_numbers<[2], [1], [1], [2], [0, 0, 0, 1, 1, 2], [0], [0]>} : vector<4x8x8xbf16>, vector<4x8x32xbf16>, vector<4x8x32xf32> -> vector<4x8x32xf32>
    "tpu.trace_stop"() : () -> ()
    %227 = tpu.transpose %226, [1, 0, 2] : vector<4x8x32xf32> -> vector<8x4x32xf32>
    %228 = vector.shape_cast %227 : vector<8x4x32xf32> to vector<8x128xf32>
    %229 = arith.truncf %228 : vector<8x128xf32> to vector<8x128xbf16>
    %c1_80 = arith.constant 1 : index
    %c0_81 = arith.constant 0 : index
    %c0_82 = arith.constant 0 : index
    %230 = vector.load %arg7[%c1_80, %c0_81, %c0_82] : memref<2x128x128xbf16, #tpu.memory_space<vmem>>, vector<1x128x128xbf16>
    %231 = vector.shape_cast %230 : vector<1x128x128xbf16> to vector<128x128xbf16>
    %cst_83 = arith.constant dense<0.000000e+00> : vector<8x128xf32>
    %232 = tpu.matmul %229, %231, %cst_83 {dimension_numbers = #tpu.dot_dimension_numbers<[1], [0], [0], [1], [0, 0, 1, 1], [], []>} : vector<8x128xbf16>, vector<128x128xbf16>, vector<8x128xf32> -> vector<8x128xf32>
    %233 = arith.addf %143, %232 : vector<8x128xf32>
    %234 = vector.extract_strided_slice %145 {offsets = [2, 0], sizes = [1, 128], strides = [1, 1]} : vector<4x128xf32> to vector<1x128xf32>
    %235 = vector.extract_strided_slice %145 {offsets = [3, 0], sizes = [1, 128], strides = [1, 1]} : vector<4x128xf32> to vector<1x128xf32>
    %cst_84 = arith.constant dense<0.000000e+00> : vector<8xf32>
    %236 = vector.multi_reduction <add>, %233, %cst_84 [1] : vector<8x128xf32> to vector<8xf32>
    %237 = vector.shape_cast %236 : vector<8xf32> to vector<8x1xf32>
    %cst_85 = arith.constant 1.280000e+02 : f32
    %238 = vector.broadcast %cst_85 : f32 to vector<8x1xf32>
    %239 = arith.divf %237, %238 : vector<8x1xf32>
    %240 = vector.broadcast %239 : vector<8x1xf32> to vector<8x128xf32>
    %241 = arith.subf %233, %240 : vector<8x128xf32>
    %242 = arith.mulf %241, %241 : vector<8x128xf32>
    %cst_86 = arith.constant dense<0.000000e+00> : vector<8xf32>
    %243 = vector.multi_reduction <add>, %242, %cst_86 [1] : vector<8x128xf32> to vector<8xf32>
    %244 = vector.shape_cast %243 : vector<8xf32> to vector<8x1xf32>
    %cst_87 = arith.constant 1.280000e+02 : f32
    %245 = vector.broadcast %cst_87 : f32 to vector<8x1xf32>
    %246 = arith.divf %244, %245 : vector<8x1xf32>
    %cst_88 = arith.constant 9.99999974E-6 : f32
    %247 = vector.broadcast %cst_88 : f32 to vector<8x1xf32>
    %248 = arith.addf %246, %247 : vector<8x1xf32>
    %249 = math.rsqrt %248 : vector<8x1xf32>
    %250 = vector.broadcast %249 : vector<8x1xf32> to vector<8x128xf32>
    %251 = arith.mulf %241, %250 : vector<8x128xf32>
    %252 = vector.broadcast %234 : vector<1x128xf32> to vector<8x128xf32>
    %253 = arith.mulf %251, %252 : vector<8x128xf32>
    %254 = vector.broadcast %235 : vector<1x128xf32> to vector<8x128xf32>
    %255 = arith.addf %253, %254 : vector<8x128xf32>
    %256 = arith.truncf %255 : vector<8x128xf32> to vector<8x128xbf16>
    %c1_89 = arith.constant 1 : index
    %c0_90 = arith.constant 0 : index
    %c0_91 = arith.constant 0 : index
    %257 = vector.load %arg8[%c1_89, %c0_90, %c0_91] : memref<2x128x512xbf16, #tpu.memory_space<vmem>>, vector<1x128x512xbf16>
    %258 = vector.shape_cast %257 : vector<1x128x512xbf16> to vector<128x512xbf16>
    %cst_92 = arith.constant dense<0.000000e+00> : vector<8x512xf32>
    %259 = tpu.matmul %256, %258, %cst_92 {dimension_numbers = #tpu.dot_dimension_numbers<[1], [0], [0], [1], [0, 0, 1, 1], [], []>} : vector<8x128xbf16>, vector<128x512xbf16>, vector<8x512xf32> -> vector<8x512xf32>
    %260 = vector.extract_strided_slice %259 {offsets = [0, 0], sizes = [8, 256], strides = [1, 1]} : vector<8x512xf32> to vector<8x256xf32>
    %261 = vector.extract_strided_slice %259 {offsets = [0, 256], sizes = [8, 256], strides = [1, 1]} : vector<8x512xf32> to vector<8x256xf32>
    %262 = arith.negf %260 : vector<8x256xf32>
    %263 = math.exp %262 : vector<8x256xf32>
    %cst_93 = arith.constant 1.000000e+00 : f32
    %264 = vector.broadcast %cst_93 : f32 to vector<8x256xf32>
    %265 = arith.addf %264, %263 : vector<8x256xf32>
    %266 = arith.divf %264, %265 : vector<8x256xf32>
    %267 = arith.mulf %260, %266 : vector<8x256xf32>
    %268 = arith.mulf %267, %261 : vector<8x256xf32>
    %269 = arith.truncf %268 : vector<8x256xf32> to vector<8x256xbf16>
    %c1_94 = arith.constant 1 : index
    %c0_95 = arith.constant 0 : index
    %c0_96 = arith.constant 0 : index
    %270 = vector.load %arg9[%c1_94, %c0_95, %c0_96] : memref<2x256x128xbf16, #tpu.memory_space<vmem>>, vector<1x256x128xbf16>
    %271 = vector.shape_cast %270 : vector<1x256x128xbf16> to vector<256x128xbf16>
    %cst_97 = arith.constant dense<0.000000e+00> : vector<8x128xf32>
    %272 = tpu.matmul %269, %271, %cst_97 {dimension_numbers = #tpu.dot_dimension_numbers<[1], [0], [0], [1], [0, 0, 1, 1], [], []>} : vector<8x256xbf16>, vector<256x128xbf16>, vector<8x128xf32> -> vector<8x128xf32>
    %273 = arith.addf %233, %272 : vector<8x128xf32>
    %c0_98 = arith.constant 0 : index
    %c0_99 = arith.constant 0 : index
    %274 = vector.load %arg10[%c0_98, %c0_99] : memref<2x128xf32, #tpu.memory_space<vmem>>, vector<1x128xf32>
    %c1_100 = arith.constant 1 : index
    %c0_101 = arith.constant 0 : index
    %275 = vector.load %arg10[%c1_100, %c0_101] : memref<2x128xf32, #tpu.memory_space<vmem>>, vector<1x128xf32>
    %cst_102 = arith.constant dense<0.000000e+00> : vector<8xf32>
    %276 = vector.multi_reduction <add>, %273, %cst_102 [1] : vector<8x128xf32> to vector<8xf32>
    %277 = vector.shape_cast %276 : vector<8xf32> to vector<8x1xf32>
    %cst_103 = arith.constant 1.280000e+02 : f32
    %278 = vector.broadcast %cst_103 : f32 to vector<8x1xf32>
    %279 = arith.divf %277, %278 : vector<8x1xf32>
    %280 = vector.broadcast %279 : vector<8x1xf32> to vector<8x128xf32>
    %281 = arith.subf %273, %280 : vector<8x128xf32>
    %282 = arith.mulf %281, %281 : vector<8x128xf32>
    %cst_104 = arith.constant dense<0.000000e+00> : vector<8xf32>
    %283 = vector.multi_reduction <add>, %282, %cst_104 [1] : vector<8x128xf32> to vector<8xf32>
    %284 = vector.shape_cast %283 : vector<8xf32> to vector<8x1xf32>
    %cst_105 = arith.constant 1.280000e+02 : f32
    %285 = vector.broadcast %cst_105 : f32 to vector<8x1xf32>
    %286 = arith.divf %284, %285 : vector<8x1xf32>
    %cst_106 = arith.constant 9.99999974E-6 : f32
    %287 = vector.broadcast %cst_106 : f32 to vector<8x1xf32>
    %288 = arith.addf %286, %287 : vector<8x1xf32>
    %289 = math.rsqrt %288 : vector<8x1xf32>
    %290 = vector.broadcast %289 : vector<8x1xf32> to vector<8x128xf32>
    %291 = arith.mulf %281, %290 : vector<8x128xf32>
    %292 = vector.broadcast %274 : vector<1x128xf32> to vector<8x128xf32>
    %293 = arith.mulf %291, %292 : vector<8x128xf32>
    %294 = vector.broadcast %275 : vector<1x128xf32> to vector<8x128xf32>
    %295 = arith.addf %293, %294 : vector<8x128xf32>
    %c0_107 = arith.constant 0 : index
    %c0_108 = arith.constant 0 : index
    %296 = vector.load %arg11[%c0_107, %c0_108] : memref<8x128xf32, #tpu.memory_space<vmem>>, vector<8x128xf32>
    tpu.vector_store %arg11[%c0_107, %c0_108], %295 {strides = array<i32>} : memref<8x128xf32, #tpu.memory_space<vmem>>, vector<8x128xf32>,
    return
  }
}

</mosaic_0001>

<bundles_post_ra>
// kernel: tile.54
= control target key start
LH: loop header
LB: loop body
LE: loop exit
PB: predicated region body
PF: predicated region fallthrough
CT: control target
= control target key end

     0   :  { %vm36_vm0 = vcmask 1047556   ;;  %vm38_vm1 = vcmask 261120   ;;  %vm48_vm2 = vcmask 523520   ;;  %s99_s0 = inlined_call_operand.vmem [shape: f32[8,2,32], index: 0, kind: input, shape index: {}]   ;;  %s100_s1 = inlined_call_operand.vmem [shape: f32[8,64], index: 1, kind: output, shape index: {}]  }
   0x1   :  { %v50_v0 = vld [vmem:[%s99_s0 + $0xe] sm:$0x3]  ;;  %v51_v1 = vld [vmem:[%s99_s0 + $0xc] sm:$0x3]  ;;  %v52_v2 = vld [vmem:[%s99_s0 + $0xa] sm:$0x3] }
   0x2   :  { %7 = vst [vmem:[#allocation0 + $0x38] sm:$0x3] %v50_v0  ;;  %v53_v3 = vld [vmem:[%s99_s0 + $0x8] sm:$0x3]  ;;  %v54_v4 = vld [vmem:[%s99_s0 + $0x6] sm:$0x3] }
   0x3   :  { %11 = vst [vmem:[#allocation0 + $0x30] sm:$0x3] %v51_v1  ;;  %v55_v5 = vld [vmem:[%s99_s0 + $0x4] sm:$0x3]  ;;  %v56_v6 = vld [vmem:[%s99_s0 + $0x2] sm:$0x3] }
   0x4   :  { %15 = vst [vmem:[#allocation0 + $0x28] sm:$0x3] %v52_v2  ;;  %v32_v7 = vld [vmem:[%s99_s0] sm:$0x3]  ;;  %s58_s0 = smov 32  }
   0x5   :  { %19 = vst [vmem:[#allocation0 + $0x20] sm:$0x3] %v53_v3 }
   0x6   :  { %23 = vst [vmem:[#allocation0 + $0x18] sm:$0x3] %v54_v4 }
   0x7   :  { %27 = vst [vmem:[#allocation0 + $0x10] sm:$0x3] %v55_v5 }
   0x8   :  { %31 = vst [vmem:[#allocation0 + $0x8] sm:$0x3] %v56_v6 }
   0x9   :  { %33 = vst [vmem:[#allocation0] sm:$0x3] %v32_v7 }
   0xc   :  { %v35_v8 = vld [vmem:[#allocation0] ss:$8 sm:$0xf0]   ;;  %v43_v9 = vld [vmem:[#allocation0 + $0x1] ss:$8 sm:$0xf0]  }
  0x10   :  { %v34_v10 = vld [vmem:[#allocation0] ss:$8 sm:$0xf]   ;;  %v41_v11 = vld [vmem:[#allocation0 + $0x1] ss:$8 sm:$0xf]  }
  0x11   :  { %v37_v12 = vsel %vm36_vm0, %v35_v8, %v34_v10  ;;  %v45_v13 = vsel %vm36_vm0, %v43_v9, %v41_v11 }
  0x12   :  { %46 = vrot.lane.b32.xlu0 %v45_v13, %s58_s0  ;;  %39 = vst.msk [vmem:[%s100_s1] sm:$0xff] %vm38_vm1, %v37_v12  }
  0x84   :  { %v47_v14 = vpop.permute.xlu0 %46  }
  0x85   :  { %49 = vst.msk [vmem:[%s100_s1] sm:$0xff] %vm48_vm2, %v47_v14  }

// kernel: stablelm_forward.1
= control target key start
LH: loop header
LB: loop body
LE: loop exit
PB: predicated region body
PF: predicated region fallthrough
CT: control target
= control target key end

     0   :  { %s5107_s0 = inlined_call_operand.vmem [shape: f32[8,128], index: 0, kind: input, shape index: {}]   ;;  %s5108_s1 = inlined_call_operand.vmem [shape: f32[8,8], index: 1, kind: input, shape index: {}]   ;;  %s5109_s2 = inlined_call_operand.vmem [shape: f32[3,8,128], index: 2, kind: input, shape index: {}]   ;;  %s5110_s3 = inlined_call_operand.vmem [shape: f32[3,8,128], index: 3, kind: input, shape index: {}]   ;;  %s5111_s4 = inlined_call_operand.vmem [shape: f32[2,4,128], index: 4, kind: input, shape index: {}]   ;;  %s5112_s5 = inlined_call_operand.vmem [shape: f32[2,1,256], index: 5, kind: input, shape index: {}]   ;;  %s5113_s6 = inlined_call_operand.vmem [shape: bf16[2,128,256], index: 6, kind: input, shape index: {}]   ;;  %s5114_s7 = inlined_call_operand.vmem [shape: bf16[2,128,128], index: 7, kind: input, shape index: {}]   ;;  %s5115_s8 = inlined_call_operand.vmem [shape: bf16[2,128,512], index: 8, kind: input, shape index: {}]   ;;  %s5116_s9 = inlined_call_operand.vmem [shape: bf16[2,256,128], index: 9, kind: input, shape index: {}]   ;;  %s5117_s10 = inlined_call_operand.vmem [shape: f32[2,128], index: 10, kind: input, shape index: {}]   ;;  %s5118_s11 = inlined_call_operand.hbm [shape: f32[8,128], index: 11, kind: output, shape index: {}]  }
   0x1   :  { %v40_v0 = vld [vmem:[%s5107_s0] sm:$0xff] }
   0x2   :  { %16 = vsyncpa [#allocation3], 0  ;;  %53 = vadd.xlane.f32.xlu0 %v40_v0  ;;  %v3773_v1 = vmov 128.0   ;;  %v2876_v2 = vld [vmem:[%s5113_s6 + $0x70] sm:$0xf]  ;;  %s3774_s30 = smov 124  }
   0x3   :  { %3677 = vrcp.f32 %v3773_v1  ;;  %v3527_v3 = vld [vmem:[%s5113_s6 + $0x74] sm:$0xf0]  ;;  %v3526_v4 = vld [vmem:[%s5113_s6 + $0x74] sm:$0xf]  ;;  %v2878_v6 = vld [vmem:[%s5113_s6 + $0x78] sm:$0xf0] }
   0x4   :  { %v2877_v5 = vor.u32 %v3527_v3, %v2876_v2  ;;  %v2881_v7 = vor.u32 %v3526_v4, %v2878_v6  ;;  %v2868_v18 = vld [vmem:[%s5113_s6 + $0x60] sm:$0xf]  ;;  %v3525_v19 = vld [vmem:[%s5113_s6 + $0x64] sm:$0xf0]  ;;  %v3524_v20 = vld [vmem:[%s5113_s6 + $0x64] sm:$0xf] }
   0x5   :  { %v2869_v21 = vor.u32 %v3525_v19, %v2868_v18  ;;  %v2870_v22 = vld [vmem:[%s5113_s6 + $0x68] sm:$0xf0]  ;;  %v2860_v24 = vld [vmem:[%s5113_s6 + $0x50] sm:$0xf]  ;;  %v3523_v25 = vld [vmem:[%s5113_s6 + $0x54] sm:$0xf0] }
   0x6   :  { %187 = vmatpush.bf16.msra.mxu0 %v2877_v5  ;;  %200 = vmatpush.bf16.msra.mxu1 %v2881_v7  ;;  %v2873_v23 = vor.u32 %v3524_v20, %v2870_v22  ;;  %v3522_v26 = vld [vmem:[%s5113_s6 + $0x54] sm:$0xf]  ;;  %v2861_v27 = vor.u32 %v3523_v25, %v2860_v24  ;;  %v2862_v28 = vld [vmem:[%s5113_s6 + $0x58] sm:$0xf0]  ;;  %v2852_v30 = vld [vmem:[%s5113_s6 + $0x40] sm:$0xf] }
   0x7   :  { %v2865_v29 = vor.u32 %v3522_v26, %v2862_v28  ;;  %v3521_v31 = vld [vmem:[%s5113_s6 + $0x44] sm:$0xf0]  ;;  %v3520_v32 = vld [vmem:[%s5113_s6 + $0x44] sm:$0xf]  ;;  %v2854_v34 = vld [vmem:[%s5113_s6 + $0x48] sm:$0xf0] }
   0x8   :  { %v2853_v33 = vor.u32 %v3521_v31, %v2852_v30  ;;  %v2857_v35 = vor.u32 %v3520_v32, %v2854_v34  ;;  %v2844_v36 = vld [vmem:[%s5113_s6 + $0x30] sm:$0xf]  ;;  %v3519_v37 = vld [vmem:[%s5113_s6 + $0x34] sm:$0xf0]  ;;  %v3518_v38 = vld [vmem:[%s5113_s6 + $0x34] sm:$0xf] }
   0x9   :  { %v3678_v8 = vpop.eup %3677  ;;  %v2845_v39 = vor.u32 %v3519_v37, %v2844_v36  ;;  %v2846_v40 = vld [vmem:[%s5113_s6 + $0x38] sm:$0xf0]  ;;  %v2836_v42 = vld [vmem:[%s5113_s6 + $0x20] sm:$0xf]  ;;  %v3517_v43 = vld [vmem:[%s5113_s6 + $0x24] sm:$0xf0] }
   0xa   :  { %v56_v9 = vmul.f32 128.0, %v3678_v8  ;;  %vm60_vm0 = vweird.f32 %v3678_v8  ;;  %188 = vmatpush.bf16.msra.mxu0 %v2869_v21  ;;  %201 = vmatpush.bf16.msra.mxu1 %v2873_v23  ;;  %v2849_v41 = vor.u32 %v3518_v38, %v2846_v40  ;;  %v3516_v44 = vld [vmem:[%s5113_s6 + $0x24] sm:$0xf]  ;;  %v2837_v45 = vor.u32 %v3517_v43, %v2836_v42  ;;  %v2838_v46 = vld [vmem:[%s5113_s6 + $0x28] sm:$0xf0]  ;;  %s3775_s12 = smov 4  }
   0xb   :  { %v2841_v47 = vor.u32 %v3516_v44, %v2838_v46  ;;  %v2828_v48 = vld [vmem:[%s5113_s6 + $0x10] sm:$0xf]  ;;  %v3515_v49 = vld [vmem:[%s5113_s6 + $0x14] sm:$0xf0]  ;;  %v3514_v50 = vld [vmem:[%s5113_s6 + $0x14] sm:$0xf] }
   0xc   :  { %v57_v10 = vsub.f32 1.0, %v56_v9  ;;  %v2829_v51 = vor.u32 %v3515_v49, %v2828_v48  ;;  %v2830_v52 = vld [vmem:[%s5113_s6 + $0x18] sm:$0xf0]  ;;  %v2820_v53 = vld [vmem:[%s5113_s6] sm:$0xf]  ;;  %v2814_v24 = vld [vmem:[%s5109_s2 + $0x8] sm:$0xff] }
   0xd   :  { %v3513_v54 = vld [vmem:[%s5113_s6 + $0x4] sm:$0xf0]  ;;  %v2833_v55 = vor.u32 %v3514_v50, %v2830_v52  ;;  %v3512_v56 = vld [vmem:[%s5113_s6 + $0x4] sm:$0xf]  ;;  %v2822_v57 = vld [vmem:[%s5113_s6 + $0x8] sm:$0xf0] }
   0xe   :  { %v58_v11 = vmul.f32 %v3678_v8, %v57_v10  ;;  %189 = vmatpush.bf16.msra.mxu0 %v2861_v27  ;;  %202 = vmatpush.bf16.msra.mxu1 %v2865_v29  ;;  %v2821_v58 = vor.u32 %v3513_v54, %v2820_v53  ;;  %v2825_v59 = vor.u32 %v3512_v56, %v2822_v57  ;;  %v52_v4 = vld [vmem:[%s5111_s4] sm:$0xf]  ;;  %v2815_v27 = vld [vmem:[%s5109_s2 + $0x10] sm:$0xff]  ;;  %s3776_s19 = smov 64   ;;  %s3777_s20 = smov 96   ;;  %v2816_v34 = vld [vmem:[%s5110_s3 + $0x8] sm:$0xff] }
   0xf   :  { %v80_v6 = vperm.slane %v52_v4, 0  ;;  %v82_v9 = vperm.slane %v52_v4, 1  ;;  %v42_v25 = vld [vmem:[%s5109_s2] sm:$0xff]  ;;  %s3778_s21 = smov 32   ;;  %v2817_v37 = vld [vmem:[%s5110_s3 + $0x10] sm:$0xff]  ;;  %vm242_vm4 = vcmask 1047556  }
  0x10   :  { %v59_v12 = vadd.f32 %v3678_v8, %v58_v11  ;;  %v3779_v44 = vmov 1983009808   ;;  %v3780_v54 = vmov 1934713408   ;;  %vm550_vm5 = vcmask 261120   ;;  %s3781_s29 = smov [#allocation2]  }
  0x11   :  { %vm621_vm6 = vcmask 64512   ;;  %vm673_vm7 = vcmask 1043456   ;;  %vm864_vm8 = vcmask 523264   ;;  %vm866_vm9 = vcmask 785408   ;;  %s2805_s14 = sshll.u32 %s5118_s11, 4  ;;  %s2806_s14 = int_to_ptr.hbm [resolvable:$true] %s2805_s14 }
  0x12   :  { %v3857_v13 = vsel %vm60_vm0, %v3678_v8, %v59_v12  ;;  %190 = vmatpush.bf16.msra.mxu0 %v2853_v33  ;;  %203 = vmatpush.bf16.msra.mxu1 %v2857_v35  ;;  %v47_v35 = vld [vmem:[%s5110_s3] sm:$0xff] }
  0x16   :  { %191 = vmatpush.bf16.msra.mxu0 %v2845_v39  ;;  %204 = vmatpush.bf16.msra.mxu1 %v2849_v41 }
  0x1a   :  { %192 = vmatpush.bf16.msra.mxu0 %v2837_v45  ;;  %205 = vmatpush.bf16.msra.mxu1 %v2841_v47  ;;  %v247_v45 = vunpack.c.l.s4 %v3779_v44 }
  0x1c   :  { %v3986_v50 = vunpack.c.0.s8 %v247_v45 }
  0x1e   :  { %193 = vmatpush.bf16.msra.mxu0 %v2829_v51  ;;  %206 = vmatpush.bf16.msra.mxu1 %v2833_v55  ;;  %v271_v55 = vunpack.c.l.s4 %v3780_v54 }
  0x22   :  { %194 = vmatpush.bf16.msra.mxu0 %v2821_v58  ;;  %207 = vmatpush.bf16.msra.mxu1 %v2825_v59 }
  0x75   :  { %v54_v14 = vpop.xlane.xlu0 %53 }
  0x76   :  { %v62_v15 = vmul.f32 %v3857_v13, %v54_v14  ;;  %v101_v14 = vld [vmem:[%s5112_s5] sm:$0x3] }
  0x78   :  { %v3860_v16 = vsub.f32 %v40_v0, %v62_v15  ;;  %v103_v15 = vperm.slane %v101_v14, 0 }
  0x7a   :  { %v64_v17 = vmul.f32 %v3860_v16, %v3860_v16 }
  0x7c   :  { %65 = vadd.xlane.f32.xlu0 %v64_v17  ;;  %v104_v17 = vperm.slane %v101_v14, 1 }
  0xef   :  { %v66_v60 = vpop.xlane.xlu0 %65 }
  0xf0   :  { %v67_v61 = vmul.f32 %v66_v60, %v3857_v13 }
  0xf2   :  { %v68_v62 = vadd.f32 1e-05, %v67_v61 }
  0xf4   :  { %3679 = vrsqrt.f32 %v68_v62  ;;  %vm75_vm2 = vweird.f32 %v68_v62 }
  0xfa   :  { %v3680_v63 = vpop.eup %3679 }
  0xfb   :  { %v70_v0 = vmul.f32 %v3680_v63, %v68_v62  ;;  %vm76_vm1 = vweird.f32 %v3680_v63 }
  0xfc   :  { %vm77_vm3 = vmor %vm75_vm2, %vm76_vm1 }
  0xfd   :  { %v71_v1 = vmul.f32 %v3680_v63, %v70_v0 }
  0xff   :  { %v72_v2 = vmul.f32 0.5, %v71_v1 }
 0x101   :  { %v73_v3 = vsub.f32 1.5, %v72_v2 }
 0x103   :  { %v74_v5 = vmul.f32 %v3680_v63, %v73_v3 }
 0x105   :  { %v78_v7 = vsel %vm77_vm3, %v3680_v63, %v74_v5  ;;  %v3994_v63 = vunpack.c.0.s8 %v271_v55 }
 0x106   :  { %v79_v8 = vmul.f32 %v78_v7, %v3860_v16 }
 0x108   :  { %v81_v10 = vmul.f32 %v80_v6, %v79_v8 }
 0x10a   :  { %v83_v11 = vadd.f32 %v82_v9, %v81_v10 }
 0x10c   :  { %v84_v12 = vpack.c.bf16 %v83_v11, %v83_v11 }
 0x10e   :  { %195 = vmatmul.bf16.vlgmr.msra.gmra.mxu0 %v84_v12  ;;  %208 = vmatmul.bf16.vlgmr.msra.gmra.mxu1 %v84_v12 }
 0x18b   :  { %v196_v18 = vpop.f32.mrf.mxu0  ;;  %v209_v19 = vpop.f32.mrf.mxu1 }
 0x18c   :  { %v197_v20 = vadd.f32 %v196_v18, %v103_v15  ;;  %v210_v21 = vadd.f32 %v209_v19, %v104_v17 }
 0x18e   :  { %223 = vrot.lane.b32.xlu1 %v210_v21, %s3774_s30  ;;  %214 = vrot.lane.b32.xlu2 %v197_v20, %s3774_s30  ;;  %v213_v28 = vmul.f32 %v197_v20, %v42_v25  ;;  %v222_v38 = vmul.f32 %v210_v21, %v47_v35 }
 0x193   :  { %v198_v16 = vpop.f32.mrf.mxu0  ;;  %v211_v22 = vpop.f32.mrf.mxu1 }
 0x196   :  { %227 = vrot.lane.b32.xlu1 %v210_v21, %s3775_s12  ;;  %218 = vrot.lane.b32.xlu2 %v197_v20, %s3775_s12 }
 0x1e8   :  { %v215_v23 = vpop.permute.xlu2 %214 }
 0x1e9   :  { %v216_v26 = vmul.f32 %v2814_v24, %v215_v23 }
 0x1eb   :  { %v217_v30 = vadd.f32 %v216_v26, %v213_v28 }
 0x1f0   :  { %v219_v29 = vpop.permute.xlu2 %218 }
 0x1f1   :  { %v220_v31 = vmul.f32 %v2815_v27, %v219_v29 }
 0x1f3   :  { %v221_v32 = vadd.f32 %v220_v31, %v217_v30 }
 0x1f5   :  { %235 = vrot.lane.b32.xlu2 %v221_v32, %s3776_s19  ;;  %232 = vrot.lane.b32.xlu1 %v221_v32, %s3777_s20  ;;  %v244_v47 = vrot.slane %v221_v32, 4 }
 0x1fd   :  { %238 = vrot.lane.b32.xlu1 %v221_v32, %s3778_s21 }
 0x200   :  { %v224_v33 = vpop.permute.xlu1 %223 }
 0x201   :  { %v225_v36 = vmul.f32 %v2816_v34, %v224_v33 }
 0x203   :  { %v226_v40 = vadd.f32 %v225_v36, %v222_v38 }
 0x208   :  { %v228_v39 = vpop.permute.xlu1 %227 }
 0x209   :  { %v229_v41 = vmul.f32 %v2817_v37, %v228_v39 }
 0x20b   :  { %v3981_v42 = vadd.f32 %v229_v41, %v226_v40 }
 0x20d   :  { %357 = vrot.lane.b32.xlu0 %v3981_v42, %s3777_s20  ;;  %v360_v3 = vrot.slane %v3981_v42, 4  ;;  %v365_v14 = vperm.slane %v3981_v42, %v3986_v50 }
 0x20f   :  { %v361_v9 = vsel %vm242_vm4, 0.0, %v360_v3  ;;  %v382_v24 = vrot.slane %v365_v14, 4 }
 0x210   :  { %v369_v15 = vperm.slane %v361_v9, %v3986_v50 }
 0x212   :  { %v394_v26 = vrot.slane %v369_v15, 4 }
 0x24f   :  { %v236_v46 = vpop.permute.xlu2 %235 }
 0x250   :  { %v241_v48 = vrot.slane %v236_v46, 4  ;;  %v245_v49 = vsel %vm242_vm4, %v236_v46, %v244_v47 }
 0x251   :  { %v253_v51 = vperm.slane %v245_v49, %v3986_v50 }
 0x252   :  { %v243_v53 = vsel %vm242_vm4, %v241_v48, %v221_v32 }
 0x253   :  { %v249_v60 = vperm.slane %v243_v53, %v3986_v50  ;;  %v280_v61 = vrot.slane %v253_v51, 4 }
 0x255   :  { %v268_v4 = vrot.slane %v249_v60, 4 }
 0x267   :  { %v233_v43 = vpop.permute.xlu1 %232 }
 0x268   :  { %v256_v52 = vrot.slane %v233_v43, 4 }
 0x26f   :  { %v239_v56 = vpop.permute.xlu1 %238 }
 0x270   :  { %v254_v57 = vrot.slane %v239_v56, 4  ;;  %v257_v58 = vsel %vm242_vm4, %v239_v56, %v256_v52 }
 0x271   :  { %v265_v59 = vperm.slane %v257_v58, %v3986_v50 }
 0x272   :  { %v255_v62 = vsel %vm242_vm4, %v254_v57, %v233_v43 }
 0x273   :  { %v261_v0 = vperm.slane %v255_v62, %v3986_v50  ;;  %v278_v1 = vrot.slane %v265_v59, 4  ;;  %v281_v2 = vsel %vm242_vm4, %v265_v59, %v280_v61 }
 0x274   :  { %v289_v5 = vperm.slane %v281_v2, %v3994_v63 }
 0x275   :  { %v269_v6 = vsel %vm242_vm4, %v261_v0, %v268_v4  ;;  %v279_v7 = vsel %vm242_vm4, %v278_v1, %v253_v51  ;;  %v266_v8 = vrot.slane %v261_v0, 4 }
 0x276   :  { %v277_v10 = vperm.slane %v269_v6, %v3994_v63  ;;  %v285_v11 = vperm.slane %v279_v7, %v3994_v63  ;;  %v296_v12 = vrot.slane %v289_v5, 4 }
 0x277   :  { %v267_v17 = vsel %vm242_vm4, %v266_v8, %v249_v60 }
 0x278   :  { %v292_v18 = vrot.slane %v277_v10, 4  ;;  %v294_v19 = vrot.slane %v285_v11, 4  ;;  %v297_v20 = vsel %vm242_vm4, 0.0, %v296_v12  ;;  %v273_v16 = vperm.slane %v267_v17, %v3994_v63 }
 0x279   :  { %v309_v25 = vsel %vm242_vm4, %v296_v12, %v285_v11  ;;  %v314_v27 = vrot.slane %v297_v20, 4 }
 0x27a   :  { %v293_v31 = vsel %vm242_vm4, 0.0, %v292_v18  ;;  %v295_v32 = vsel %vm242_vm4, 0.0, %v294_v19  ;;  %v290_v35 = vrot.slane %v273_v16, 4  ;;  %v313_v43 = vperm.slane %v309_v25, %v3986_v50 }
 0x27b   :  { %v303_v41 = vrot.slane %v293_v31, 4  ;;  %v315_v44 = vsel %vm242_vm4, %v314_v27, %v295_v32  ;;  %v298_v49 = vsel %vm242_vm4, %v292_v18, %v273_v16 }
 0x27c   :  { %v291_v54 = vsel %vm242_vm4, 0.0, %v290_v35  ;;  %v319_v56 = vperm.slane %v315_v44, %v3986_v50  ;;  %v302_v0 = vperm.slane %v298_v49, %v3986_v50  ;;  %v334_v3 = vrot.slane %v313_v43, 4 }
 0x27d   :  { %v304_v1 = vsel %vm242_vm4, %v303_v41, %v291_v54 }
 0x27e   :  { %v308_v9 = vperm.slane %v304_v1, %v3986_v50  ;;  %v332_v10 = vrot.slane %v319_v56, 4  ;;  %v322_v12 = vrot.slane %v302_v0, 4  ;;  %v335_v18 = vsel %vm242_vm4, %v319_v56, %v334_v3 }
 0x27f   :  { %v4010_v21 = vpop.permute.xlu0 %357 }
 0x280   :  { %v370_v22 = vrot.slane %v4010_v21, 4  ;;  %v375_v23 = vperm.slane %v4010_v21, %v3986_v50  ;;  %v320_v16 = vrot.slane %v308_v9, 4  ;;  %v323_v25 = vsel %vm242_vm4, %v308_v9, %v322_v12 }
 0x281   :  { %v331_v32 = vperm.slane %v323_v25, %v3994_v63 }
 0x282   :  { %v371_v28 = vsel %vm242_vm4, 0.0, %v370_v22  ;;  %v380_v29 = vrot.slane %v375_v23, 4  ;;  %v383_v30 = vsel %vm242_vm4, %v375_v23, %v382_v24  ;;  %v333_v22 = vsel %vm242_vm4, %v332_v10, %v313_v43 }
 0x283   :  { %v379_v33 = vperm.slane %v371_v28, %v3986_v50  ;;  %v391_v34 = vperm.slane %v383_v30, %v3994_v63  ;;  %v343_v24 = vperm.slane %v335_v18, %v3994_v63  ;;  %v339_v28 = vperm.slane %v333_v22, %v3994_v63 }
 0x284   :  { %v381_v36 = vsel %vm242_vm4, %v380_v29, %v365_v14  ;;  %v321_v30 = vsel %vm242_vm4, %v320_v16, %v302_v0 }
 0x285   :  { %v392_v37 = vrot.slane %v379_v33, 4  ;;  %v387_v38 = vperm.slane %v381_v36, %v3994_v63  ;;  %v395_v39 = vsel %vm242_vm4, %v379_v33, %v394_v26  ;;  %v406_v40 = vrot.slane %v391_v34, 4 }
 0x286   :  { %v403_v45 = vperm.slane %v395_v39, %v3994_v63  ;;  %v348_v33 = vrot.slane %v343_v24, 4  ;;  %v327_v36 = vperm.slane %v321_v30, %v3994_v63 }
 0x287   :  { %v393_v46 = vsel %vm242_vm4, %v392_v37, %v369_v15  ;;  %v404_v47 = vrot.slane %v387_v38, 4  ;;  %v407_v48 = vsel %vm242_vm4, 0.0, %v406_v40  ;;  %v412_v59 = vsel %vm242_vm4, %v406_v40, %v387_v38 }
 0x288   :  { %v399_v51 = vperm.slane %v393_v46, %v3994_v63  ;;  %v410_v52 = vrot.slane %v403_v45, 4  ;;  %v417_v53 = vrot.slane %v407_v48, 4  ;;  %v416_v4 = vperm.slane %v412_v59, %v3986_v50 }
 0x289   :  { %v405_v55 = vsel %vm242_vm4, 0.0, %v404_v47  ;;  %v344_v37 = vrot.slane %v339_v28, 4  ;;  %v349_v39 = vsel %vm242_vm4, %v348_v33, %v331_v32  ;;  %v346_v44 = vrot.slane %v327_v36, 4 }
 0x28a   :  { %v408_v57 = vrot.slane %v399_v51, 4  ;;  %v411_v58 = vsel %vm242_vm4, 0.0, %v410_v52  ;;  %v418_v60 = vsel %vm242_vm4, %v417_v53, %v405_v55  ;;  %v423_v5 = vsel %vm242_vm4, %v410_v52, %v399_v51  ;;  %v41_v51 = vld [vmem:[%s5108_s1] sm:$0xff] }
 0x28b   :  { %v428_v61 = vrot.slane %v411_v58, 4  ;;  %v422_v62 = vperm.slane %v418_v60, %v3986_v50  ;;  %v427_v14 = vperm.slane %v423_v5, %v3986_v50  ;;  %v345_v40 = vsel %vm242_vm4, %v344_v37, %v327_v36 }
 0x28c   :  { %v409_v2 = vsel %vm242_vm4, 0.0, %v408_v57  ;;  %v354_v41 = vpack.c.bf16 %v349_v39, %v349_v39  ;;  %v352_v43 = vpack.c.bf16 %v345_v40, %v345_v40  ;;  %v347_v45 = vsel %vm242_vm4, %v339_v28, %v346_v44 }
 0x28d   :  { %v429_v6 = vsel %vm242_vm4, %v428_v61, %v409_v2  ;;  %v434_v7 = vrot.slane %v422_v62, 4  ;;  %v353_v46 = vpack.c.bf16 %v347_v45, %v347_v45  ;;  %v350_v47 = vrot.slane %v331_v32, 4 }
 0x28e   :  { %v433_v8 = vperm.slane %v429_v6, %v3986_v50  ;;  %v3665_v5 = vpack.i.bf16 %v4010_v21, %v3981_v42 }
 0x28f   :  { %v435_v11 = vsel %vm242_vm4, %v434_v7, %v416_v4  ;;  %v351_v48 = vsel %vm242_vm4, %v343_v24, %v350_v47 }
 0x290   :  { %v439_v15 = vperm.slane %v435_v11, %v3994_v63  ;;  %v440_v17 = vrot.slane %v433_v8, 4  ;;  %v355_v49 = vpack.c.bf16 %v351_v48, %v351_v48 }
 0x292   :  { %v441_v19 = vsel %vm242_vm4, %v440_v17, %v427_v14  ;;  %v448_v20 = vrot.slane %v439_v15, 4 }
 0x293   :  { %v445_v23 = vperm.slane %v441_v19, %v3994_v63 }
 0x295   :  { %v449_v26 = vsel %vm242_vm4, %v445_v23, %v448_v20  ;;  %v446_v27 = vrot.slane %v445_v23, 4 }
 0x296   :  { %v451_v29 = vpack.c.bf16 %v449_v26, %v449_v26 }
 0x297   :  { %v447_v31 = vsel %vm242_vm4, %v446_v27, %v439_v15 }
 0x298   :  { %v590_v34 = vsel %vm550_vm5, %v451_v29, 0  ;;  %v450_v35 = vpack.c.bf16 %v447_v31, %v447_v31 }
 0x299   :  { %599 = vmatpush.bf16.xpose.msra.mxu2 %v590_v34 }
 0x29a   :  { %v555_v38 = vsel %vm550_vm5, %v450_v35, 0 }
 0x29b   :  { %564 = vmatpush.bf16.xpose.msra.mxu3 %v555_v38 }
 0x2a0   :  { %2884 = vmatmul.msk.bf16.vlgmr.msra.gmra.mxu2 %vm550_vm5, %v354_v41 }
 0x2a2   :  { %2882 = vmatmul.msk.bf16.vlgmr.msra.gmra.mxu3 %vm550_vm5, %v352_v43 }
 0x2a3   :  { %580 = vmatpush.bf16.xpose.msrb.mxu3 %v555_v38 }
 0x2ab   :  { %615 = vmatpush.bf16.xpose.msra.mxu3 %v590_v34 }
 0x2b2   :  { %2883 = vmatmul.msk.bf16.vlgmr.msrb.gmra.mxu3 %vm550_vm5, %v353_v46 }
 0x2c2   :  { %2885 = vmatmul.msk.bf16.vlgmr.msra.gmra.mxu3 %vm550_vm5, %v355_v49 }
 0x323   :  { %v601_v52 = vpop.f32.mrf.mxu2 }
 0x324   :  { %v602_v53 = vadd.f32 %v601_v52, %v41_v51 }
 0x325   :  { %v566_v54 = vpop.f32.mrf.mxu3 }
 0x326   :  { %v567_v55 = vadd.f32 %v566_v54, %v41_v51  ;;  %v628_v56 = vsel %vm621_vm6, %v602_v53, -inf }
 0x327   :  { %629 = vmax.xlane.f32.xlu0 %v628_v56 }
 0x328   :  { %v622_v57 = vsel %vm621_vm6, %v567_v55, -inf }
 0x329   :  { %623 = vmax.xlane.f32.xlu2 %v622_v57 }
 0x32b   :  { %v603_v58 = vpop.f32.mrf.mxu2 }
 0x32d   :  { %v568_v59 = vpop.f32.mrf.mxu3 }
 0x335   :  { %v582_v60 = vpop.f32.mrf.mxu3 }
 0x336   :  { %v583_v61 = vadd.f32 %v582_v60, %v41_v51 }
 0x338   :  { %v625_v62 = vsel %vm621_vm6, %v583_v61, -inf }
 0x339   :  { %626 = vmax.xlane.f32.xlu1 %v625_v62 }
 0x33d   :  { %v584_v0 = vpop.f32.mrf.mxu3 }
 0x345   :  { %v617_v1 = vpop.f32.mrf.mxu3 }
 0x346   :  { %v618_v2 = vadd.f32 %v617_v1, %v41_v51 }
 0x348   :  { %v631_v3 = vsel %vm621_vm6, %v618_v2, -inf }
 0x349   :  { %632 = vmax.xlane.f32.xlu2 %v631_v3 }
 0x34d   :  { %v619_v4 = vpop.f32.mrf.mxu3 }
 0x361   :  { %3666 = vrot.lane.b32.xlu2 %v3665_v5, %s3776_s19 }
 0x39a   :  { %v630_v6 = vpop.xlane.xlu0 %629 }
 0x39b   :  { %v636_v9 = vsub.f32 %v602_v53, %v630_v6 }
 0x39c   :  { %v624_v7 = vpop.xlane.xlu2 %623 }
 0x39d   :  { %v634_v8 = vsub.f32 %v567_v55, %v624_v7  ;;  %v642_v11 = vmul.f32 1.442695, %v636_v9 }
 0x39f   :  { %v638_v10 = vmul.f32 1.442695, %v634_v8 }
 0x3a1   :  { %3681 = vpow2.f32 %v638_v10 }
 0x3a2   :  { %3683 = vpow2.f32 %v642_v11 }
 0x3a7   :  { %v4083_v12 = vpop.eup %3681 }
 0x3a8   :  { %v646_v14 = vsel %vm621_vm6, %v4083_v12, 0.0  ;;  %v4087_v17 = vpop.eup %3683 }
 0x3a9   :  { %647 = vadd.xlane.f32.xlu1 %v646_v14  ;;  %v652_v18 = vsel %vm621_vm6, %v4087_v17, 0.0 }
 0x3ac   :  { %v627_v15 = vpop.xlane.xlu1 %626 }
 0x3ad   :  { %v635_v42 = vsub.f32 %v583_v61, %v627_v15 }
 0x3af   :  { %v640_v21 = vmul.f32 1.442695, %v635_v42 }
 0x3b1   :  { %3685 = vpow2.f32 %v640_v21  ;;  %653 = vadd.xlane.f32.xlu1 %v652_v18 }
 0x3b7   :  { %v4091_v19 = vpop.eup %3685 }
 0x3b8   :  { %v649_v20 = vsel %vm621_vm6, %v4091_v19, 0.0 }
 0x3b9   :  { %650 = vadd.xlane.f32.xlu0 %v649_v20 }
 0x3bc   :  { %v633_v16 = vpop.xlane.xlu2 %632 }
 0x3bd   :  { %v637_v22 = vsub.f32 %v618_v2, %v633_v16 }
 0x3bf   :  { %v644_v23 = vmul.f32 1.442695, %v637_v22 }
 0x3c1   :  { %3687 = vpow2.f32 %v644_v23 }
 0x3c4   :  { %v3667_v24 = vpop.permute.xlu2 %3666 }
 0x3c5   :  { %v3669_v25 = vunpack.i.h.bf16 %v3667_v24  ;;  %v3668_v26 = vunpack.i.l.bf16 %v3667_v24 }
 0x3c7   :  { %v4095_v27 = vpop.eup %3687  ;;  %v468_v28 = vrot.slane %v3669_v25, 4  ;;  %v473_v29 = vperm.slane %v3669_v25, %v3986_v50  ;;  %v458_v30 = vrot.slane %v3668_v26, 4  ;;  %v463_v31 = vperm.slane %v3668_v26, %v3986_v50 }
 0x3c8   :  { %v655_v32 = vsel %vm621_vm6, %v4095_v27, 0.0 }
 0x3c9   :  { %v469_v33 = vsel %vm242_vm4, 0.0, %v468_v28  ;;  %v478_v34 = vrot.slane %v473_v29, 4  ;;  %v459_v35 = vsel %vm242_vm4, 0.0, %v458_v30  ;;  %v480_v36 = vrot.slane %v463_v31, 4  ;;  %656 = vadd.xlane.f32.xlu0 %v655_v32 }
 0x3ca   :  { %v477_v37 = vperm.slane %v469_v33, %v3986_v50  ;;  %v467_v38 = vperm.slane %v459_v35, %v3986_v50 }
 0x3cb   :  { %v479_v39 = vsel %vm242_vm4, %v478_v34, %v463_v31  ;;  %v481_v40 = vsel %vm242_vm4, %v473_v29, %v480_v36 }
 0x3cc   :  { %v490_v41 = vrot.slane %v477_v37, 4  ;;  %v485_v43 = vperm.slane %v479_v39, %v3994_v63  ;;  %v489_v44 = vperm.slane %v481_v40, %v3994_v63  ;;  %v492_v45 = vrot.slane %v467_v38, 4 }
 0x3ce   :  { %v491_v46 = vsel %vm242_vm4, %v490_v41, %v467_v38  ;;  %v493_v47 = vsel %vm242_vm4, %v477_v37, %v492_v45  ;;  %v502_v48 = vrot.slane %v485_v43, 4  ;;  %v504_v49 = vrot.slane %v489_v44, 4 }
 0x3cf   :  { %v497_v51 = vperm.slane %v491_v46, %v3994_v63  ;;  %v501_v52 = vperm.slane %v493_v47, %v3994_v63 }
 0x3d0   :  { %v505_v53 = vsel %vm242_vm4, 0.0, %v504_v49  ;;  %v503_v57 = vsel %vm242_vm4, 0.0, %v502_v48  ;;  %v510_v59 = vsel %vm242_vm4, %v504_v49, %v485_v43 }
 0x3d1   :  { %v506_v54 = vrot.slane %v497_v51, 4  ;;  %v508_v55 = vrot.slane %v501_v52, 4  ;;  %v515_v56 = vrot.slane %v505_v53, 4  ;;  %v514_v1 = vperm.slane %v510_v59, %v3986_v50 }
 0x3d3   :  { %v509_v58 = vsel %vm242_vm4, 0.0, %v508_v55  ;;  %v516_v60 = vsel %vm242_vm4, %v515_v56, %v503_v57  ;;  %v507_v0 = vsel %vm242_vm4, 0.0, %v506_v54  ;;  %v521_v2 = vsel %vm242_vm4, %v508_v55, %v497_v51 }
 0x3d4   :  { %v526_v61 = vrot.slane %v509_v58, 4  ;;  %v520_v62 = vperm.slane %v516_v60, %v3986_v50  ;;  %v525_v7 = vperm.slane %v521_v2, %v3986_v50 }
 0x3d6   :  { %v527_v3 = vsel %vm242_vm4, %v526_v61, %v507_v0  ;;  %v532_v4 = vrot.slane %v520_v62, 4 }
 0x3d7   :  { %v531_v5 = vperm.slane %v527_v3, %v3986_v50 }
 0x3d8   :  { %v533_v6 = vsel %vm242_vm4, %v532_v4, %v514_v1 }
 0x3d9   :  { %v537_v8 = vperm.slane %v533_v6, %v3994_v63  ;;  %v538_v9 = vrot.slane %v531_v5, 4 }
 0x3db   :  { %v539_v10 = vsel %vm242_vm4, %v538_v9, %v525_v7  ;;  %v546_v11 = vrot.slane %v537_v8, 4 }
 0x3dc   :  { %v543_v14 = vperm.slane %v539_v10, %v3994_v63 }
 0x3de   :  { %v547_v15 = vsel %vm242_vm4, %v543_v14, %v546_v11  ;;  %v544_v42 = vrot.slane %v543_v14, 4 }
 0x3df   :  { %v549_v21 = vpack.c.bf16 %v547_v15, %v547_v15 }
 0x3e0   :  { %v545_v18 = vsel %vm242_vm4, %v544_v42, %v537_v8 }
 0x3e1   :  { %v710_v20 = vsel %vm673_vm7, %v549_v21, 0  ;;  %v548_v16 = vpack.c.bf16 %v545_v18, %v545_v18 }
 0x3e2   :  { %719 = vmatpush.bf16.msrb.mxu0 %v710_v20  ;;  %735 = vmatpush.bf16.msrb.mxu1 %v710_v20 }
 0x3e3   :  { %v675_v22 = vsel %vm673_vm7, %v548_v16, 0 }
 0x3e4   :  { %684 = vmatpush.bf16.msrb.mxu2 %v675_v22  ;;  %700 = vmatpush.bf16.msrb.mxu3 %v675_v22 }
 0x41c   :  { %v648_v23 = vpop.xlane.xlu1 %647 }
 0x41d   :  { %3689 = vrcp.f32 %v648_v23 }
 0x423   :  { %v3690_v24 = vpop.eup %3689 }
 0x424   :  { %v662_v25 = vmul.f32 %v3690_v24, %v4083_v12  ;;  %v654_v26 = vpop.xlane.xlu1 %653 }
 0x425   :  { %3691 = vrcp.f32 %v654_v26 }
 0x426   :  { %v666_v28 = vpack.c.bf16 %v662_v25, %v662_v25 }
 0x428   :  { %2886 = vmatmul.msk.bf16.vlgmr.msrb.gmra.mxu2 %vm621_vm6, %v666_v28 }
 0x42b   :  { %v3692_v29 = vpop.eup %3691 }
 0x42c   :  { %v664_v30 = vmul.f32 %v3692_v29, %v4087_v17  ;;  %v651_v31 = vpop.xlane.xlu0 %650 }
 0x42d   :  { %3693 = vrcp.f32 %v651_v31 }
 0x42e   :  { %v668_v32 = vpack.c.bf16 %v664_v30, %v664_v30 }
 0x430   :  { %2888 = vmatmul.msk.bf16.vlgmr.msrb.gmra.mxu0 %vm621_vm6, %v668_v32 }
 0x433   :  { %v3694_v33 = vpop.eup %3693 }
 0x434   :  { %v663_v34 = vmul.f32 %v3694_v33, %v4091_v19 }
 0x436   :  { %v667_v35 = vpack.c.bf16 %v663_v34, %v663_v34 }
 0x438   :  { %2887 = vmatmul.msk.bf16.vlgmr.msrb.gmra.mxu3 %vm621_vm6, %v667_v35 }
 0x43c   :  { %v657_v12 = vpop.xlane.xlu0 %656 }
 0x43d   :  { %3695 = vrcp.f32 %v657_v12 }
 0x443   :  { %v3696_v36 = vpop.eup %3695 }
 0x444   :  { %v665_v37 = vmul.f32 %v3696_v36, %v4095_v27 }
 0x446   :  { %v669_v38 = vpack.c.bf16 %v665_v37, %v665_v37 }
 0x448   :  { %2889 = vmatmul.msk.bf16.vlgmr.msrb.gmra.mxu1 %vm621_vm6, %v669_v38 }
 0x4ab   :  { %v686_v17 = vpop.f32.mrf.mxu2 }
 0x4ac   :  { %v743_v44 = vrot.slane %v686_v17, 4 }
 0x4ad   :  { %v721_v39 = vpop.f32.mrf.mxu0 }
 0x4ae   :  { %v741_v45 = vrot.slane %v721_v39, 4  ;;  %v744_v19 = vsel %vm242_vm4, %v721_v39, %v743_v44 }
 0x4af   :  { %v752_v47 = vperm.slane %v744_v19, %v3986_v50 }
 0x4b0   :  { %v742_v46 = vsel %vm242_vm4, %v741_v45, %v686_v17 }
 0x4b1   :  { %v748_v27 = vperm.slane %v742_v46, %v3986_v50  ;;  %v779_v54 = vrot.slane %v752_v47, 4 }
 0x4b3   :  { %v688_v40 = vpop.f32.mrf.mxu2  ;;  %v767_v57 = vrot.slane %v748_v27, 4 }
 0x4b5   :  { %v723_v41 = vpop.f32.mrf.mxu0 }
 0x4bb   :  { %v702_v43 = vpop.f32.mrf.mxu3 }
 0x4bc   :  { %v755_v49 = vrot.slane %v702_v43, 4 }
 0x4c3   :  { %v704_v48 = vpop.f32.mrf.mxu3 }
 0x4c4   :  { %v3534_v48 = vld [vmem:[%s5114_s7 + $0x30] sm:$0xff] }
 0x4c5   :  { %v737_v51 = vpop.f32.mrf.mxu1 }
 0x4c6   :  { %v753_v52 = vrot.slane %v737_v51, 4  ;;  %v756_v53 = vsel %vm242_vm4, %v737_v51, %v755_v49  ;;  %v3533_v49 = vld [vmem:[%s5114_s7 + $0x28] sm:$0xff]  ;;  %v3531_v51 = vld [vmem:[%s5114_s7 + $0x18] sm:$0xff] }
 0x4c7   :  { %v764_v55 = vperm.slane %v756_v53, %v3986_v50  ;;  %v3529_v53 = vld [vmem:[%s5114_s7 + $0x8] sm:$0xff] }
 0x4c8   :  { %v754_v56 = vsel %vm242_vm4, %v753_v52, %v702_v43  ;;  %v3530_v52 = vld [vmem:[%s5114_s7 + $0x10] sm:$0xff] }
 0x4c9   :  { %v760_v58 = vperm.slane %v754_v56, %v3986_v50  ;;  %v777_v59 = vrot.slane %v764_v55, 4  ;;  %v780_v60 = vsel %vm242_vm4, %v764_v55, %v779_v54  ;;  %v3528_v54 = vld [vmem:[%s5114_s7] sm:$0xff] }
 0x4ca   :  { %v788_v61 = vperm.slane %v780_v60, %v3994_v63 }
 0x4cb   :  { %v765_v62 = vrot.slane %v760_v58, 4  ;;  %v768_v0 = vsel %vm242_vm4, %v760_v58, %v767_v57  ;;  %v778_v1 = vsel %vm242_vm4, %v777_v59, %v752_v47  ;;  %v3535_v47 = vld [vmem:[%s5114_s7 + $0x38] sm:$0xff] }
 0x4cc   :  { %v776_v2 = vperm.slane %v768_v0, %v3994_v63  ;;  %v784_v3 = vperm.slane %v778_v1, %v3994_v63  ;;  %v795_v4 = vrot.slane %v788_v61, 4  ;;  %933 = vmatpush.bf16.msra.mxu2 %v3535_v47  ;;  %v3737_v0 = vld [vmem:[%s5107_s0] sm:$0xff] }
 0x4cd   :  { %v766_v5 = vsel %vm242_vm4, %v765_v62, %v748_v27  ;;  %v739_v6 = vpop.f32.mrf.mxu1  ;;  %v3532_v27 = vld [vmem:[%s5114_s7 + $0x20] sm:$0xff] }
 0x4ce   :  { %v772_v7 = vperm.slane %v766_v5, %v3994_v63  ;;  %v791_v8 = vrot.slane %v776_v2, 4  ;;  %v793_v9 = vrot.slane %v784_v3, 4  ;;  %v796_v10 = vsel %vm242_vm4, 0.0, %v795_v4  ;;  %v3564_v5 = vld [vmem:[%s5115_s8 + $0xe4] sm:$0xf] }
 0x4cf   :  { %v808_v11 = vsel %vm242_vm4, %v795_v4, %v784_v3  ;;  %v813_v14 = vrot.slane %v796_v10, 4  ;;  %v3036_v3 = vld [vmem:[%s5115_s8 + $0xe0] sm:$0xf]  ;;  %v3566_v4 = vld [vmem:[%s5115_s8 + $0xec] sm:$0xf0] }
 0x4d0   :  { %v789_v15 = vrot.slane %v772_v7, 4  ;;  %v792_v42 = vsel %vm242_vm4, 0.0, %v791_v8  ;;  %v794_v21 = vsel %vm242_vm4, 0.0, %v793_v9  ;;  %v812_v18 = vperm.slane %v808_v11, %v3986_v50  ;;  %934 = vmatpush.bf16.msra.mxu2 %v3534_v48  ;;  %v3567_v9 = vld [vmem:[%s5115_s8 + $0xf4] sm:$0xf0] }
 0x4d1   :  { %v802_v20 = vrot.slane %v792_v42, 4  ;;  %v797_v16 = vsel %vm242_vm4, %v791_v8, %v772_v7  ;;  %v814_v22 = vsel %vm242_vm4, %v813_v14, %v794_v21  ;;  %v3037_v6 = vor.u32 %v3566_v4, %v3036_v3  ;;  %v3038_v7 = vld [vmem:[%s5115_s8 + $0xf0] sm:$0xf0]  ;;  %v3044_v8 = vld [vmem:[%s5115_s8 + $0xe8] sm:$0xf] }
 0x4d2   :  { %v790_v23 = vsel %vm242_vm4, 0.0, %v789_v15  ;;  %v801_v24 = vperm.slane %v797_v16, %v3986_v50  ;;  %v818_v25 = vperm.slane %v814_v22, %v3986_v50  ;;  %v833_v26 = vrot.slane %v812_v18, 4  ;;  %v3565_v14 = vld [vmem:[%s5115_s8 + $0xec] sm:$0xf]  ;;  %v3046_v15 = vld [vmem:[%s5115_s8 + $0xf8] sm:$0xf0] }
 0x4d3   :  { %v803_v28 = vsel %vm242_vm4, %v802_v20, %v790_v23  ;;  %v3041_v10 = vor.u32 %v3564_v5, %v3038_v7  ;;  %v3045_v11 = vor.u32 %v3567_v9, %v3044_v8  ;;  %1164 = vmatpush.bf16.msra.mxu3 %v3037_v6  ;;  %v3049_v42 = vor.u32 %v3565_v14, %v3046_v15  ;;  %v3020_v22 = vld [vmem:[%s5115_s8 + $0xc0] sm:$0xf]  ;;  %v3562_v23 = vld [vmem:[%s5115_s8 + $0xcc] sm:$0xf0]  ;;  %v3552_v47 = vld [vmem:[%s5115_s8 + $0x84] sm:$0xf] }
 0x4d4   :  { %v807_v29 = vperm.slane %v803_v28, %v3986_v50  ;;  %v821_v30 = vrot.slane %v801_v24, 4  ;;  %v834_v31 = vsel %vm242_vm4, %v818_v25, %v833_v26  ;;  %v831_v32 = vrot.slane %v818_v25, 4  ;;  %935 = vmatpush.bf16.msra.mxu2 %v3533_v49  ;;  %v3022_v26 = vld [vmem:[%s5115_s8 + $0xd0] sm:$0xf0]  ;;  %v3028_v28 = vld [vmem:[%s5115_s8 + $0xc8] sm:$0xf] }
 0x4d5   :  { %v842_v33 = vperm.slane %v834_v31, %v3994_v63  ;;  %1177 = vmatpush.bf16.msra.mxu0 %v3041_v10  ;;  %1190 = vmatpush.bf16.msra.mxu1 %v3045_v11  ;;  %v3021_v25 = vor.u32 %v3562_v23, %v3020_v22  ;;  %v2990_v49 = vld [vmem:[%s5115_s8 + $0x90] sm:$0xf0]  ;;  %v3549_v4 = vld [vmem:[%s5115_s8 + $0x6c] sm:$0xf]  ;;  %v2982_v5 = vld [vmem:[%s5115_s8 + $0x78] sm:$0xf0] }
 0x4d6   :  { %v822_v34 = vsel %vm242_vm4, %v807_v29, %v821_v30  ;;  %v819_v35 = vrot.slane %v807_v29, 4  ;;  %v832_v12 = vsel %vm242_vm4, %v831_v32, %v812_v18  ;;  %v3563_v29 = vld [vmem:[%s5115_s8 + $0xd4] sm:$0xf0]  ;;  %v3561_v32 = vld [vmem:[%s5115_s8 + $0xcc] sm:$0xf]  ;;  %v2985_v6 = vor.u32 %v3549_v4, %v2982_v5  ;;  %v3574_v4 = vld [vmem:[%s5116_s9 + $0x30] sm:$0xff] }
 0x4d7   :  { %v830_v36 = vperm.slane %v822_v34, %v3994_v63  ;;  %v847_v37 = vrot.slane %v842_v33, 4  ;;  %v838_v38 = vperm.slane %v832_v12, %v3994_v63  ;;  %v3029_v31 = vor.u32 %v3563_v29, %v3028_v28  ;;  %1165 = vmatpush.bf16.msra.mxu3 %v3021_v25  ;;  %v3558_v12 = vld [vmem:[%s5115_s8 + $0xac] sm:$0xf0]  ;;  %v2956_v7 = vld [vmem:[%s5115_s8 + $0x40] sm:$0xf] }
 0x4d8   :  { %v820_v17 = vsel %vm242_vm4, %v819_v35, %v801_v24  ;;  %936 = vmatpush.bf16.msra.mxu2 %v3532_v27  ;;  %v3560_v24 = vld [vmem:[%s5115_s8 + $0xc4] sm:$0xf]  ;;  %v3004_v35 = vld [vmem:[%s5115_s8 + $0xa0] sm:$0xf]  ;;  %v2996_v27 = vld [vmem:[%s5115_s8 + $0x88] sm:$0xf] }
 0x4d9   :  { %v848_v39 = vsel %vm242_vm4, %v847_v37, %v830_v36  ;;  %v849_v40 = vrot.slane %v830_v36, 4  ;;  %v826_v41 = vperm.slane %v820_v17, %v3994_v63  ;;  %v843_v43 = vrot.slane %v838_v38, 4  ;;  %1191 = vmatpush.bf16.msra.mxu1 %v3029_v31  ;;  %v3556_v36 = vld [vmem:[%s5115_s8 + $0xa4] sm:$0xf]  ;;  %v3012_v17 = vld [vmem:[%s5115_s8 + $0xa8] sm:$0xf] }
 0x4da   :  { %856 = vrot.lane.b32.xlu0 %v848_v39, %s3776_s19  ;;  %v3025_v30 = vor.u32 %v3560_v24, %v3022_v26  ;;  %v3005_v37 = vor.u32 %v3558_v12, %v3004_v35  ;;  %v3559_v39 = vld [vmem:[%s5115_s8 + $0xb4] sm:$0xf0]  ;;  %v3546_v8 = vld [vmem:[%s5115_s8 + $0x4c] sm:$0xf0]  ;;  %v3544_v9 = vld [vmem:[%s5115_s8 + $0x44] sm:$0xf] }
 0x4db   :  { %v850_v44 = vsel %vm242_vm4, %v842_v33, %v849_v40  ;;  %v845_v45 = vrot.slane %v826_v41, 4  ;;  %v844_v19 = vsel %vm242_vm4, %v843_v43, %v826_v41  ;;  %v3030_v33 = vld [vmem:[%s5115_s8 + $0xd8] sm:$0xf0]  ;;  %v3013_v41 = vor.u32 %v3559_v39, %v3012_v17  ;;  %v3557_v43 = vld [vmem:[%s5115_s8 + $0xac] sm:$0xf]  ;;  %v3580_v5 = vld [vmem:[%s5116_s9 + $0x60] sm:$0xff] }
 0x4dc   :  { %860 = vrot.lane.b32.xlu2 %v850_v44, %s3777_s20  ;;  %937 = vmatpush.bf16.msra.mxu2 %v3531_v51  ;;  %v3033_v34 = vor.u32 %v3561_v32, %v3030_v33  ;;  %v3014_v44 = vld [vmem:[%s5115_s8 + $0xb8] sm:$0xf0]  ;;  %v3555_v51 = vld [vmem:[%s5115_s8 + $0x94] sm:$0xf0]  ;;  %v2957_v10 = vor.u32 %v3546_v8, %v2956_v7  ;;  %v2958_v11 = vld [vmem:[%s5115_s8 + $0x50] sm:$0xf0] }
 0x4dd   :  { %v846_v46 = vsel %vm242_vm4, %v838_v38, %v845_v45  ;;  %1178 = vmatpush.bf16.msra.mxu0 %v3025_v30  ;;  %v3006_v38 = vld [vmem:[%s5115_s8 + $0xb0] sm:$0xf0]  ;;  %1166 = vmatpush.bf16.msra.mxu3 %v3005_v37  ;;  %v3017_v45 = vor.u32 %v3557_v43, %v3014_v44  ;;  %v2964_v14 = vld [vmem:[%s5115_s8 + $0x48] sm:$0xf]  ;;  %v3547_v15 = vld [vmem:[%s5115_s8 + $0x54] sm:$0xf0] }
 0x4de   :  { %852 = vrot.lane.b32.xlu1 %v846_v46, %s3778_s21  ;;  %v3009_v40 = vor.u32 %v3556_v36, %v3006_v38  ;;  %1192 = vmatpush.bf16.msra.mxu1 %v3013_v41  ;;  %v3554_v46 = vld [vmem:[%s5115_s8 + $0x8c] sm:$0xf0]  ;;  %v2940_v22 = vld [vmem:[%s5115_s8 + $0x20] sm:$0xf]  ;;  %v3540_v25 = vld [vmem:[%s5115_s8 + $0x24] sm:$0xf] }
 0x4df   :  { %v3542_v24 = vld [vmem:[%s5115_s8 + $0x2c] sm:$0xf0]  ;;  %v2942_v26 = vld [vmem:[%s5115_s8 + $0x30] sm:$0xf0]  ;;  %v2948_v30 = vld [vmem:[%s5115_s8 + $0x28] sm:$0xf] }
 0x4e0   :  { %938 = vmatpush.bf16.msra.mxu2 %v3530_v52  ;;  %v2993_v52 = vor.u32 %v3552_v47, %v2990_v49  ;;  %v2941_v28 = vor.u32 %v3542_v24, %v2940_v22  ;;  %v2945_v29 = vor.u32 %v3540_v25, %v2942_v26  ;;  %v3543_v31 = vld [vmem:[%s5115_s8 + $0x34] sm:$0xf0]  ;;  %v3541_v32 = vld [vmem:[%s5115_s8 + $0x2c] sm:$0xf]  ;;  %v2924_v35 = vld [vmem:[%s5115_s8] sm:$0xf] }
 0x4e1   :  { %1179 = vmatpush.bf16.msra.mxu0 %v3009_v40  ;;  %v2949_v33 = vor.u32 %v3543_v31, %v2948_v30  ;;  %v3538_v12 = vld [vmem:[%s5115_s8 + $0xc] sm:$0xf0]  ;;  %v3536_v37 = vld [vmem:[%s5115_s8 + $0x4] sm:$0xf]  ;;  %v2926_v38 = vld [vmem:[%s5115_s8 + $0x10] sm:$0xf0] }
 0x4e2   :  { %v2932_v17 = vld [vmem:[%s5115_s8 + $0x8] sm:$0xf]  ;;  %v2925_v39 = vor.u32 %v3538_v12, %v2924_v35  ;;  %v3539_v40 = vld [vmem:[%s5115_s8 + $0x14] sm:$0xf0]  ;;  %v3537_v41 = vld [vmem:[%s5115_s8 + $0xc] sm:$0xf]  ;;  %v2929_v44 = vor.u32 %v3536_v37, %v2926_v38 }
 0x4e3   :  { %v2934_v43 = vld [vmem:[%s5115_s8 + $0x18] sm:$0xf0]  ;;  %v3572_v8 = vld [vmem:[%s5116_s9 + $0x20] sm:$0xff] }
 0x4e4   :  { %939 = vmatpush.bf16.msra.mxu2 %v3529_v53  ;;  %v2997_v53 = vor.u32 %v3555_v51, %v2996_v27  ;;  %v3579_v7 = vld [vmem:[%s5116_s9 + $0x58] sm:$0xff]  ;;  %v3568_v25 = vld [vmem:[%s5116_s9] sm:$0xff] }
 0x4e5   :  { %1180 = vmatpush.bf16.msra.mxu0 %v2993_v52 }
 0x4e6   :  { %1193 = vmatpush.bf16.msra.mxu1 %v2997_v53 }
 0x4e8   :  { %940 = vmatpush.bf16.msra.mxu2 %v3528_v54  ;;  %v3553_v54 = vld [vmem:[%s5115_s8 + $0x8c] sm:$0xf] }
 0x4ec   :  { %1203 = vmatpush.bf16.msrb.mxu2 %v3049_v42  ;;  %v2961_v42 = vor.u32 %v3544_v9, %v2958_v11  ;;  %v3578_v9 = vld [vmem:[%s5116_s9 + $0x50] sm:$0xff]  ;;  %v3577_v11 = vld [vmem:[%s5116_s9 + $0x48] sm:$0xff] }
 0x4f0   :  { %1204 = vmatpush.bf16.msrb.mxu2 %v3033_v34  ;;  %v2950_v34 = vld [vmem:[%s5115_s8 + $0x38] sm:$0xf0] }
 0x4f1   :  { %v2953_v36 = vor.u32 %v3541_v32, %v2950_v34 }
 0x4f4   :  { %1205 = vmatpush.bf16.msrb.mxu2 %v3017_v45  ;;  %v2933_v45 = vor.u32 %v3539_v40, %v2932_v17 }
 0x536   :  { %v861_v58 = vpop.permute.xlu2 %860 }
 0x54c   :  { %v857_v56 = vpop.permute.xlu0 %856 }
 0x550   :  { %v853_v55 = vpop.permute.xlu1 %852 }
 0x551   :  { %v863_v57 = vsel %vm550_vm5, %v844_v19, %v853_v55  ;;  %v2988_v19 = vld [vmem:[%s5115_s8 + $0x80] sm:$0xf]  ;;  %v2998_v55 = vld [vmem:[%s5115_s8 + $0x98] sm:$0xf0] }
 0x552   :  { %v865_v59 = vsel %vm864_vm8, %v863_v57, %v857_v56  ;;  %v2989_v48 = vor.u32 %v3554_v46, %v2988_v19  ;;  %v3001_v56 = vor.u32 %v3553_v54, %v2998_v55  ;;  %v2972_v57 = vld [vmem:[%s5115_s8 + $0x60] sm:$0xf]  ;;  %v2937_v19 = vor.u32 %v3537_v41, %v2934_v43 }
 0x553   :  { %v867_v60 = vsel %vm866_vm9, %v865_v59, %v861_v58  ;;  %v3550_v58 = vld [vmem:[%s5115_s8 + $0x6c] sm:$0xf0]  ;;  %v3548_v59 = vld [vmem:[%s5115_s8 + $0x64] sm:$0xf]  ;;  %v3738_v55 = vld [vmem:[%s5111_s4] sm:$0xf] }
 0x554   :  { %v868_v61 = vpack.c.bf16 %v867_v60, %v867_v60  ;;  %1167 = vmatpush.bf16.msra.mxu3 %v2989_v48  ;;  %1206 = vmatpush.bf16.msrb.mxu2 %v3001_v56  ;;  %v2973_v60 = vor.u32 %v3550_v58, %v2972_v57  ;;  %v967_v56 = vperm.slane %v3738_v55, 2 }
 0x556   :  { %941 = vmatmul.bf16.vlgmr.msra.gmra.mxu2 %v868_v61  ;;  %v2974_v61 = vld [vmem:[%s5115_s8 + $0x70] sm:$0xf0] }
 0x558   :  { %1168 = vmatpush.bf16.msra.mxu3 %v2973_v60  ;;  %1207 = vmatpush.bf16.msrb.mxu2 %v2985_v6  ;;  %v3573_v6 = vld [vmem:[%s5116_s9 + $0x28] sm:$0xff] }
 0x55c   :  { %1169 = vmatpush.bf16.msra.mxu3 %v2957_v10  ;;  %v3571_v10 = vld [vmem:[%s5116_s9 + $0x18] sm:$0xff] }
 0x560   :  { %1170 = vmatpush.bf16.msra.mxu3 %v2941_v28 }
 0x564   :  { %1171 = vmatpush.bf16.msra.mxu3 %v2925_v39 }
 0x5d9   :  { %v942_v62 = vpop.f32.mrf.mxu2 }
 0x5da   :  { %v4214_v1 = vadd.f32 %v3737_v0, %v942_v62  ;;  %v2980_v62 = vld [vmem:[%s5115_s8 + $0x68] sm:$0xf]  ;;  %v3551_v0 = vld [vmem:[%s5115_s8 + $0x74] sm:$0xf0] }
 0x5db   :  { %v2981_v3 = vor.u32 %v3551_v0, %v2980_v62  ;;  %v3583_v0 = vld [vmem:[%s5116_s9 + $0x78] sm:$0xff] }
 0x5dc   :  { %947 = vadd.xlane.f32.xlu2 %v4214_v1 }
 0x5dd   :  { %1194 = vmatpush.bf16.msra.mxu1 %v2981_v3  ;;  %v3581_v3 = vld [vmem:[%s5116_s9 + $0x68] sm:$0xff] }
 0x5e1   :  { %v944_v2 = vpop.f32.mrf.mxu2 }
 0x5e2   :  { %v2977_v2 = vor.u32 %v3548_v59, %v2974_v61  ;;  %v969_v59 = vperm.slane %v3738_v55, 3 }
 0x5e4   :  { %1181 = vmatpush.bf16.msra.mxu0 %v2977_v2  ;;  %v3582_v2 = vld [vmem:[%s5116_s9 + $0x70] sm:$0xff] }
 0x5e8   :  { %1182 = vmatpush.bf16.msra.mxu0 %v2961_v42 }
 0x5ec   :  { %1183 = vmatpush.bf16.msra.mxu0 %v2945_v29 }
 0x5f0   :  { %1184 = vmatpush.bf16.msra.mxu0 %v2929_v44 }
 0x5f4   :  { %1401 = vmatpush.bf16.msrb.mxu0 %v3583_v0 }
 0x5f8   :  { %1402 = vmatpush.bf16.msrb.mxu0 %v3582_v2 }
 0x5fc   :  { %1403 = vmatpush.bf16.msrb.mxu0 %v3581_v3  ;;  %v3599_v3 = vld [vmem:[%s5113_s6 + $0xf4] sm:$0xf0] }
 0x600   :  { %1404 = vmatpush.bf16.msrb.mxu0 %v3580_v5 }
 0x604   :  { %1405 = vmatpush.bf16.msrb.mxu0 %v3579_v7 }
 0x608   :  { %1406 = vmatpush.bf16.msrb.mxu0 %v3578_v9 }
 0x60c   :  { %1407 = vmatpush.bf16.msrb.mxu0 %v3577_v11  ;;  %v3184_v11 = vld [vmem:[%s5113_s6 + $0xe0] sm:$0xf] }
 0x64f   :  { %v948_v21 = vpop.xlane.xlu2 %947 }
 0x650   :  { %v949_v18 = vmul.f32 %v948_v21, %v3857_v13  ;;  %v2965_v21 = vor.u32 %v3547_v15, %v2964_v14 }
 0x652   :  { %v4243_v20 = vsub.f32 %v4214_v1, %v949_v18  ;;  %v3545_v18 = vld [vmem:[%s5115_s8 + $0x4c] sm:$0xf]  ;;  %1195 = vmatpush.bf16.msra.mxu1 %v2965_v21  ;;  %v3570_v21 = vld [vmem:[%s5116_s9 + $0x10] sm:$0xff] }
 0x654   :  { %v951_v16 = vmul.f32 %v4243_v20, %v4243_v20 }
 0x656   :  { %952 = vadd.xlane.f32.xlu0 %v951_v16  ;;  %v2966_v16 = vld [vmem:[%s5115_s8 + $0x58] sm:$0xf0]  ;;  %1196 = vmatpush.bf16.msra.mxu1 %v2949_v33 }
 0x657   :  { %v2969_v23 = vor.u32 %v3545_v18, %v2966_v16  ;;  %v3576_v18 = vld [vmem:[%s5116_s9 + $0x40] sm:$0xff]  ;;  %v3569_v16 = vld [vmem:[%s5116_s9 + $0x8] sm:$0xff] }
 0x658   :  { %1408 = vmatpush.bf16.msrb.mxu0 %v3576_v18 }
 0x659   :  { %1208 = vmatpush.bf16.msrb.mxu2 %v2969_v23 }
 0x65a   :  { %1197 = vmatpush.bf16.msra.mxu1 %v2933_v45 }
 0x65d   :  { %1209 = vmatpush.bf16.msrb.mxu2 %v2953_v36 }
 0x661   :  { %1210 = vmatpush.bf16.msrb.mxu2 %v2937_v19 }
 0x6c9   :  { %v953_v46 = vpop.xlane.xlu0 %952 }
 0x6ca   :  { %v954_v47 = vmul.f32 %v953_v46, %v3857_v13 }
 0x6cc   :  { %v955_v48 = vadd.f32 1e-05, %v954_v47 }
 0x6ce   :  { %3697 = vrsqrt.f32 %v955_v48  ;;  %vm962_vm11 = vweird.f32 %v955_v48 }
 0x6d4   :  { %v3698_v49 = vpop.eup %3697 }
 0x6d5   :  { %v957_v27 = vmul.f32 %v3698_v49, %v955_v48  ;;  %vm963_vm10 = vweird.f32 %v3698_v49 }
 0x6d6   :  { %vm964_vm12 = vmor %vm962_vm11, %vm963_vm10 }
 0x6d7   :  { %v958_v51 = vmul.f32 %v3698_v49, %v957_v27 }
 0x6d9   :  { %v959_v52 = vmul.f32 0.5, %v958_v51 }
 0x6db   :  { %v960_v53 = vsub.f32 1.5, %v959_v52 }
 0x6dd   :  { %v961_v54 = vmul.f32 %v3698_v49, %v960_v53 }
 0x6df   :  { %v965_v57 = vsel %vm964_vm12, %v3698_v49, %v961_v54 }
 0x6e0   :  { %v966_v58 = vmul.f32 %v965_v57, %v4243_v20  ;;  %v3575_v20 = vld [vmem:[%s5116_s9 + $0x38] sm:$0xff] }
 0x6e1   :  { %1388 = vmatpush.bf16.msrb.mxu3 %v3575_v20  ;;  %v3192_v20 = vld [vmem:[%s5113_s6 + $0xf0] sm:$0xf] }
 0x6e2   :  { %v968_v60 = vmul.f32 %v967_v56, %v966_v58  ;;  %v3193_v5 = vor.u32 %v3599_v3, %v3192_v20  ;;  %v3116_v20 = vld [vmem:[%s5111_s4 + $0x4] sm:$0xf] }
 0x6e4   :  { %v970_v61 = vadd.f32 %v969_v59, %v968_v60  ;;  %1546 = vmatpush.bf16.msrb.mxu1 %v3193_v5 }
 0x6e5   :  { %1389 = vmatpush.bf16.msrb.mxu3 %v3574_v4  ;;  %v3598_v4 = vld [vmem:[%s5113_s6 + $0xf4] sm:$0xf] }
 0x6e6   :  { %v971_v62 = vpack.c.bf16 %v970_v61, %v970_v61 }
 0x6e8   :  { %1172 = vmatmul.bf16.vlgmr.msra.gmra.mxu3 %v971_v62  ;;  %1185 = vmatmul.bf16.vlgmr.msra.gmra.mxu0 %v971_v62 }
 0x6e9   :  { %1198 = vmatmul.bf16.vlgmr.msra.gmra.mxu1 %v971_v62  ;;  %1211 = vmatmul.bf16.vlgmr.msrb.gmra.mxu2 %v971_v62 }
 0x6ea   :  { %1390 = vmatpush.bf16.msrb.mxu3 %v3573_v6 }
 0x6ee   :  { %1391 = vmatpush.bf16.msrb.mxu3 %v3572_v8 }
 0x6f2   :  { %1392 = vmatpush.bf16.msrb.mxu3 %v3571_v10 }
 0x6f6   :  { %1393 = vmatpush.bf16.msrb.mxu3 %v3570_v21  ;;  %v3186_v21 = vld [vmem:[%s5113_s6 + $0xe8] sm:$0xf0] }
 0x6fa   :  { %1394 = vmatpush.bf16.msrb.mxu3 %v3569_v16  ;;  %v3176_v16 = vld [vmem:[%s5113_s6 + $0xd0] sm:$0xf] }
 0x6fe   :  { %1395 = vmatpush.bf16.msrb.mxu3 %v3568_v25  ;;  %v3178_v25 = vld [vmem:[%s5113_s6 + $0xd8] sm:$0xf0] }
 0x765   :  { %v1186_v14 = vpop.f32.mrf.mxu0 }
 0x766   :  { %v3051_v15 = vmul.f32 -1.442695, %v1186_v14  ;;  %v1199_v42 = vpop.f32.mrf.mxu1 }
 0x768   :  { %3699 = vpow2.f32 %v3051_v15  ;;  %v3596_v15 = vld [vmem:[%s5113_s6 + $0xe4] sm:$0xf] }
 0x769   :  { %v3189_v18 = vor.u32 %v3596_v15, %v3186_v21 }
 0x76b   :  { %v1173_v22 = vpop.f32.mrf.mxu3 }
 0x76c   :  { %v3050_v23 = vmul.f32 -1.442695, %v1173_v22  ;;  %v1212_v24 = vpop.f32.mrf.mxu2 }
 0x76d   :  { %v1188_v26 = vpop.f32.mrf.mxu0 }
 0x76e   :  { %v3700_v28 = vpop.eup %3699  ;;  %3701 = vpow2.f32 %v3050_v23  ;;  %v1201_v29 = vpop.f32.mrf.mxu1  ;;  %v3594_v23 = vld [vmem:[%s5113_s6 + $0xd4] sm:$0xf] }
 0x76f   :  { %v1223_v30 = vadd.f32 1.0, %v3700_v28  ;;  %v3181_v26 = vor.u32 %v3594_v23, %v3178_v25  ;;  %v3168_v28 = vld [vmem:[%s5113_s6 + $0xc0] sm:$0xf]  ;;  %v3593_v29 = vld [vmem:[%s5113_s6 + $0xc4] sm:$0xf0] }
 0x771   :  { %3703 = vrcp.f32 %v1223_v30  ;;  %v1250_v37 = vand.u32 2147483648, %v1223_v30  ;;  %v1248_v17 = vand.u32 2147483647, %v1223_v30  ;;  %vm1244_vm14 = vweird.f32 %v1223_v30 }
 0x773   :  { %v1175_v31 = vpop.f32.mrf.mxu3  ;;  %v1251_v43 = vor.u32 1.1754944e-38, %v1250_v37  ;;  %vm1249_vm0 = vcmp.eq.f32.partialorder %v1248_v17, 8.507059e+37  ;;  %v3162_v37 = vld [vmem:[%s5113_s6 + $0xb8] sm:$0xf0]  ;;  %v3152_v17 = vld [vmem:[%s5113_s6 + $0xa0] sm:$0xf] }
 0x774   :  { %v3702_v32 = vpop.eup %3701  ;;  %v1214_v33 = vpop.f32.mrf.mxu2  ;;  %v3169_v31 = vor.u32 %v3593_v29, %v3168_v28 }
 0x775   :  { %v1222_v34 = vadd.f32 1.0, %v3702_v32  ;;  %v3170_v32 = vld [vmem:[%s5113_s6 + $0xc8] sm:$0xf0] }
 0x777   :  { %v3704_v35 = vpop.eup %3703  ;;  %3705 = vrcp.f32 %v1222_v34  ;;  %v1235_v46 = vand.u32 2147483648, %v1222_v34  ;;  %v1233_v49 = vand.u32 2147483647, %v1222_v34  ;;  %vm1229_vm2 = vweird.f32 %v1222_v34 }
 0x778   :  { %v1240_v12 = vmul.f32 %v3704_v35, %v1223_v30  ;;  %vm1245_vm13 = vweird.f32 %v3704_v35  ;;  %v3592_v30 = vld [vmem:[%s5113_s6 + $0xc4] sm:$0xf] }
 0x779   :  { %vm1246_vm15 = vmor %vm1244_vm14, %vm1245_vm13  ;;  %v1236_v52 = vor.u32 1.1754944e-38, %v1235_v46  ;;  %vm1234_vm10 = vcmp.eq.f32.partialorder %v1233_v49, 8.507059e+37  ;;  %v3173_v33 = vor.u32 %v3592_v30, %v3170_v32  ;;  %v3586_v46 = vld [vmem:[%s5113_s6 + $0x94] sm:$0xf] }
 0x77a   :  { %v1241_v36 = vsub.f32 1.0, %v1240_v12  ;;  %v3590_v12 = vld [vmem:[%s5113_s6 + $0xb4] sm:$0xf] }
 0x77c   :  { %v1242_v38 = vmul.f32 %v3704_v35, %v1241_v36 }
 0x77d   :  { %v3706_v39 = vpop.eup %3705 }
 0x77e   :  { %v1243_v40 = vadd.f32 %v3704_v35, %v1242_v38  ;;  %v1225_v41 = vmul.f32 %v3706_v39, %v1222_v34  ;;  %vm1230_vm1 = vweird.f32 %v3706_v39  ;;  %v3160_v34 = vld [vmem:[%s5113_s6 + $0xb0] sm:$0xf]  ;;  %v3165_v38 = vor.u32 %v3590_v12, %v3162_v37 }
 0x77f   :  { %vm1231_vm3 = vmor %vm1229_vm2, %vm1230_vm1 }
 0x780   :  { %v1247_v44 = vsel %vm1246_vm15, %v3704_v35, %v1243_v40  ;;  %v1226_v45 = vsub.f32 1.0, %v1225_v41  ;;  %v3591_v35 = vld [vmem:[%s5113_s6 + $0xb4] sm:$0xf0]  ;;  %v3588_v40 = vld [vmem:[%s5113_s6 + $0xa4] sm:$0xf] }
 0x781   :  { %v1252_v19 = vsel %vm1249_vm0, %v1251_v43, %v1247_v44  ;;  %v3161_v36 = vor.u32 %v3591_v35, %v3160_v34  ;;  %v3154_v43 = vld [vmem:[%s5113_s6 + $0xa8] sm:$0xf0]  ;;  %v3144_v44 = vld [vmem:[%s5113_s6 + $0x90] sm:$0xf] }
 0x782   :  { %v1255_v47 = vmul.f32 %v1252_v19, %v1186_v14  ;;  %v1227_v48 = vmul.f32 %v3706_v39, %v1226_v45  ;;  %v3597_v14 = vld [vmem:[%s5113_s6 + $0xe4] sm:$0xf0]  ;;  %v3587_v45 = vld [vmem:[%s5113_s6 + $0x94] sm:$0xf0]  ;;  %v3157_v19 = vor.u32 %v3588_v40, %v3154_v43 }
 0x783   :  { %v3742_v35 = vld [vmem:[%s5109_s2 + $0x8] sm:$0xff] }
 0x784   :  { %v1228_v27 = vadd.f32 %v3706_v39, %v1227_v48  ;;  %v1257_v51 = vmul.f32 %v1255_v47, %v1212_v24  ;;  %v3146_v47 = vld [vmem:[%s5113_s6 + $0x98] sm:$0xf0]  ;;  %v3145_v48 = vor.u32 %v3587_v45, %v3144_v44 }
 0x785   :  { %v3149_v49 = vor.u32 %v3586_v46, %v3146_v47 }
 0x786   :  { %v1232_v53 = vsel %vm1231_vm3, %v3706_v39, %v1228_v27  ;;  %v1259_v54 = vpack.c.bf16 %v1257_v51, %v1257_v51  ;;  %v3589_v39 = vld [vmem:[%s5113_s6 + $0xa4] sm:$0xf0]  ;;  %v3136_v27 = vld [vmem:[%s5113_s6 + $0x80] sm:$0xf] }
 0x787   :  { %v1237_v55 = vsel %vm1234_vm10, %v1236_v52, %v1232_v53  ;;  %v3153_v41 = vor.u32 %v3589_v39, %v3152_v17  ;;  %v3585_v51 = vld [vmem:[%s5113_s6 + $0x84] sm:$0xf0]  ;;  %v3584_v52 = vld [vmem:[%s5113_s6 + $0x84] sm:$0xf]  ;;  %v3138_v53 = vld [vmem:[%s5113_s6 + $0x88] sm:$0xf0] }
 0x788   :  { %v1254_v56 = vmul.f32 %v1237_v55, %v1173_v22  ;;  %1409 = vmatmul.bf16.vlgmr.msrb.gmra.mxu0 %v1259_v54  ;;  %v3595_v22 = vld [vmem:[%s5113_s6 + $0xd4] sm:$0xf0]  ;;  %v3137_v54 = vor.u32 %v3585_v51, %v3136_v27  ;;  %v3141_v55 = vor.u32 %v3584_v52, %v3138_v53  ;;  %v3744_v39 = vld [vmem:[%s5109_s2 + $0x10] sm:$0xff] }
 0x789   :  { %v3177_v24 = vor.u32 %v3595_v22, %v3176_v16 }
 0x78a   :  { %v1256_v57 = vmul.f32 %v1254_v56, %v1199_v42  ;;  %v3185_v42 = vor.u32 %v3597_v14, %v3184_v11  ;;  %v3133_v11 = vld [vmem:[%s5112_s5 + $0x2] sm:$0x3] }
 0x78b   :  { %v1462_v14 = vperm.slane %v3133_v11, 0  ;;  %v1463_v21 = vperm.slane %v3133_v11, 1 }
 0x78c   :  { %v1258_v58 = vpack.c.bf16 %v1256_v57, %v1256_v57  ;;  %1547 = vmatpush.bf16.msrb.mxu1 %v3185_v42 }
 0x78e   :  { %1396 = vmatmul.bf16.vlgmr.msrb.gmra.mxu3 %v1258_v58 }
 0x790   :  { %1548 = vmatpush.bf16.msrb.mxu1 %v3177_v24  ;;  %v3739_v24 = vld [vmem:[%s5110_s3 + $0x8] sm:$0xff] }
 0x794   :  { %1549 = vmatpush.bf16.msrb.mxu1 %v3169_v31  ;;  %v3741_v31 = vld [vmem:[%s5110_s3 + $0x10] sm:$0xff] }
 0x798   :  { %1550 = vmatpush.bf16.msrb.mxu1 %v3161_v36  ;;  %v3743_v36 = vld [vmem:[%s5109_s2] sm:$0xff] }
 0x79c   :  { %1551 = vmatpush.bf16.msrb.mxu1 %v3153_v41 }
 0x7a0   :  { %1552 = vmatpush.bf16.msrb.mxu1 %v3145_v48 }
 0x7a4   :  { %1553 = vmatpush.bf16.msrb.mxu1 %v3137_v54 }
 0x805   :  { %v1410_v59 = vpop.f32.mrf.mxu0 }
 0x80d   :  { %v1412_v60 = vpop.f32.mrf.mxu0 }
 0x811   :  { %v1397_v61 = vpop.f32.mrf.mxu3 }
 0x812   :  { %v1411_v62 = vadd.f32 %v1410_v59, %v1397_v61 }
 0x814   :  { %v4469_v0 = vadd.f32 %v1411_v62, %v4214_v1  ;;  %v3194_v1 = vld [vmem:[%s5113_s6 + $0xf8] sm:$0xf0] }
 0x815   :  { %v3197_v6 = vor.u32 %v3598_v4, %v3194_v1  ;;  %v1437_v4 = vperm.slane %v3116_v20, 0 }
 0x816   :  { %1417 = vadd.xlane.f32.xlu1 %v4469_v0 }
 0x817   :  { %1559 = vmatpush.bf16.msra.mxu2 %v3197_v6  ;;  %v1439_v6 = vperm.slane %v3116_v20, 1 }
 0x819   :  { %v1399_v2 = vpop.f32.mrf.mxu3 }
 0x81b   :  { %1560 = vmatpush.bf16.msra.mxu2 %v3189_v18 }
 0x81f   :  { %1561 = vmatpush.bf16.msra.mxu2 %v3181_v26  ;;  %v3740_v26 = vld [vmem:[%s5110_s3] sm:$0xff]  ;;  %s2803_s3 = sshll.u32 %s3781_s29, 4  ;;  %s2804_s3 = int_to_ptr.vmem [resolvable:$true] %s2803_s3 }
 0x823   :  { %1562 = vmatpush.bf16.msra.mxu2 %v3173_v33 }
 0x827   :  { %1563 = vmatpush.bf16.msra.mxu2 %v3165_v38 }
 0x82b   :  { %1564 = vmatpush.bf16.msra.mxu2 %v3157_v19 }
 0x82f   :  { %1565 = vmatpush.bf16.msra.mxu2 %v3149_v49 }
 0x833   :  { %1566 = vmatpush.bf16.msra.mxu2 %v3141_v55 }
 0x889   :  { %v1418_v7 = vpop.xlane.xlu1 %1417 }
 0x88a   :  { %v1419_v8 = vmul.f32 %v1418_v7, %v3857_v13 }
 0x88c   :  { %v4486_v9 = vsub.f32 %v4469_v0, %v1419_v8 }
 0x88e   :  { %v1421_v10 = vmul.f32 %v4486_v9, %v4486_v9 }
 0x890   :  { %1422 = vadd.xlane.f32.xlu2 %v1421_v10 }
 0x903   :  { %v1423_v56 = vpop.xlane.xlu2 %1422 }
 0x904   :  { %v1424_v57 = vmul.f32 %v1423_v56, %v3857_v13 }
 0x906   :  { %v1425_v58 = vadd.f32 1e-05, %v1424_v57 }
 0x908   :  { %3707 = vrsqrt.f32 %v1425_v58  ;;  %vm1432_vm12 = vweird.f32 %v1425_v58 }
 0x90e   :  { %v3708_v59 = vpop.eup %3707 }
 0x90f   :  { %v1427_v60 = vmul.f32 %v3708_v59, %v1425_v58  ;;  %vm1433_vm11 = vweird.f32 %v3708_v59 }
 0x910   :  { %vm1434_vm13 = vmor %vm1432_vm12, %vm1433_vm11 }
 0x911   :  { %v1428_v61 = vmul.f32 %v3708_v59, %v1427_v60 }
 0x913   :  { %v1429_v62 = vmul.f32 0.5, %v1428_v61 }
 0x915   :  { %v1430_v2 = vsub.f32 1.5, %v1429_v62 }
 0x917   :  { %v1431_v3 = vmul.f32 %v3708_v59, %v1430_v2 }
 0x919   :  { %v1435_v5 = vsel %vm1434_vm13, %v3708_v59, %v1431_v3 }
 0x91a   :  { %v1436_v1 = vmul.f32 %v1435_v5, %v4486_v9 }
 0x91c   :  { %v1438_v7 = vmul.f32 %v1437_v4, %v1436_v1 }
 0x91e   :  { %v1440_v8 = vadd.f32 %v1439_v6, %v1438_v7 }
 0x920   :  { %v1441_v10 = vpack.c.bf16 %v1440_v8, %v1440_v8 }
 0x922   :  { %1554 = vmatmul.bf16.vlgmr.msrb.gmra.mxu1 %v1441_v10  ;;  %1567 = vmatmul.bf16.vlgmr.msra.gmra.mxu2 %v1441_v10 }
 0x99f   :  { %v1555_v15 = vpop.f32.mrf.mxu1 }
 0x9a0   :  { %v1556_v42 = vadd.f32 %v1555_v15, %v1462_v14 }
 0x9a2   :  { %1573 = vrot.lane.b32.xlu1 %v1556_v42, %s3774_s30  ;;  %v1572_v37 = vmul.f32 %v3743_v36, %v1556_v42 }
 0x9a5   :  { %v1568_v18 = vpop.f32.mrf.mxu2 }
 0x9a6   :  { %v1569_v16 = vadd.f32 %v1568_v18, %v1463_v21 }
 0x9a7   :  { %v1557_v22 = vpop.f32.mrf.mxu1 }
 0x9a8   :  { %1586 = vrot.lane.b32.xlu0 %v1569_v16, %s3775_s12  ;;  %1582 = vrot.lane.b32.xlu2 %v1569_v16, %s3774_s30  ;;  %v1581_v28 = vmul.f32 %v3740_v26, %v1569_v16 }
 0x9ad   :  { %v1570_v9 = vpop.f32.mrf.mxu2 }
 0x9b0   :  { %1577 = vrot.lane.b32.xlu0 %v1556_v42, %s3775_s12 }
 0xa02   :  { %v1583_v23 = vpop.permute.xlu2 %1582 }
 0xa03   :  { %v1584_v25 = vmul.f32 %v3739_v24, %v1583_v23 }
 0xa05   :  { %v1585_v30 = vadd.f32 %v1584_v25, %v1581_v28 }
 0xa14   :  { %v1574_v33 = vpop.permute.xlu1 %1573 }
 0xa15   :  { %v1575_v12 = vmul.f32 %v3742_v35, %v1574_v33 }
 0xa17   :  { %v1576_v17 = vadd.f32 %v1575_v12, %v1572_v37 }
 0xa1a   :  { %v1587_v29 = vpop.permute.xlu0 %1586 }
 0xa1b   :  { %v1588_v32 = vmul.f32 %v3741_v31, %v1587_v29 }
 0xa1d   :  { %v4595_v34 = vadd.f32 %v1588_v32, %v1585_v30 }
 0xa1f   :  { %1715 = vrot.lane.b32.xlu2 %v4595_v34, %s3777_s20  ;;  %v1718_v43 = vrot.slane %v4595_v34, 4  ;;  %v1723_v45 = vperm.slane %v4595_v34, %v3986_v50 }
 0xa21   :  { %v1719_v44 = vsel %vm242_vm4, 0.0, %v1718_v43  ;;  %v1740_v49 = vrot.slane %v1723_v45, 4 }
 0xa22   :  { %v1578_v38 = vpop.permute.xlu0 %1577  ;;  %v1727_v19 = vperm.slane %v1719_v44, %v3986_v50 }
 0xa23   :  { %v1579_v40 = vmul.f32 %v3744_v39, %v1578_v38 }
 0xa24   :  { %v1752_v55 = vrot.slane %v1727_v19, 4 }
 0xa25   :  { %v4608_v41 = vadd.f32 %v1579_v40, %v1576_v17 }
 0xa27   :  { %1594 = vrot.lane.b32.xlu0 %v4608_v41, %s3776_s19  ;;  %1591 = vrot.lane.b32.xlu1 %v4608_v41, %s3777_s20  ;;  %v1602_v17 = vrot.slane %v4608_v41, 4 }
 0xa28   :  { %1597 = vrot.lane.b32.xlu2 %v4608_v41, %s3778_s21 }
 0xa79   :  { %v4621_v46 = vpop.permute.xlu2 %1715 }
 0xa7a   :  { %v1728_v47 = vrot.slane %v4621_v46, 4  ;;  %v1733_v48 = vperm.slane %v4621_v46, %v3986_v50 }
 0xa7c   :  { %v1729_v27 = vsel %vm242_vm4, 0.0, %v1728_v47  ;;  %v1738_v51 = vrot.slane %v1733_v48, 4  ;;  %v1741_v52 = vsel %vm242_vm4, %v1733_v48, %v1740_v49 }
 0xa7d   :  { %v1737_v53 = vperm.slane %v1729_v27, %v3986_v50  ;;  %v1749_v54 = vperm.slane %v1741_v52, %v3994_v63 }
 0xa7e   :  { %v1739_v56 = vsel %vm242_vm4, %v1738_v51, %v1723_v45 }
 0xa7f   :  { %v1750_v57 = vrot.slane %v1737_v53, 4  ;;  %v1745_v58 = vperm.slane %v1739_v56, %v3994_v63  ;;  %v1753_v59 = vsel %vm242_vm4, %v1737_v53, %v1752_v55  ;;  %v1764_v60 = vrot.slane %v1749_v54, 4 }
 0xa80   :  { %v1761_v61 = vperm.slane %v1753_v59, %v3994_v63 }
 0xa81   :  { %v1751_v62 = vsel %vm242_vm4, %v1750_v57, %v1727_v19  ;;  %v1762_v2 = vrot.slane %v1745_v58, 4  ;;  %v1765_v20 = vsel %vm242_vm4, 0.0, %v1764_v60  ;;  %v1770_v8 = vsel %vm242_vm4, %v1764_v60, %v1745_v58 }
 0xa82   :  { %v1757_v3 = vperm.slane %v1751_v62, %v3994_v63  ;;  %v1768_v4 = vrot.slane %v1761_v61, 4  ;;  %v1775_v5 = vrot.slane %v1765_v20, 4  ;;  %v1774_v42 = vperm.slane %v1770_v8, %v3986_v50  ;;  %v1598_v37 = vpop.permute.xlu2 %1597 }
 0xa83   :  { %v1763_v1 = vsel %vm242_vm4, 0.0, %v1762_v2  ;;  %v1612_v38 = vrot.slane %v1598_v37, 4 }
 0xa84   :  { %v1766_v6 = vrot.slane %v1757_v3, 4  ;;  %v1769_v7 = vsel %vm242_vm4, 0.0, %v1768_v4  ;;  %v1776_v10 = vsel %vm242_vm4, %v1775_v5, %v1763_v1  ;;  %v1781_v21 = vsel %vm242_vm4, %v1768_v4, %v1757_v3 }
 0xa85   :  { %v1780_v11 = vperm.slane %v1776_v10, %v3986_v50  ;;  %v1786_v14 = vrot.slane %v1769_v7, 4  ;;  %v1785_v23 = vperm.slane %v1781_v21, %v3986_v50 }
 0xa86   :  { %v1767_v15 = vsel %vm242_vm4, 0.0, %v1766_v6 }
 0xa87   :  { %v1787_v18 = vsel %vm242_vm4, %v1786_v14, %v1767_v15  ;;  %v1792_v16 = vrot.slane %v1780_v11, 4 }
 0xa88   :  { %v1791_v22 = vperm.slane %v1787_v18, %v3986_v50 }
 0xa89   :  { %v1793_v9 = vsel %vm242_vm4, %v1792_v16, %v1774_v42 }
 0xa8a   :  { %v1797_v24 = vperm.slane %v1793_v9, %v3994_v63  ;;  %v1798_v25 = vrot.slane %v1791_v22, 4 }
 0xa8c   :  { %v1799_v26 = vsel %vm242_vm4, %v1798_v25, %v1785_v23  ;;  %v1806_v28 = vrot.slane %v1797_v24, 4 }
 0xa8d   :  { %v1803_v29 = vperm.slane %v1799_v26, %v3994_v63 }
 0xa8f   :  { %v1807_v30 = vsel %vm242_vm4, %v1803_v29, %v1806_v28  ;;  %v1804_v31 = vrot.slane %v1803_v29, 4 }
 0xa90   :  { %v1809_v32 = vpack.c.bf16 %v1807_v30, %v1807_v30 }
 0xa91   :  { %v1805_v33 = vsel %vm242_vm4, %v1804_v31, %v1797_v24 }
 0xa92   :  { %v1947_v35 = vsel %vm550_vm5, %v1809_v32, 0  ;;  %v1808_v12 = vpack.c.bf16 %v1805_v33, %v1805_v33 }
 0xa93   :  { %1956 = vmatpush.bf16.xpose.msra.mxu1 %v1947_v35 }
 0xa94   :  { %v1912_v36 = vsel %vm550_vm5, %v1808_v12, 0 }
 0xa95   :  { %1921 = vmatpush.bf16.xpose.msra.mxu3 %v1912_v36  ;;  %1937 = vmatpush.bf16.xpose.msra.mxu0 %v1912_v36 }
 0xa99   :  { %v1595_v39 = vpop.permute.xlu0 %1594  ;;  %v1592_v40 = vpop.permute.xlu1 %1591 }
 0xa9a   :  { %v1600_v43 = vrot.slane %v1595_v39, 4  ;;  %v1603_v44 = vsel %vm242_vm4, %v1595_v39, %v1602_v17  ;;  %v1613_v45 = vsel %vm242_vm4, %v1612_v38, %v1592_v40  ;;  %v1614_v19 = vrot.slane %v1592_v40, 4 }
 0xa9b   :  { %v1611_v47 = vperm.slane %v1603_v44, %v3986_v50  ;;  %v1619_v48 = vperm.slane %v1613_v45, %v3986_v50 }
 0xa9c   :  { %v1601_v49 = vsel %vm242_vm4, %v1600_v43, %v4608_v41  ;;  %v1615_v27 = vsel %vm242_vm4, %v1598_v37, %v1614_v19 }
 0xa9d   :  { %1972 = vmatpush.bf16.xpose.msrb.mxu3 %v1947_v35  ;;  %v1607_v51 = vperm.slane %v1601_v49, %v3986_v50  ;;  %v1638_v52 = vrot.slane %v1611_v47, 4  ;;  %v1623_v53 = vperm.slane %v1615_v27, %v3986_v50  ;;  %v1624_v54 = vrot.slane %v1619_v48, 4  ;;  %v3745_v27 = vld [vmem:[%s5108_s1] sm:$0xff] }
 0xa9f   :  { %v1626_v55 = vrot.slane %v1607_v51, 4  ;;  %v1625_v56 = vsel %vm242_vm4, %v1624_v54, %v1607_v51  ;;  %v1636_v57 = vrot.slane %v1623_v53, 4  ;;  %v1639_v58 = vsel %vm242_vm4, %v1623_v53, %v1638_v52 }
 0xaa0   :  { %v1631_v59 = vperm.slane %v1625_v56, %v3994_v63  ;;  %v1647_v60 = vperm.slane %v1639_v58, %v3994_v63 }
 0xaa1   :  { %v1627_v41 = vsel %vm242_vm4, %v1619_v48, %v1626_v55  ;;  %v1637_v61 = vsel %vm242_vm4, %v1636_v57, %v1611_v47 }
 0xaa2   :  { %v1635_v62 = vperm.slane %v1627_v41, %v3994_v63  ;;  %v1643_v2 = vperm.slane %v1637_v61, %v3994_v63  ;;  %v1654_v20 = vrot.slane %v1647_v60, 4  ;;  %v1648_v3 = vrot.slane %v1631_v59, 4 }
 0xaa4   :  { %v1650_v4 = vrot.slane %v1635_v62, 4  ;;  %v1652_v5 = vrot.slane %v1643_v2, 4  ;;  %v1655_v1 = vsel %vm242_vm4, 0.0, %v1654_v20  ;;  %v1667_v6 = vsel %vm242_vm4, %v1654_v20, %v1643_v2 }
 0xaa5   :  { %v1672_v7 = vrot.slane %v1655_v1, 4  ;;  %v1671_v14 = vperm.slane %v1667_v6, %v3986_v50  ;;  %v1649_v18 = vsel %vm242_vm4, 0.0, %v1648_v3  ;;  %v3670_v3 = vpack.i.bf16 %v4621_v46, %v4595_v34 }
 0xaa6   :  { %v1651_v8 = vsel %vm242_vm4, 0.0, %v1650_v4  ;;  %v1653_v10 = vsel %vm242_vm4, 0.0, %v1652_v5  ;;  %v1656_v11 = vsel %vm242_vm4, %v1650_v4, %v1631_v59 }
 0xaa7   :  { %v1660_v15 = vperm.slane %v1656_v11, %v3986_v50  ;;  %v1661_v42 = vrot.slane %v1651_v8, 4  ;;  %v1673_v21 = vsel %vm242_vm4, %v1672_v7, %v1653_v10  ;;  %v1692_v22 = vrot.slane %v1671_v14, 4 }
 0xaa8   :  { %v1677_v16 = vperm.slane %v1673_v21, %v3986_v50 }
 0xaa9   :  { %v1662_v9 = vsel %vm242_vm4, %v1661_v42, %v1649_v18  ;;  %v1680_v23 = vrot.slane %v1660_v15, 4 }
 0xaaa   :  { %v1666_v24 = vperm.slane %v1662_v9, %v3986_v50  ;;  %v1690_v25 = vrot.slane %v1677_v16, 4  ;;  %v1693_v26 = vsel %vm242_vm4, %v1677_v16, %v1692_v22 }
 0xaab   :  { %v1701_v28 = vperm.slane %v1693_v26, %v3994_v63 }
 0xaac   :  { %v1678_v29 = vrot.slane %v1666_v24, 4  ;;  %v1681_v30 = vsel %vm242_vm4, %v1666_v24, %v1680_v23  ;;  %v1691_v31 = vsel %vm242_vm4, %v1690_v25, %v1671_v14 }
 0xaad   :  { %v1689_v32 = vperm.slane %v1681_v30, %v3994_v63  ;;  %v1706_v33 = vrot.slane %v1701_v28, 4  ;;  %v1697_v35 = vperm.slane %v1691_v31, %v3994_v63 }
 0xaae   :  { %v1679_v12 = vsel %vm242_vm4, %v1678_v29, %v1660_v15 }
 0xaaf   :  { %v1707_v36 = vsel %vm242_vm4, %v1706_v33, %v1689_v32  ;;  %v1685_v37 = vperm.slane %v1679_v12, %v3994_v63  ;;  %v1702_v38 = vrot.slane %v1697_v35, 4  ;;  %v1708_v19 = vrot.slane %v1689_v32, 4 }
 0xab0   :  { %v1712_v17 = vpack.c.bf16 %v1707_v36, %v1707_v36 }
 0xab1   :  { %v1703_v39 = vsel %vm242_vm4, %v1702_v38, %v1685_v37  ;;  %v1704_v40 = vrot.slane %v1685_v37, 4  ;;  %v1709_v47 = vsel %vm242_vm4, %v1701_v28, %v1708_v19 }
 0xab2   :  { %3200 = vmatmul.msk.bf16.vlgmr.msra.gmra.mxu1 %vm550_vm5, %v1712_v17  ;;  %v1710_v43 = vpack.c.bf16 %v1703_v39, %v1703_v39  ;;  %v1713_v48 = vpack.c.bf16 %v1709_v47, %v1709_v47 }
 0xab3   :  { %v1705_v44 = vsel %vm242_vm4, %v1697_v35, %v1704_v40 }
 0xab4   :  { %3198 = vmatmul.msk.bf16.vlgmr.msra.gmra.mxu3 %vm550_vm5, %v1710_v43  ;;  %v1711_v45 = vpack.c.bf16 %v1705_v44, %v1705_v44 }
 0xab6   :  { %3199 = vmatmul.msk.bf16.vlgmr.msra.gmra.mxu0 %vm550_vm5, %v1711_v45 }
 0xac4   :  { %3201 = vmatmul.msk.bf16.vlgmr.msrb.gmra.mxu3 %vm550_vm5, %v1713_v48 }
 0xb2f   :  { %v1958_v49 = vpop.f32.mrf.mxu1 }
 0xb30   :  { %v1959_v51 = vadd.f32 %v3745_v27, %v1958_v49 }
 0xb32   :  { %v1984_v52 = vsel %vm621_vm6, %v1959_v51, -inf }
 0xb33   :  { %1985 = vmax.xlane.f32.xlu1 %v1984_v52  ;;  %v1939_v53 = vpop.f32.mrf.mxu0 }
 0xb34   :  { %v1940_v54 = vadd.f32 %v3745_v27, %v1939_v53 }
 0xb36   :  { %v1981_v58 = vsel %vm621_vm6, %v1940_v54, -inf }
 0xb37   :  { %v1923_v55 = vpop.f32.mrf.mxu3  ;;  %v1960_v56 = vpop.f32.mrf.mxu1 }
 0xb38   :  { %v1924_v57 = vadd.f32 %v3745_v27, %v1923_v55 }
 0xb3a   :  { %v1978_v59 = vsel %vm621_vm6, %v1924_v57, -inf }
 0xb3b   :  { %v1941_v60 = vpop.f32.mrf.mxu0  ;;  %1982 = vmax.xlane.f32.xlu1 %v1981_v58  ;;  %1979 = vmax.xlane.f32.xlu2 %v1978_v59 }
 0xb3f   :  { %v1925_v41 = vpop.f32.mrf.mxu3 }
 0xb47   :  { %v1974_v61 = vpop.f32.mrf.mxu3 }
 0xb48   :  { %v1975_v62 = vadd.f32 %v3745_v27, %v1974_v61 }
 0xb4a   :  { %v1987_v2 = vsel %vm621_vm6, %v1975_v62, -inf }
 0xb4b   :  { %1988 = vmax.xlane.f32.xlu0 %v1987_v2 }
 0xb4f   :  { %v1976_v20 = vpop.f32.mrf.mxu3 }
 0xb5f   :  { %3671 = vrot.lane.b32.xlu0 %v3670_v3, %s3776_s19 }
 0xba6   :  { %v1986_v4 = vpop.xlane.xlu1 %1985 }
 0xba7   :  { %v1992_v5 = vsub.f32 %v1959_v51, %v1986_v4 }
 0xba9   :  { %v1998_v1 = vmul.f32 1.442695, %v1992_v5 }
 0xbab   :  { %3709 = vpow2.f32 %v1998_v1 }
 0xbae   :  { %v1980_v6 = vpop.xlane.xlu2 %1979  ;;  %v1983_v46 = vpop.xlane.xlu1 %1982 }
 0xbaf   :  { %v1990_v7 = vsub.f32 %v1924_v57, %v1980_v6  ;;  %v1991_v21 = vsub.f32 %v1940_v54, %v1983_v46 }
 0xbb1   :  { %v4712_v8 = vpop.eup %3709  ;;  %v1994_v10 = vmul.f32 1.442695, %v1990_v7  ;;  %v1996_v16 = vmul.f32 1.442695, %v1991_v21 }
 0xbb2   :  { %v2008_v11 = vsel %vm621_vm6, %v4712_v8, 0.0 }
 0xbb3   :  { %2009 = vadd.xlane.f32.xlu2 %v2008_v11  ;;  %3711 = vpow2.f32 %v1994_v10 }
 0xbb9   :  { %v4716_v14 = vpop.eup %3711 }
 0xbba   :  { %v2002_v34 = vsel %vm621_vm6, %v4716_v14, 0.0 }
 0xbbb   :  { %2003 = vadd.xlane.f32.xlu2 %v2002_v34 }
 0xbbe   :  { %v1989_v15 = vpop.xlane.xlu0 %1988 }
 0xbbf   :  { %v1993_v42 = vsub.f32 %v1975_v62, %v1989_v15 }
 0xbc1   :  { %v2000_v18 = vmul.f32 1.442695, %v1993_v42 }
 0xbc3   :  { %3713 = vpow2.f32 %v2000_v18 }
 0xbc4   :  { %3715 = vpow2.f32 %v1996_v16 }
 0xbc9   :  { %v4720_v22 = vpop.eup %3713 }
 0xbca   :  { %v2011_v9 = vsel %vm621_vm6, %v4720_v22, 0.0  ;;  %v4724_v23 = vpop.eup %3715 }
 0xbcb   :  { %2012 = vadd.xlane.f32.xlu1 %v2011_v9  ;;  %v2005_v28 = vsel %vm621_vm6, %v4724_v23, 0.0 }
 0xbd1   :  { %v3672_v24 = vpop.permute.xlu0 %3671 }
 0xbd2   :  { %v3674_v25 = vunpack.i.h.bf16 %v3672_v24  ;;  %v3673_v26 = vunpack.i.l.bf16 %v3672_v24 }
 0xbd3   :  { %2006 = vadd.xlane.f32.xlu1 %v2005_v28 }
 0xbd4   :  { %v1826_v29 = vrot.slane %v3674_v25, 4  ;;  %v1831_v30 = vperm.slane %v3674_v25, %v3986_v50  ;;  %v1816_v31 = vrot.slane %v3673_v26, 4  ;;  %v1821_v32 = vperm.slane %v3673_v26, %v3986_v50 }
 0xbd6   :  { %v1827_v33 = vsel %vm242_vm4, 0.0, %v1826_v29  ;;  %v1836_v35 = vrot.slane %v1831_v30, 4  ;;  %v1817_v12 = vsel %vm242_vm4, 0.0, %v1816_v31  ;;  %v1838_v36 = vrot.slane %v1821_v32, 4 }
 0xbd7   :  { %v1835_v37 = vperm.slane %v1827_v33, %v3986_v50  ;;  %v1825_v38 = vperm.slane %v1817_v12, %v3986_v50 }
 0xbd8   :  { %v1837_v17 = vsel %vm242_vm4, %v1836_v35, %v1821_v32  ;;  %v1839_v39 = vsel %vm242_vm4, %v1831_v30, %v1838_v36 }
 0xbd9   :  { %v1848_v40 = vrot.slane %v1835_v37, 4  ;;  %v1843_v43 = vperm.slane %v1837_v17, %v3994_v63  ;;  %v1847_v44 = vperm.slane %v1839_v39, %v3994_v63  ;;  %v1850_v45 = vrot.slane %v1825_v38, 4 }
 0xbdb   :  { %v1849_v19 = vsel %vm242_vm4, %v1848_v40, %v1825_v38  ;;  %v1851_v47 = vsel %vm242_vm4, %v1835_v37, %v1850_v45  ;;  %v1860_v48 = vrot.slane %v1843_v43, 4  ;;  %v1862_v49 = vrot.slane %v1847_v44, 4 }
 0xbdc   :  { %v1855_v27 = vperm.slane %v1849_v19, %v3994_v63  ;;  %v1859_v51 = vperm.slane %v1851_v47, %v3994_v63 }
 0xbdd   :  { %v1863_v52 = vsel %vm242_vm4, 0.0, %v1862_v49  ;;  %v1861_v56 = vsel %vm242_vm4, 0.0, %v1860_v48  ;;  %v1868_v58 = vsel %vm242_vm4, %v1862_v49, %v1843_v43 }
 0xbde   :  { %v1864_v53 = vrot.slane %v1855_v27, 4  ;;  %v1866_v54 = vrot.slane %v1859_v51, 4  ;;  %v1873_v55 = vrot.slane %v1863_v52, 4  ;;  %v1872_v62 = vperm.slane %v1868_v58, %v3986_v50 }
 0xbe0   :  { %v1867_v57 = vsel %vm242_vm4, 0.0, %v1866_v54  ;;  %v1874_v59 = vsel %vm242_vm4, %v1873_v55, %v1861_v56  ;;  %v1865_v61 = vsel %vm242_vm4, 0.0, %v1864_v53  ;;  %v1879_v20 = vsel %vm242_vm4, %v1866_v54, %v1855_v27 }
 0xbe1   :  { %v1878_v60 = vperm.slane %v1874_v59, %v3986_v50  ;;  %v1884_v41 = vrot.slane %v1867_v57, 4  ;;  %v1883_v1 = vperm.slane %v1879_v20, %v3986_v50 }
 0xbe3   :  { %v1890_v2 = vrot.slane %v1878_v60, 4  ;;  %v1885_v3 = vsel %vm242_vm4, %v1884_v41, %v1865_v61 }
 0xbe4   :  { %v1889_v4 = vperm.slane %v1885_v3, %v3986_v50 }
 0xbe5   :  { %v1891_v5 = vsel %vm242_vm4, %v1890_v2, %v1872_v62 }
 0xbe6   :  { %v1895_v6 = vperm.slane %v1891_v5, %v3994_v63  ;;  %v1896_v7 = vrot.slane %v1889_v4, 4 }
 0xbe8   :  { %v1897_v10 = vsel %vm242_vm4, %v1896_v7, %v1883_v1  ;;  %v1904_v11 = vrot.slane %v1895_v6, 4 }
 0xbe9   :  { %v1901_v34 = vperm.slane %v1897_v10, %v3994_v63 }
 0xbeb   :  { %v1905_v46 = vsel %vm242_vm4, %v1901_v34, %v1904_v11  ;;  %v1902_v15 = vrot.slane %v1901_v34, 4 }
 0xbec   :  { %v1907_v42 = vpack.c.bf16 %v1905_v46, %v1905_v46 }
 0xbed   :  { %v1903_v21 = vsel %vm242_vm4, %v1902_v15, %v1895_v6 }
 0xbee   :  { %v2065_v18 = vsel %vm673_vm7, %v1907_v42, 0  ;;  %v1906_v16 = vpack.c.bf16 %v1903_v21, %v1903_v21 }
 0xbef   :  { %2074 = vmatpush.bf16.msrb.mxu2 %v2065_v18  ;;  %2090 = vmatpush.bf16.msra.mxu3 %v2065_v18 }
 0xbf0   :  { %v2030_v9 = vsel %vm673_vm7, %v1906_v16, 0 }
 0xbf1   :  { %2039 = vmatpush.bf16.msrb.mxu0 %v2030_v9  ;;  %2055 = vmatpush.bf16.msrb.mxu1 %v2030_v9 }
 0xc26   :  { %v2010_v24 = vpop.xlane.xlu2 %2009 }
 0xc27   :  { %3717 = vrcp.f32 %v2010_v24 }
 0xc2d   :  { %v3718_v25 = vpop.eup %3717 }
 0xc2e   :  { %v2020_v26 = vmul.f32 %v3718_v25, %v4712_v8  ;;  %v2004_v28 = vpop.xlane.xlu2 %2003 }
 0xc2f   :  { %3719 = vrcp.f32 %v2004_v28 }
 0xc30   :  { %v2024_v29 = vpack.c.bf16 %v2020_v26, %v2020_v26 }
 0xc32   :  { %3204 = vmatmul.msk.bf16.vlgmr.msrb.gmra.mxu2 %vm621_vm6, %v2024_v29 }
 0xc35   :  { %v3720_v30 = vpop.eup %3719 }
 0xc36   :  { %v2018_v31 = vmul.f32 %v3720_v30, %v4716_v14 }
 0xc38   :  { %v2022_v32 = vpack.c.bf16 %v2018_v31, %v2018_v31 }
 0xc3a   :  { %3202 = vmatmul.msk.bf16.vlgmr.msrb.gmra.mxu0 %vm621_vm6, %v2022_v32 }
 0xc3e   :  { %v2013_v33 = vpop.xlane.xlu1 %2012 }
 0xc3f   :  { %3721 = vrcp.f32 %v2013_v33 }
 0xc45   :  { %v3722_v35 = vpop.eup %3721 }
 0xc46   :  { %v2021_v12 = vmul.f32 %v3722_v35, %v4720_v22  ;;  %v2007_v36 = vpop.xlane.xlu1 %2006  ;;  %v3607_v22 = vld [vmem:[%s5114_s7 + $0x78] sm:$0xff] }
 0xc47   :  { %3723 = vrcp.f32 %v2007_v36  ;;  %2287 = vmatpush.bf16.msra.mxu0 %v3607_v22 }
 0xc48   :  { %v2025_v37 = vpack.c.bf16 %v2021_v12, %v2021_v12 }
 0xc4a   :  { %3205 = vmatmul.msk.bf16.vlgmr.msra.gmra.mxu3 %vm621_vm6, %v2025_v37 }
 0xc4d   :  { %v3724_v8 = vpop.eup %3723 }
 0xc4e   :  { %v2019_v38 = vmul.f32 %v3724_v8, %v4724_v23 }
 0xc50   :  { %v2023_v17 = vpack.c.bf16 %v2019_v38, %v2019_v38 }
 0xc52   :  { %3203 = vmatmul.msk.bf16.vlgmr.msrb.gmra.mxu1 %vm621_vm6, %v2023_v17 }
 0xcb5   :  { %v2076_v14 = vpop.f32.mrf.mxu2 }
 0xcb6   :  { %v2096_v44 = vrot.slane %v2076_v14, 4 }
 0xcb7   :  { %v2041_v39 = vpop.f32.mrf.mxu0 }
 0xcb8   :  { %v2098_v45 = vrot.slane %v2041_v39, 4  ;;  %v2097_v19 = vsel %vm242_vm4, %v2096_v44, %v2041_v39 }
 0xcb9   :  { %v2103_v23 = vperm.slane %v2097_v19, %v3986_v50 }
 0xcba   :  { %v2099_v47 = vsel %vm242_vm4, %v2076_v14, %v2098_v45 }
 0xcbb   :  { %v2107_v27 = vperm.slane %v2099_v47, %v3986_v50  ;;  %v2122_v54 = vrot.slane %v2103_v23, 4 }
 0xcbd   :  { %v2078_v40 = vpop.f32.mrf.mxu2  ;;  %v2134_v57 = vrot.slane %v2107_v27, 4 }
 0xcbf   :  { %v2043_v43 = vpop.f32.mrf.mxu0 }
 0xccd   :  { %v2092_v48 = vpop.f32.mrf.mxu3 }
 0xcce   :  { %v2108_v49 = vrot.slane %v2092_v48, 4 }
 0xccf   :  { %v2057_v51 = vpop.f32.mrf.mxu1 }
 0xcd0   :  { %v2109_v52 = vsel %vm242_vm4, %v2108_v49, %v2057_v51  ;;  %v2110_v53 = vrot.slane %v2057_v51, 4  ;;  %v3604_v49 = vld [vmem:[%s5114_s7 + $0x60] sm:$0xff]  ;;  %v3602_v51 = vld [vmem:[%s5114_s7 + $0x50] sm:$0xff] }
 0xcd1   :  { %v2115_v55 = vperm.slane %v2109_v52, %v3986_v50  ;;  %v3601_v52 = vld [vmem:[%s5114_s7 + $0x48] sm:$0xff] }
 0xcd2   :  { %v2111_v56 = vsel %vm242_vm4, %v2092_v48, %v2110_v53  ;;  %v3606_v48 = vld [vmem:[%s5114_s7 + $0x70] sm:$0xff]  ;;  %v3600_v53 = vld [vmem:[%s5114_s7 + $0x40] sm:$0xff] }
 0xcd3   :  { %v2119_v58 = vperm.slane %v2111_v56, %v3986_v50  ;;  %v2120_v59 = vrot.slane %v2115_v55, 4  ;;  %v2123_v60 = vsel %vm242_vm4, %v2115_v55, %v2122_v54  ;;  %2288 = vmatpush.bf16.msra.mxu0 %v3606_v48  ;;  %v3627_v48 = vld [vmem:[%s5115_s8 + $0x194] sm:$0xf0] }
 0xcd4   :  { %v2131_v41 = vperm.slane %v2123_v60, %v3994_v63 }
 0xcd5   :  { %v2121_v61 = vsel %vm242_vm4, %v2120_v59, %v2103_v23  ;;  %v2132_v62 = vrot.slane %v2119_v58, 4  ;;  %v2135_v2 = vsel %vm242_vm4, %v2119_v58, %v2134_v57  ;;  %v2094_v20 = vpop.f32.mrf.mxu3 }
 0xcd6   :  { %v2127_v3 = vperm.slane %v2121_v61, %v3994_v63  ;;  %v2143_v4 = vperm.slane %v2135_v2, %v3994_v63  ;;  %v2146_v5 = vrot.slane %v2131_v41, 4  ;;  %v3400_v2 = vld [vmem:[%s5115_s8 + $0x1e0] sm:$0xf]  ;;  %v3638_v20 = vld [vmem:[%s5115_s8 + $0x1ec] sm:$0xf0] }
 0xcd7   :  { %v2133_v1 = vsel %vm242_vm4, %v2132_v62, %v2107_v27  ;;  %v2059_v6 = vpop.f32.mrf.mxu1  ;;  %v3603_v27 = vld [vmem:[%s5114_s7 + $0x58] sm:$0xff] }
 0xcd8   :  { %v2139_v7 = vperm.slane %v2133_v1, %v3994_v63  ;;  %v2144_v10 = vrot.slane %v2127_v3, 4  ;;  %v2147_v11 = vsel %vm242_vm4, 0.0, %v2146_v5  ;;  %v2150_v34 = vrot.slane %v2143_v4, 4  ;;  %v3639_v1 = vld [vmem:[%s5115_s8 + $0x1f4] sm:$0xf0] }
 0xcd9   :  { %v2152_v46 = vsel %vm242_vm4, %v2146_v5, %v2127_v3  ;;  %v2157_v15 = vrot.slane %v2147_v11, 4  ;;  %v3636_v3 = vld [vmem:[%s5115_s8 + $0x1e4] sm:$0xf]  ;;  %v3401_v4 = vor.u32 %v3638_v20, %v3400_v2  ;;  %v3408_v5 = vld [vmem:[%s5115_s8 + $0x1e8] sm:$0xf] }
 0xcda   :  { %v2145_v42 = vsel %vm242_vm4, 0.0, %v2144_v10  ;;  %v2148_v21 = vrot.slane %v2139_v7, 4  ;;  %v2151_v18 = vsel %vm242_vm4, 0.0, %v2150_v34  ;;  %v2156_v16 = vperm.slane %v2152_v46, %v3986_v50  ;;  %v3637_v10 = vld [vmem:[%s5115_s8 + $0x1ec] sm:$0xf] }
 0xcdb   :  { %v2168_v9 = vrot.slane %v2151_v18, 4  ;;  %v2158_v24 = vsel %vm242_vm4, %v2157_v15, %v2145_v42  ;;  %v2163_v25 = vsel %vm242_vm4, %v2150_v34, %v2139_v7  ;;  %v3409_v7 = vor.u32 %v3639_v1, %v3408_v5  ;;  %v3410_v11 = vld [vmem:[%s5115_s8 + $0x1f8] sm:$0xf0]  ;;  %2519 = vmatpush.bf16.msra.mxu1 %v3401_v4  ;;  %v3384_v18 = vld [vmem:[%s5115_s8 + $0x1c0] sm:$0xf] }
 0xcdc   :  { %v2149_v26 = vsel %vm242_vm4, 0.0, %v2148_v21  ;;  %v2162_v28 = vperm.slane %v2158_v24, %v3986_v50  ;;  %v2167_v29 = vperm.slane %v2163_v25, %v3986_v50  ;;  %v2176_v30 = vrot.slane %v2156_v16, 4  ;;  %v3386_v25 = vld [vmem:[%s5115_s8 + $0x1d0] sm:$0xf0]  ;;  %v3346_v2 = vld [vmem:[%s5115_s8 + $0x178] sm:$0xf0] }
 0xcdd   :  { %v2169_v31 = vsel %vm242_vm4, %v2168_v9, %v2149_v26  ;;  %v3413_v34 = vor.u32 %v3637_v10, %v3410_v11  ;;  %2545 = vmatpush.bf16.msrb.mxu3 %v3409_v7  ;;  %v3632_v9 = vld [vmem:[%s5115_s8 + $0x1c4] sm:$0xf]  ;;  %v3392_v26 = vld [vmem:[%s5115_s8 + $0x1c8] sm:$0xf]  ;;  %v3618_v4 = vld [vmem:[%s5115_s8 + $0x14c] sm:$0xf0] }
 0xcde   :  { %v2173_v32 = vperm.slane %v2169_v31, %v3986_v50  ;;  %v2177_v33 = vsel %vm242_vm4, %v2162_v28, %v2176_v30  ;;  %v2188_v35 = vrot.slane %v2167_v29, 4  ;;  %v2174_v12 = vrot.slane %v2162_v28, 4  ;;  %v3635_v28 = vld [vmem:[%s5115_s8 + $0x1d4] sm:$0xf0]  ;;  %v3633_v31 = vld [vmem:[%s5115_s8 + $0x1cc] sm:$0xf] }
 0xcdf   :  { %v2185_v36 = vperm.slane %v2177_v33, %v3994_v63  ;;  %v3393_v30 = vor.u32 %v3635_v28, %v3392_v26  ;;  %v3322_v1 = vld [vmem:[%s5115_s8 + $0x150] sm:$0xf0]  ;;  %v3619_v7 = vld [vmem:[%s5115_s8 + $0x154] sm:$0xf0]  ;;  %v3312_v26 = vld [vmem:[%s5115_s8 + $0x128] sm:$0xf] }
 0xce0   :  { %v2189_v37 = vsel %vm242_vm4, %v2173_v32, %v2188_v35  ;;  %v2175_v8 = vsel %vm242_vm4, %v2174_v12, %v2156_v16  ;;  %v2186_v38 = vrot.slane %v2173_v32, 4  ;;  %v3634_v16 = vld [vmem:[%s5115_s8 + $0x1cc] sm:$0xf0]  ;;  %v3394_v32 = vld [vmem:[%s5115_s8 + $0x1d8] sm:$0xf0] }
 0xce1   :  { %v2197_v17 = vperm.slane %v2189_v37, %v3994_v63  ;;  %v2204_v14 = vrot.slane %v2185_v36, 4  ;;  %v2181_v39 = vperm.slane %v2175_v8, %v3994_v63  ;;  %v3385_v24 = vor.u32 %v3634_v16, %v3384_v18  ;;  %2546 = vmatpush.bf16.msrb.mxu3 %v3393_v30  ;;  %v3368_v35 = vld [vmem:[%s5115_s8 + $0x1a0] sm:$0xf]  ;;  %v3630_v12 = vld [vmem:[%s5115_s8 + $0x1ac] sm:$0xf0] }
 0xce2   :  { %v2187_v40 = vsel %vm242_vm4, %v2186_v38, %v2167_v29  ;;  %v3389_v29 = vor.u32 %v3632_v9, %v3386_v25  ;;  %v3397_v33 = vor.u32 %v3633_v31, %v3394_v32  ;;  %v3369_v37 = vor.u32 %v3630_v12, %v3368_v35  ;;  %v3370_v8 = vld [vmem:[%s5115_s8 + $0x1b0] sm:$0xf0]  ;;  %v3376_v38 = vld [vmem:[%s5115_s8 + $0x1a8] sm:$0xf]  ;;  %v3614_v18 = vld [vmem:[%s5115_s8 + $0x12c] sm:$0xf0] }
 0xce3   :  { %v2205_v50 = vsel %vm242_vm4, %v2197_v17, %v2204_v14  ;;  %v2202_v43 = vrot.slane %v2197_v17, 4  ;;  %v2193_v44 = vperm.slane %v2187_v40, %v3994_v63  ;;  %v2200_v22 = vrot.slane %v2181_v39, 4  ;;  %v3605_v63 = vld [vmem:[%s5114_s7 + $0x68] sm:$0xff]  ;;  %2520 = vmatpush.bf16.msra.mxu1 %v3385_v24  ;;  %v3631_v17 = vld [vmem:[%s5115_s8 + $0x1b4] sm:$0xf0] }
 0xce4   :  { %2215 = vrot.lane.b32.xlu1 %v2205_v50, %s3777_s20  ;;  %2289 = vmatpush.bf16.msra.mxu0 %v3605_v63  ;;  %v3629_v40 = vld [vmem:[%s5115_s8 + $0x1ac] sm:$0xf]  ;;  %v3378_v50 = vld [vmem:[%s5115_s8 + $0x1b8] sm:$0xf0]  ;;  %v3612_v16 = vld [vmem:[%s5115_s8 + $0x124] sm:$0xf] }
 0xce5   :  { %v2203_v45 = vsel %vm242_vm4, %v2202_v43, %v2185_v36  ;;  %v2198_v19 = vrot.slane %v2193_v44, 4  ;;  %v2201_v47 = vsel %vm242_vm4, %v2193_v44, %v2200_v22  ;;  %v3628_v36 = vld [vmem:[%s5115_s8 + $0x1a4] sm:$0xf]  ;;  %v3381_v43 = vor.u32 %v3629_v40, %v3378_v50  ;;  %v3352_v44 = vld [vmem:[%s5115_s8 + $0x180] sm:$0xf] }
 0xce6   :  { %2211 = vrot.lane.b32.xlu0 %v2203_v45, %s3776_s19  ;;  %2207 = vrot.lane.b32.xlu2 %v2201_v47, %s3778_s21  ;;  %v3373_v14 = vor.u32 %v3628_v36, %v3370_v8  ;;  %v3626_v22 = vld [vmem:[%s5115_s8 + $0x18c] sm:$0xf0]  ;;  %v3624_v45 = vld [vmem:[%s5115_s8 + $0x184] sm:$0xf] }
 0xce7   :  { %v2199_v23 = vsel %vm242_vm4, %v2198_v19, %v2181_v39  ;;  %v3377_v39 = vor.u32 %v3631_v17, %v3376_v38  ;;  %2521 = vmatpush.bf16.msra.mxu1 %v3369_v37  ;;  %v3353_v19 = vor.u32 %v3626_v22, %v3352_v44  ;;  %v3354_v47 = vld [vmem:[%s5115_s8 + $0x190] sm:$0xf0]  ;;  %v3615_v28 = vld [vmem:[%s5115_s8 + $0x134] sm:$0xf0]  ;;  %v3314_v31 = vld [vmem:[%s5115_s8 + $0x138] sm:$0xf0] }
 0xce8   :  { %2290 = vmatpush.bf16.msra.mxu0 %v3604_v49  ;;  %v3357_v63 = vor.u32 %v3624_v45, %v3354_v47  ;;  %v3306_v9 = vld [vmem:[%s5115_s8 + $0x130] sm:$0xf0]  ;;  %v3313_v30 = vor.u32 %v3615_v28, %v3312_v26  ;;  %v3288_v32 = vld [vmem:[%s5115_s8 + $0x100] sm:$0xf]  ;;  %v3608_v12 = vld [vmem:[%s5115_s8 + $0x104] sm:$0xf] }
 0xce9   :  { %2547 = vmatpush.bf16.msrb.mxu3 %v3377_v39  ;;  %v3309_v25 = vor.u32 %v3612_v16, %v3306_v9  ;;  %v3290_v36 = vld [vmem:[%s5115_s8 + $0x110] sm:$0xf0]  ;;  %v3296_v37 = vld [vmem:[%s5115_s8 + $0x108] sm:$0xf]  ;;  %v3611_v38 = vld [vmem:[%s5115_s8 + $0x114] sm:$0xf0] }
 0xcea   :  { %v3609_v17 = vld [vmem:[%s5115_s8 + $0x10c] sm:$0xf]  ;;  %v3293_v39 = vor.u32 %v3608_v12, %v3290_v36  ;;  %v3297_v40 = vor.u32 %v3611_v38, %v3296_v37 }
 0xceb   :  { %2522 = vmatpush.bf16.msra.mxu1 %v3353_v19 }
 0xcec   :  { %2291 = vmatpush.bf16.msra.mxu0 %v3603_v27  ;;  %v3625_v27 = vld [vmem:[%s5115_s8 + $0x18c] sm:$0xf] }
 0xcf0   :  { %2292 = vmatpush.bf16.msra.mxu0 %v3602_v51  ;;  %v3362_v51 = vld [vmem:[%s5115_s8 + $0x198] sm:$0xf0] }
 0xcf4   :  { %2293 = vmatpush.bf16.msra.mxu0 %v3601_v52  ;;  %v3365_v52 = vor.u32 %v3625_v27, %v3362_v51 }
 0xcf8   :  { %2294 = vmatpush.bf16.msra.mxu0 %v3600_v53  ;;  %v3336_v53 = vld [vmem:[%s5115_s8 + $0x160] sm:$0xf] }
 0xcfc   :  { %2558 = vmatpush.bf16.msrb.mxu0 %v3413_v34  ;;  %v3617_v34 = vld [vmem:[%s5115_s8 + $0x14c] sm:$0xf] }
 0xd00   :  { %2559 = vmatpush.bf16.msrb.mxu0 %v3397_v33  ;;  %v3610_v33 = vld [vmem:[%s5115_s8 + $0x10c] sm:$0xf0] }
 0xd01   :  { %v3289_v8 = vor.u32 %v3610_v33, %v3288_v32 }
 0xd04   :  { %2560 = vmatpush.bf16.msrb.mxu0 %v3381_v43 }
 0xd08   :  { %2561 = vmatpush.bf16.msrb.mxu0 %v3365_v52 }
 0xd40   :  { %v2208_v54 = vpop.permute.xlu2 %2207 }
 0xd41   :  { %v2218_v55 = vsel %vm550_vm5, %v2199_v23, %v2208_v54  ;;  %v3360_v23 = vld [vmem:[%s5115_s8 + $0x188] sm:$0xf]  ;;  %v3622_v54 = vld [vmem:[%s5115_s8 + $0x16c] sm:$0xf0] }
 0xd42   :  { %v3361_v49 = vor.u32 %v3627_v48, %v3360_v23 }
 0xd44   :  { %2548 = vmatpush.bf16.msrb.mxu3 %v3361_v49  ;;  %v3746_v49 = vld [vmem:[%s5111_s4 + $0x4] sm:$0xf] }
 0xd45   :  { %v2321_v27 = vperm.slane %v3746_v49, 2 }
 0xd56   :  { %v2216_v57 = vpop.permute.xlu1 %2215 }
 0xd58   :  { %v2212_v56 = vpop.permute.xlu0 %2211 }
 0xd59   :  { %v2219_v58 = vsel %vm864_vm8, %v2218_v55, %v2212_v56  ;;  %v3620_v55 = vld [vmem:[%s5115_s8 + $0x164] sm:$0xf]  ;;  %v3337_v56 = vor.u32 %v3622_v54, %v3336_v53  ;;  %v2323_v53 = vperm.slane %v3746_v49, 3 }
 0xd5a   :  { %v2220_v59 = vsel %vm866_vm9, %v2219_v58, %v2216_v57  ;;  %v3338_v57 = vld [vmem:[%s5115_s8 + $0x170] sm:$0xf0]  ;;  %v3344_v58 = vld [vmem:[%s5115_s8 + $0x168] sm:$0xf] }
 0xd5b   :  { %v2221_v60 = vpack.c.bf16 %v2220_v59, %v2220_v59  ;;  %v3623_v59 = vld [vmem:[%s5115_s8 + $0x174] sm:$0xf0]  ;;  %2523 = vmatpush.bf16.msra.mxu1 %v3337_v56 }
 0xd5d   :  { %2295 = vmatmul.bf16.vlgmr.msra.gmra.mxu0 %v2221_v60  ;;  %v3341_v60 = vor.u32 %v3620_v55, %v3338_v57  ;;  %v3647_v57 = vld [vmem:[%s5116_s9 + $0xb8] sm:$0xff] }
 0xdda   :  { %v2296_v41 = vpop.f32.mrf.mxu0 }
 0xddb   :  { %v4841_v61 = vadd.f32 %v2296_v41, %v4469_v0  ;;  %v3402_v0 = vld [vmem:[%s5115_s8 + $0x1f0] sm:$0xf0]  ;;  %v3345_v41 = vor.u32 %v3623_v59, %v3344_v58  ;;  %v3645_v59 = vld [vmem:[%s5116_s9 + $0xa8] sm:$0xff] }
 0xddc   :  { %v3405_v6 = vor.u32 %v3636_v3, %v3402_v0  ;;  %v3320_v3 = vld [vmem:[%s5115_s8 + $0x140] sm:$0xf]  ;;  %v3616_v0 = vld [vmem:[%s5115_s8 + $0x144] sm:$0xf]  ;;  %v3646_v58 = vld [vmem:[%s5116_s9 + $0xb0] sm:$0xff] }
 0xddd   :  { %2301 = vadd.xlane.f32.xlu0 %v4841_v61  ;;  %2549 = vmatpush.bf16.msrb.mxu3 %v3345_v41  ;;  %v3321_v5 = vor.u32 %v3618_v4, %v3320_v3  ;;  %v3325_v10 = vor.u32 %v3616_v0, %v3322_v1  ;;  %v3644_v41 = vld [vmem:[%s5116_s9 + $0xa0] sm:$0xff]  ;;  %v3642_v3 = vld [vmem:[%s5116_s9 + $0x90] sm:$0xff]  ;;  %v3651_v4 = vld [vmem:[%s5116_s9 + $0xd8] sm:$0xff] }
 0xdde   :  { %2532 = vmatpush.bf16.msra.mxu2 %v3405_v6  ;;  %v3328_v6 = vld [vmem:[%s5115_s8 + $0x148] sm:$0xf] }
 0xddf   :  { %v3329_v11 = vor.u32 %v3619_v7, %v3328_v6  ;;  %2524 = vmatpush.bf16.msra.mxu1 %v3321_v5  ;;  %v3641_v0 = vld [vmem:[%s5116_s9 + $0x88] sm:$0xff]  ;;  %v3650_v7 = vld [vmem:[%s5116_s9 + $0xd0] sm:$0xff] }
 0xde1   :  { %2550 = vmatpush.bf16.msrb.mxu3 %v3329_v11  ;;  %v3649_v11 = vld [vmem:[%s5116_s9 + $0xc8] sm:$0xff] }
 0xde2   :  { %v2298_v62 = vpop.f32.mrf.mxu0  ;;  %2533 = vmatpush.bf16.msra.mxu2 %v3389_v29  ;;  %v3613_v29 = vld [vmem:[%s5115_s8 + $0x12c] sm:$0xf] }
 0xde3   :  { %v3621_v62 = vld [vmem:[%s5115_s8 + $0x16c] sm:$0xf]  ;;  %v3317_v35 = vor.u32 %v3613_v29, %v3314_v31 }
 0xde4   :  { %v3349_v20 = vor.u32 %v3621_v62, %v3346_v2  ;;  %v3653_v62 = vld [vmem:[%s5116_s9 + $0xe8] sm:$0xff]  ;;  %v3643_v2 = vld [vmem:[%s5116_s9 + $0x98] sm:$0xff] }
 0xde5   :  { %2551 = vmatpush.bf16.msrb.mxu3 %v3313_v30 }
 0xde6   :  { %2534 = vmatpush.bf16.msra.mxu2 %v3373_v14  ;;  %2562 = vmatpush.bf16.msrb.mxu0 %v3349_v20  ;;  %v3298_v14 = vld [vmem:[%s5115_s8 + $0x118] sm:$0xf0]  ;;  %v3652_v20 = vld [vmem:[%s5116_s9 + $0xe0] sm:$0xff] }
 0xde7   :  { %v3301_v50 = vor.u32 %v3609_v17, %v3298_v14 }
 0xde9   :  { %2552 = vmatpush.bf16.msrb.mxu3 %v3297_v40 }
 0xdea   :  { %2535 = vmatpush.bf16.msra.mxu2 %v3357_v63 }
 0xdee   :  { %2536 = vmatpush.bf16.msra.mxu2 %v3341_v60  ;;  %v3654_v60 = vld [vmem:[%s5116_s9 + $0xf0] sm:$0xff] }
 0xdf2   :  { %2537 = vmatpush.bf16.msra.mxu2 %v3325_v10  ;;  %v3640_v10 = vld [vmem:[%s5116_s9 + $0x80] sm:$0xff] }
 0xdf6   :  { %2538 = vmatpush.bf16.msra.mxu2 %v3309_v25 }
 0xdfa   :  { %2539 = vmatpush.bf16.msra.mxu2 %v3293_v39 }
 0xe50   :  { %v2302_v46 = vpop.xlane.xlu0 %2301 }
 0xe51   :  { %v2303_v15 = vmul.f32 %v2302_v46, %v3857_v13  ;;  %v3330_v46 = vld [vmem:[%s5115_s8 + $0x158] sm:$0xf0] }
 0xe53   :  { %v4870_v42 = vsub.f32 %v4841_v61, %v2303_v15  ;;  %v3304_v15 = vld [vmem:[%s5115_s8 + $0x120] sm:$0xf] }
 0xe54   :  { %v3305_v24 = vor.u32 %v3614_v18, %v3304_v15 }
 0xe55   :  { %v2305_v21 = vmul.f32 %v4870_v42, %v4870_v42 }
 0xe56   :  { %2525 = vmatpush.bf16.msra.mxu1 %v3305_v24 }
 0xe57   :  { %2306 = vadd.xlane.f32.xlu2 %v2305_v21  ;;  %v3333_v21 = vor.u32 %v3617_v34, %v3330_v46 }
 0xe59   :  { %2563 = vmatpush.bf16.msrb.mxu0 %v3333_v21  ;;  %v3648_v21 = vld [vmem:[%s5116_s9 + $0xc0] sm:$0xff] }
 0xe5a   :  { %2526 = vmatpush.bf16.msra.mxu1 %v3289_v8 }
 0xe5d   :  { %2564 = vmatpush.bf16.msrb.mxu0 %v3317_v35 }
 0xe5e   :  { %2744 = vmatpush.bf16.msrb.mxu1 %v3647_v57 }
 0xe61   :  { %2565 = vmatpush.bf16.msrb.mxu0 %v3301_v50 }
 0xe62   :  { %2745 = vmatpush.bf16.msrb.mxu1 %v3646_v58 }
 0xe66   :  { %2746 = vmatpush.bf16.msrb.mxu1 %v3645_v59 }
 0xe6a   :  { %2747 = vmatpush.bf16.msrb.mxu1 %v3644_v41 }
 0xe6e   :  { %2748 = vmatpush.bf16.msrb.mxu1 %v3643_v2 }
 0xe72   :  { %2749 = vmatpush.bf16.msrb.mxu1 %v3642_v3 }
 0xe76   :  { %2750 = vmatpush.bf16.msrb.mxu1 %v3641_v0 }
 0xe7a   :  { %2751 = vmatpush.bf16.msrb.mxu1 %v3640_v10 }
 0xeca   :  { %v2307_v43 = vpop.xlane.xlu2 %2306 }
 0xecb   :  { %v2308_v44 = vmul.f32 %v2307_v43, %v3857_v13 }
 0xecd   :  { %v2309_v22 = vadd.f32 1e-05, %v2308_v44 }
 0xecf   :  { %3725 = vrsqrt.f32 %v2309_v22  ;;  %vm2316_vm5 = vweird.f32 %v2309_v22 }
 0xed5   :  { %v3726_v45 = vpop.eup %3725 }
 0xed6   :  { %v2311_v19 = vmul.f32 %v3726_v45, %v2309_v22  ;;  %vm2317_vm4 = vweird.f32 %v3726_v45 }
 0xed7   :  { %vm2318_vm6 = vmor %vm2316_vm5, %vm2317_vm4 }
 0xed8   :  { %v2312_v47 = vmul.f32 %v3726_v45, %v2311_v19 }
 0xeda   :  { %v2313_v23 = vmul.f32 0.5, %v2312_v47 }
 0xedc   :  { %v2314_v48 = vsub.f32 1.5, %v2313_v23 }
 0xede   :  { %v2315_v63 = vmul.f32 %v3726_v45, %v2314_v48 }
 0xee0   :  { %v2319_v51 = vsel %vm2318_vm6, %v3726_v45, %v2315_v63 }
 0xee1   :  { %v2320_v52 = vmul.f32 %v2319_v51, %v4870_v42  ;;  %v3655_v42 = vld [vmem:[%s5116_s9 + $0xf8] sm:$0xff] }
 0xee2   :  { %2757 = vmatpush.bf16.msrb.mxu2 %v3655_v42 }
 0xee3   :  { %v2322_v54 = vmul.f32 %v2321_v27, %v2320_v52 }
 0xee5   :  { %v2324_v55 = vadd.f32 %v2323_v53, %v2322_v54 }
 0xee6   :  { %2758 = vmatpush.bf16.msrb.mxu2 %v3654_v60 }
 0xee7   :  { %v2325_v56 = vpack.c.bf16 %v2324_v55, %v2324_v55 }
 0xee9   :  { %2527 = vmatmul.bf16.vlgmr.msra.gmra.mxu1 %v2325_v56  ;;  %2540 = vmatmul.bf16.vlgmr.msra.gmra.mxu2 %v2325_v56 }
 0xeea   :  { %2553 = vmatmul.bf16.vlgmr.msrb.gmra.mxu3 %v2325_v56  ;;  %2566 = vmatmul.bf16.vlgmr.msrb.gmra.mxu0 %v2325_v56 }
 0xeeb   :  { %2759 = vmatpush.bf16.msrb.mxu2 %v3653_v62 }
 0xeef   :  { %2760 = vmatpush.bf16.msrb.mxu2 %v3652_v20 }
 0xef3   :  { %2761 = vmatpush.bf16.msrb.mxu2 %v3651_v4 }
 0xef7   :  { %2762 = vmatpush.bf16.msrb.mxu2 %v3650_v7 }
 0xefb   :  { %2763 = vmatpush.bf16.msrb.mxu2 %v3649_v11 }
 0xeff   :  { %2764 = vmatpush.bf16.msrb.mxu2 %v3648_v21 }
 0xf66   :  { %v2528_v5 = vpop.f32.mrf.mxu1 }
 0xf67   :  { %v3414_v1 = vmul.f32 -1.442695, %v2528_v5  ;;  %v2567_v6 = vpop.f32.mrf.mxu0 }
 0xf69   :  { %3727 = vpow2.f32 %v3414_v1 }
 0xf6c   :  { %v2541_v34 = vpop.f32.mrf.mxu2 }
 0xf6d   :  { %v3415_v46 = vmul.f32 -1.442695, %v2541_v34  ;;  %v2554_v15 = vpop.f32.mrf.mxu3 }
 0xf6e   :  { %v2530_v18 = vpop.f32.mrf.mxu1 }
 0xf6f   :  { %v3728_v16 = vpop.eup %3727  ;;  %3729 = vpow2.f32 %v3415_v46  ;;  %v2569_v9 = vpop.f32.mrf.mxu0 }
 0xf70   :  { %v2577_v24 = vadd.f32 1.0, %v3728_v16 }
 0xf72   :  { %3731 = vrcp.f32 %v2577_v24  ;;  %v2590_v33 = vand.u32 2147483648, %v2577_v24  ;;  %v2588_v12 = vand.u32 2147483647, %v2577_v24  ;;  %vm2584_vm8 = vweird.f32 %v2577_v24 }
 0xf74   :  { %v2543_v25 = vpop.f32.mrf.mxu2  ;;  %v2591_v38 = vor.u32 1.1754944e-38, %v2590_v33  ;;  %vm2589_vm14 = vcmp.eq.f32.partialorder %v2588_v12, 8.507059e+37 }
 0xf75   :  { %v3730_v26 = vpop.eup %3729  ;;  %v2556_v28 = vpop.f32.mrf.mxu3 }
 0xf76   :  { %v2578_v29 = vadd.f32 1.0, %v3730_v26 }
 0xf78   :  { %v3732_v30 = vpop.eup %3731  ;;  %3733 = vrcp.f32 %v2578_v29  ;;  %v2605_v40 = vand.u32 2147483648, %v2578_v29  ;;  %v2603_v44 = vand.u32 2147483647, %v2578_v29  ;;  %vm2599_vm0 = vweird.f32 %v2578_v29 }
 0xf79   :  { %v2580_v31 = vmul.f32 %v3732_v30, %v2577_v24  ;;  %vm2585_vm7 = vweird.f32 %v3732_v30 }
 0xf7a   :  { %vm2586_vm9 = vmor %vm2584_vm8, %vm2585_vm7  ;;  %v2606_v19 = vor.u32 1.1754944e-38, %v2605_v40  ;;  %vm2604_vm2 = vcmp.eq.f32.partialorder %v2603_v44, 8.507059e+37 }
 0xf7b   :  { %v2581_v32 = vsub.f32 1.0, %v2580_v31 }
 0xf7d   :  { %v2582_v35 = vmul.f32 %v3732_v30, %v2581_v32 }
 0xf7e   :  { %v3734_v36 = vpop.eup %3733 }
 0xf7f   :  { %v2583_v37 = vadd.f32 %v3732_v30, %v2582_v35  ;;  %v2595_v8 = vmul.f32 %v3734_v36, %v2578_v29  ;;  %vm2600_vm15 = vweird.f32 %v3734_v36 }
 0xf80   :  { %vm2601_vm1 = vmor %vm2599_vm0, %vm2600_vm15 }
 0xf81   :  { %v2587_v17 = vsel %vm2586_vm9, %v3732_v30, %v2583_v37  ;;  %v2596_v14 = vsub.f32 1.0, %v2595_v8 }
 0xf82   :  { %v2592_v39 = vsel %vm2589_vm14, %v2591_v38, %v2587_v17 }
 0xf83   :  { %v2609_v50 = vmul.f32 %v2592_v39, %v2528_v5  ;;  %v2597_v43 = vmul.f32 %v3734_v36, %v2596_v14  ;;  %v3675_v5 = vld [vmem:[%s5117_s10] ss:$0 sm:$0xff] }
 0xf85   :  { %v2598_v22 = vadd.f32 %v3734_v36, %v2597_v43  ;;  %v2611_v45 = vmul.f32 %v2609_v50, %v2554_v15 }
 0xf87   :  { %v2602_v47 = vsel %vm2601_vm1, %v3734_v36, %v2598_v22  ;;  %v2613_v23 = vpack.c.bf16 %v2611_v45, %v2611_v45 }
 0xf88   :  { %v2607_v48 = vsel %vm2604_vm2, %v2606_v19, %v2602_v47 }
 0xf89   :  { %v2610_v63 = vmul.f32 %v2607_v48, %v2541_v34  ;;  %2752 = vmatmul.bf16.vlgmr.msrb.gmra.mxu1 %v2613_v23 }
 0xf8b   :  { %v2612_v49 = vmul.f32 %v2610_v63, %v2567_v6 }
 0xf8d   :  { %v2614_v27 = vpack.c.bf16 %v2612_v49, %v2612_v49 }
 0xf8f   :  { %2765 = vmatmul.bf16.vlgmr.msrb.gmra.mxu2 %v2614_v27 }
0x1006   :  { %v2753_v51 = vpop.f32.mrf.mxu1 }
0x100e   :  { %v2755_v52 = vpop.f32.mrf.mxu1 }
0x1012   :  { %v2766_v53 = vpop.f32.mrf.mxu2 }
0x1013   :  { %v2767_v54 = vadd.f32 %v2766_v53, %v2753_v51 }
0x1015   :  { %v2770_v55 = vadd.f32 %v2767_v54, %v4841_v61 }
0x1017   :  { %2773 = vadd.xlane.f32.xlu1 %v2770_v55 }
0x101a   :  { %v2768_v56 = vpop.f32.mrf.mxu2 }
0x108a   :  { %v2774_v57 = vpop.xlane.xlu1 %2773 }
0x108b   :  { %v2775_v58 = vmul.f32 %v2774_v57, %v3857_v13 }
0x108d   :  { %v2776_v42 = vsub.f32 %v2770_v55, %v2775_v58 }
0x108f   :  { %v2777_v59 = vmul.f32 %v2776_v42, %v2776_v42 }
0x1091   :  { %2778 = vadd.xlane.f32.xlu0 %v2777_v59 }
0x1104   :  { %v2779_v60 = vpop.xlane.xlu0 %2778 }
0x1105   :  { %v2780_v41 = vmul.f32 %v2779_v60, %v3857_v13  ;;  %v3676_v13 = vld [vmem:[%s5117_s10 + $0x1] ss:$0 sm:$0xff] }
0x1107   :  { %v2781_v62 = vadd.f32 1e-05, %v2780_v41 }
0x1109   :  { %3735 = vrsqrt.f32 %v2781_v62  ;;  %vm2788_vm10 = vweird.f32 %v2781_v62 }
0x110f   :  { %v3736_v2 = vpop.eup %3735 }
0x1110   :  { %v2783_v20 = vmul.f32 %v3736_v2, %v2781_v62  ;;  %vm2789_vm3 = vweird.f32 %v3736_v2 }
0x1111   :  { %vm2790_vm11 = vmor %vm2788_vm10, %vm2789_vm3 }
0x1112   :  { %v2784_v3 = vmul.f32 %v3736_v2, %v2783_v20 }
0x1114   :  { %v2785_v4 = vmul.f32 0.5, %v2784_v3 }
0x1116   :  { %v2786_v0 = vsub.f32 1.5, %v2785_v4 }
0x1118   :  { %v2787_v61 = vmul.f32 %v3736_v2, %v2786_v0 }
0x111a   :  { %v2791_v1 = vsel %vm2790_vm11, %v3736_v2, %v2787_v61 }
0x111b   :  { %v2792_v6 = vmul.f32 %v2791_v1, %v2776_v42 }
0x111d   :  { %v2794_v7 = vmul.f32 %v3675_v5, %v2792_v6 }
0x111f   :  { %v2796_v10 = vadd.f32 %v3676_v13, %v2794_v7 }
0x1121   :  { %2797 = vst [vmem:[#allocation2] sm:$0xff] %v2796_v10 }
0x1122   :  { %2808 = dma.vmem_to_hbm [thread:$0]  %s2804_s3, 128, %s2806_s14, [#allocation3]  }
0x1123   :  { %3771 = dma.done.wait [#allocation3], 128  }
0x1124   :  { %3772 = vsyncadd [#allocation3], 4294967168 }
0x1125   :  { %2813 = vsyncpa [#allocation3], 1 }

</bundles_post_ra>
